<compile_context>
chip_gen: v7x
topology: tpu7x:2x2x1
jax: 0.10.0
libtpu: 0.0.40
codegen_flags: <defaults>
</compile_context>

<pallas_src>
import functools

import jax
import jax.numpy as jnp
from jax import lax
from jax.experimental import pallas as pl
from jax.experimental.pallas import tpu as pltpu


def _round_up(v, m):
    return (v + m - 1) // m * m


def _resblock_kernel(x_ref, w1_ref, w2_ref, alpha_ref, out_ref,
                     slab_ref, act_ref, *, H, W, C, Wp, CH):
    # x_ref    : (1, H, W, C)   f32   input block (also the residual)
    # w1_ref   : (3C, 3C)       bf16  conv1 weights, K = dy*C+cin, N = dx*C+cout
    # w2_ref   : (3C, 3C)       bf16  conv2 weights
    # alpha_ref: (1, 1)         f32   PReLU scalar (SMEM)
    # out_ref  : (1, H, W, C)   f32
    # slab_ref : (H*Wp, 3C)     bf16  dy-banded, width-padded conv LHS slab
    # act_ref  : (H, W, C)      bf16  conv1 activation (input of conv2)
    M = H * Wp            # total slab rows
    MC = CH * Wp          # matmul M per H-chunk
    n_chunks = H // CH

    # Once-per-step halo maintenance: unconditional (megacore-safe), and the
    # band slice-stores below never touch these regions, so both convs reuse
    # the same zeros.
    zhalo = jnp.zeros((Wp, C), jnp.bfloat16)
    slab_ref[0:Wp, 0:C] = zhalo                     # dy=0 band, top padded row
    slab_ref[M - Wp:M, 2 * C:3 * C] = zhalo         # dy=2 band, bottom padded row

    zcol_l = jnp.zeros((H, 1, C), jnp.bfloat16)
    zcol_r = jnp.zeros((H, Wp - W - 1, C), jnp.bfloat16)

    def write_slab(val_hwc):
        # Zero-pad `val` (H, W, C) along W and scatter it into the three
        # dy-shifted 64-wide K-bands of the slab, so each conv is a single
        # K=192 matmul per chunk.
        flat = jnp.concatenate([zcol_l, val_hwc.astype(jnp.bfloat16), zcol_r],
                               axis=1).reshape(M, C)          # width-padded, flat
        slab_ref[:, C:2 * C] = flat                           # dy = 1 (center)
        slab_ref[Wp:M, 0:C] = flat[0:M - Wp]                  # dy = 0 (row above)
        slab_ref[0:M - Wp, 2 * C:3 * C] = flat[Wp:M]          # dy = 2 (row below)

    def conv3x3(w_ref, emit):
        # One (MC, 192) x (192, 192) MXU matmul per H-chunk, f32 accumulation;
        # dx partials are combined with two sublane-shifted adds.  Chunking
        # keeps the f32 acc per-chunk instead of whole-image.
        def body(c, carry):
            r0 = pl.multiple_of(c * MC, MC)
            acc = jnp.dot(slab_ref[pl.ds(r0, MC), :], w_ref[...],
                          preferred_element_type=jnp.float32)  # (MC, 3C) f32
            a3 = acc.reshape(CH, Wp, 3 * C)
            res = (a3[:, 0:W, 0:C]
                   + a3[:, 1:W + 1, C:2 * C]
                   + a3[:, 2:W + 2, 2 * C:3 * C])              # (CH, W, C) f32
            emit(c, res)
            return carry
        lax.fori_loop(0, n_chunks, body, 0, unroll=True)

    x = x_ref[0]                                  # (H, W, C) f32
    alpha = alpha_ref[0, 0]

    write_slab(x)                                 # slab <- dy-banded padded x

    def emit_conv1(c, res):
        act = jnp.where(res >= 0.0, res, alpha * res)          # PReLU (1 scalar)
        act_ref[pl.ds(c * CH, CH), :, :] = act.astype(jnp.bfloat16)

    conv3x3(w1_ref, emit_conv1)

    write_slab(act_ref[...])                      # slab <- dy-banded padded act

    def emit_conv2(c, res):
        r = c * CH
        xc = x_ref[0, pl.ds(r, CH), :, :]                      # residual chunk
        out_ref[0, pl.ds(r, CH), :, :] = (res + xc).astype(out_ref.dtype)

    conv3x3(w2_ref, emit_conv2)


def resblock_forward(x_nhwc, w1_oihw, w2_oihw, alpha, *,
                     chunk_rows=None, vmem_limit_bytes=48 * 1024 * 1024):
    """Fused ResBlock forward.  x_nhwc: (N, H, W, 64) f32; weights OIHW.

    NHWC is the native layout (no layout transposes around the call).
    """
    N, H, W, C = x_nhwc.shape
    # Wp >= W+2; multiple of 8 keeps slab row offsets and the f32 acc
    # (CH, Wp, 3C) reshape sublane-aligned.  The (Wp - (W+2)) extra columns
    # are wasted matmul M -> prefer widths where W+2 is already 8-aligned.
    Wp = _round_up(W + 2, 8)

    if chunk_rows is None:
        # Largest divisor of H whose f32 (CH*Wp, 3C) accumulator stays ~<=2 MiB.
        budget = max(1, (2 * 1024 * 1024) // (Wp * 3 * C * 4))
        chunk_rows = 1
        for d in range(1, H + 1):
            if H % d == 0 and d <= budget:
                chunk_rows = d
    assert H % chunk_rows == 0, "chunk_rows must divide H"

    def prep_w(w_oihw):
        # OIHW -> (ky, kx, Cin, Cout) -> (ky, Cin, kx, Cout) -> (3*Cin, 3*Cout)
        # so K index = dy*C + cin (matches the slab bands), N = dx*C + cout.
        w = jnp.transpose(w_oihw, (2, 3, 1, 0))
        w = jnp.transpose(w, (0, 2, 1, 3))
        return w.reshape(3 * C, 3 * C).astype(jnp.bfloat16)

    w1 = prep_w(w1_oihw)
    w2 = prep_w(w2_oihw)
    alpha_arr = jnp.asarray(alpha, jnp.float32).reshape(1, 1)

    kernel = functools.partial(_resblock_kernel, H=H, W=W, C=C, Wp=Wp,
                               CH=chunk_rows)

    return pl.pallas_call(
        kernel,
        out_shape=jax.ShapeDtypeStruct((N, H, W, C), x_nhwc.dtype),
        grid=(N,),
        in_specs=[
            pl.BlockSpec((1, H, W, C), lambda n: (n, 0, 0, 0)),
            # Constant block index -> Pallas DMAs the folded weights only once.
            pl.BlockSpec((3 * C, 3 * C), lambda n: (0, 0)),
            pl.BlockSpec((3 * C, 3 * C), lambda n: (0, 0)),
            pl.BlockSpec(memory_space=pltpu.SMEM),
        ],
        out_specs=pl.BlockSpec((1, H, W, C), lambda n: (n, 0, 0, 0)),
        scratch_shapes=[
            pltpu.VMEM((H * Wp, 3 * C), jnp.bfloat16),   # dy-banded conv slab
            pltpu.VMEM((H, W, C), jnp.bfloat16),         # conv1 activation
        ],
        compiler_params=pltpu.CompilerParams(
            dimension_semantics=("parallel",),
            vmem_limit_bytes=vmem_limit_bytes),
    )(x_nhwc, w1, w2, alpha_arr)


def resblock_forward_nchw(x_nchw, w1_oihw, w2_oihw, alpha, **kw):
    """Drop-in NCHW wrapper (layout glue only; prefer the NHWC entry point)."""
    y = resblock_forward(jnp.transpose(x_nchw, (0, 2, 3, 1)),
                         w1_oihw, w2_oihw, alpha, **kw)
    return jnp.transpose(y, (0, 3, 1, 2))


def _reference_forward(x_nhwc, w1_oihw, w2_oihw, alpha):
    """Pure-JAX f32 reference (lax conv, HIGHEST precision), NHWC."""
    def conv(v, w_oihw):
        w_hwio = jnp.transpose(w_oihw, (2, 3, 1, 0))
        dn = lax.conv_dimension_numbers(v.shape, w_hwio.shape,
                                        ("NHWC", "HWIO", "NHWC"))
        return lax.conv_general_dilated(v, w_hwio, (1, 1), "SAME",
                                        dimension_numbers=dn,
                                        precision=lax.Precision.HIGHEST)
    y = conv(x_nhwc, w1_oihw)
    y = jnp.where(y >= 0.0, y, alpha * y)
    y = conv(y, w2_oihw)
    return y + x_nhwc


if __name__ == "__main__":
    key = jax.random.PRNGKey(0)
    k_x, k_w1, k_w2 = jax.random.split(key, 3)

    N, H, W, C = 2, 16, 16, 64   # channels fixed at 64 by the module
    x = jax.random.normal(k_x, (N, H, W, C), jnp.float32)

    # Deterministic synthetic parameters (OIHW, matching nn.Conv2d, no bias).
    fan_in = C * 3 * 3
    scale = 1.0 / (fan_in ** 0.5)
    w1 = jax.random.normal(k_w1, (C, C, 3, 3), jnp.float32) * scale
    w2 = jax.random.normal(k_w2, (C, C, 3, 3), jnp.float32) * scale
    alpha = 0.25  # nn.PReLU() default single-parameter init

    # chunk_rows=8 -> two M-chunks at this shape so the chunked path is tested.
    out = jax.block_until_ready(
        resblock_forward(x, w1, w2, alpha, chunk_rows=8))
    ref = jax.block_until_ready(_reference_forward(x, w1, w2, alpha))

    max_err = float(jnp.max(jnp.abs(out - ref)))
    mean_err = float(jnp.mean(jnp.abs(out - ref)))
    assert out.shape == (N, H, W, C)
    # bf16 MXU operands (f32 accumulation) vs. the f32 HIGHEST reference:
    # ~1e-2 max error is expected; real bugs would show up as O(1) errors.
    assert max_err < 5e-2, f"max abs error too large: {max_err}"
    assert mean_err < 1e-2, f"mean abs error too large: {mean_err}"

    print("KERNEL_OK")
</pallas_src>

<mosaic_0001>
module attributes {stable_mosaic.version = 11 : i64} {
  func.func @_resblock_kernel(%arg0: i32, %arg1: memref<1x16x16x64xf32, #tpu.memory_space<vmem>>, %arg2: memref<192x192xbf16, #tpu.memory_space<vmem>>, %arg3: memref<192x192xbf16, #tpu.memory_space<vmem>>, %arg4: memref<1x1xf32, #tpu.memory_space<smem>>, %arg5: memref<1x16x16x64xf32, #tpu.memory_space<vmem>>, %arg6: memref<384x192xbf16, #tpu.memory_space<vmem>>, %arg7: memref<16x16x64xbf16, #tpu.memory_space<vmem>>) attributes {dimension_semantics = [#tpu.dimension_semantics<parallel>], iteration_bounds = array<i64: 2>, scalar_prefetch = 0 : i64, scratch_operands = 2 : i64, tpu.core_type = #tpu.core_type<tc>, window_params = [{transform_indices = @transform_0, window_bounds = array<i64: 1, 16, 16, 64>}, {pipeline_mode = #tpu.pipeline_mode<synchronous>, transform_indices = @transform_1, window_bounds = array<i64: 192, 192>}, {pipeline_mode = #tpu.pipeline_mode<synchronous>, transform_indices = @transform_2, window_bounds = array<i64: 192, 192>}, {transform_indices = @transform_3, window_bounds = array<i64: 1, 1>}, {transform_indices = @transform_4, window_bounds = array<i64: 1, 16, 16, 64>}]} {
    %cst = arith.constant 0.000000e+00 : bf16
    %0 = vector.broadcast %cst : bf16 to vector<24x64xbf16>
    %c0 = arith.constant 0 : index
    %c0_0 = arith.constant 0 : index
    %1 = vector.load %arg6[%c0, %c0_0] : memref<384x192xbf16, #tpu.memory_space<vmem>>, vector<24x64xbf16>
    tpu.vector_store %arg6[%c0, %c0_0], %0 {strides = array<i32>} : memref<384x192xbf16, #tpu.memory_space<vmem>>, vector<24x64xbf16>,
    %c360 = arith.constant 360 : index
    %c128 = arith.constant 128 : index
    %2 = vector.load %arg6[%c360, %c128] : memref<384x192xbf16, #tpu.memory_space<vmem>>, vector<24x64xbf16>
    tpu.vector_store %arg6[%c360, %c128], %0 {strides = array<i32>} : memref<384x192xbf16, #tpu.memory_space<vmem>>, vector<24x64xbf16>,
    %cst_1 = arith.constant 0.000000e+00 : bf16
    %3 = vector.broadcast %cst_1 : bf16 to vector<16x1x64xbf16>
    %cst_2 = arith.constant 0.000000e+00 : bf16
    %4 = vector.broadcast %cst_2 : bf16 to vector<16x7x64xbf16>
    %c0_3 = arith.constant 0 : index
    %c0_4 = arith.constant 0 : index
    %c0_5 = arith.constant 0 : index
    %c0_6 = arith.constant 0 : index
    %5 = vector.load %arg1[%c0_3, %c0_4, %c0_5, %c0_6] : memref<1x16x16x64xf32, #tpu.memory_space<vmem>>, vector<1x16x16x64xf32>
    %6 = vector.shape_cast %5 : vector<1x16x16x64xf32> to vector<16x16x64xf32>
    %c0_7 = arith.constant 0 : index
    %c0_8 = arith.constant 0 : index
    %7 = memref.load %arg4[%c0_7, %c0_8] : memref<1x1xf32, #tpu.memory_space<smem>>
    %8 = arith.truncf %6 : vector<16x16x64xf32> to vector<16x16x64xbf16>
    %9 = tpu.concatenate %3, %8, %4 in 1 : vector<16x1x64xbf16>, vector<16x16x64xbf16>, vector<16x7x64xbf16> -> vector<16x24x64xbf16>
    %10 = vector.shape_cast %9 : vector<16x24x64xbf16> to vector<384x64xbf16>
    %c0_9 = arith.constant 0 : index
    %c64 = arith.constant 64 : index
    %11 = vector.load %arg6[%c0_9, %c64] : memref<384x192xbf16, #tpu.memory_space<vmem>>, vector<384x64xbf16>
    tpu.vector_store %arg6[%c0_9, %c64], %10 {strides = array<i32>} : memref<384x192xbf16, #tpu.memory_space<vmem>>, vector<384x64xbf16>,
    %12 = vector.extract_strided_slice %10 {offsets = [0, 0], sizes = [360, 64], strides = [1, 1]} : vector<384x64xbf16> to vector<360x64xbf16>
    %c24 = arith.constant 24 : index
    %c0_10 = arith.constant 0 : index
    %13 = vector.load %arg6[%c24, %c0_10] : memref<384x192xbf16, #tpu.memory_space<vmem>>, vector<360x64xbf16>
    tpu.vector_store %arg6[%c24, %c0_10], %12 {strides = array<i32>} : memref<384x192xbf16, #tpu.memory_space<vmem>>, vector<360x64xbf16>,
    %14 = vector.extract_strided_slice %10 {offsets = [24, 0], sizes = [360, 64], strides = [1, 1]} : vector<384x64xbf16> to vector<360x64xbf16>
    %c0_11 = arith.constant 0 : index
    %c128_12 = arith.constant 128 : index
    %15 = vector.load %arg6[%c0_11, %c128_12] : memref<384x192xbf16, #tpu.memory_space<vmem>>, vector<360x64xbf16>
    tpu.vector_store %arg6[%c0_11, %c128_12], %14 {strides = array<i32>} : memref<384x192xbf16, #tpu.memory_space<vmem>>, vector<360x64xbf16>,
    %c0_i32 = arith.constant 0 : i32
    %c192_i32 = arith.constant 192 : i32
    %16 = arith.muli %c0_i32, %c192_i32 : i32
    %17 = tpu.assume_multiple %16, 192 : i32
    %18 = arith.index_cast %17 : i32 to index
    %c0_13 = arith.constant 0 : index
    %19 = vector.load %arg6[%18, %c0_13] : memref<384x192xbf16, #tpu.memory_space<vmem>>, vector<192x192xbf16>
    %c0_14 = arith.constant 0 : index
    %c0_15 = arith.constant 0 : index
    %20 = vector.load %arg2[%c0_14, %c0_15] : memref<192x192xbf16, #tpu.memory_space<vmem>>, vector<192x192xbf16>
    %cst_16 = arith.constant dense<0.000000e+00> : vector<192x192xf32>
    %21 = tpu.matmul %19, %20, %cst_16 {dimension_numbers = #tpu.dot_dimension_numbers<[1], [0], [0], [1], [0, 0, 1, 1], [], []>} : vector<192x192xbf16>, vector<192x192xbf16>, vector<192x192xf32> -> vector<192x192xf32>
    %22 = vector.shape_cast %21 : vector<192x192xf32> to vector<8x24x192xf32>
    %23 = vector.extract_strided_slice %22 {offsets = [0, 0, 0], sizes = [8, 16, 64], strides = [1, 1, 1]} : vector<8x24x192xf32> to vector<8x16x64xf32>
    %24 = vector.extract_strided_slice %22 {offsets = [0, 1, 64], sizes = [8, 16, 64], strides = [1, 1, 1]} : vector<8x24x192xf32> to vector<8x16x64xf32>
    %25 = arith.addf %23, %24 : vector<8x16x64xf32>
    %26 = vector.extract_strided_slice %22 {offsets = [0, 2, 128], sizes = [8, 16, 64], strides = [1, 1, 1]} : vector<8x24x192xf32> to vector<8x16x64xf32>
    %27 = arith.addf %25, %26 : vector<8x16x64xf32>
    %cst_17 = arith.constant 0.000000e+00 : f32
    %28 = vector.broadcast %cst_17 : f32 to vector<8x16x64xf32>
    %29 = arith.cmpf oge, %27, %28 : vector<8x16x64xf32>
    %30 = vector.broadcast %7 : f32 to vector<8x16x64xf32>
    %31 = arith.mulf %30, %27 : vector<8x16x64xf32>
    %32 = arith.select %29, %27, %31 : vector<8x16x64xi1>, vector<8x16x64xf32>
    %33 = arith.truncf %32 : vector<8x16x64xf32> to vector<8x16x64xbf16>
    %c8_i32 = arith.constant 8 : i32
    %34 = arith.muli %c0_i32, %c8_i32 : i32
    %35 = arith.index_cast %34 : i32 to index
    %c0_18 = arith.constant 0 : index
    %c0_19 = arith.constant 0 : index
    %36 = vector.load %arg7[%35, %c0_18, %c0_19] : memref<16x16x64xbf16, #tpu.memory_space<vmem>>, vector<8x16x64xbf16>
    tpu.vector_store %arg7[%35, %c0_18, %c0_19], %33 {strides = array<i32>} : memref<16x16x64xbf16, #tpu.memory_space<vmem>>, vector<8x16x64xbf16>,
    %c1_i32 = arith.constant 1 : i32
    %c192_i32_20 = arith.constant 192 : i32
    %37 = arith.muli %c1_i32, %c192_i32_20 : i32
    %38 = tpu.assume_multiple %37, 192 : i32
    %39 = arith.index_cast %38 : i32 to index
    %c0_21 = arith.constant 0 : index
    %40 = vector.load %arg6[%39, %c0_21] : memref<384x192xbf16, #tpu.memory_space<vmem>>, vector<192x192xbf16>
    %c0_22 = arith.constant 0 : index
    %c0_23 = arith.constant 0 : index
    %41 = vector.load %arg2[%c0_22, %c0_23] : memref<192x192xbf16, #tpu.memory_space<vmem>>, vector<192x192xbf16>
    %cst_24 = arith.constant dense<0.000000e+00> : vector<192x192xf32>
    %42 = tpu.matmul %40, %41, %cst_24 {dimension_numbers = #tpu.dot_dimension_numbers<[1], [0], [0], [1], [0, 0, 1, 1], [], []>} : vector<192x192xbf16>, vector<192x192xbf16>, vector<192x192xf32> -> vector<192x192xf32>
    %43 = vector.shape_cast %42 : vector<192x192xf32> to vector<8x24x192xf32>
    %44 = vector.extract_strided_slice %43 {offsets = [0, 0, 0], sizes = [8, 16, 64], strides = [1, 1, 1]} : vector<8x24x192xf32> to vector<8x16x64xf32>
    %45 = vector.extract_strided_slice %43 {offsets = [0, 1, 64], sizes = [8, 16, 64], strides = [1, 1, 1]} : vector<8x24x192xf32> to vector<8x16x64xf32>
    %46 = arith.addf %44, %45 : vector<8x16x64xf32>
    %47 = vector.extract_strided_slice %43 {offsets = [0, 2, 128], sizes = [8, 16, 64], strides = [1, 1, 1]} : vector<8x24x192xf32> to vector<8x16x64xf32>
    %48 = arith.addf %46, %47 : vector<8x16x64xf32>
    %cst_25 = arith.constant 0.000000e+00 : f32
    %49 = vector.broadcast %cst_25 : f32 to vector<8x16x64xf32>
    %50 = arith.cmpf oge, %48, %49 : vector<8x16x64xf32>
    %51 = vector.broadcast %7 : f32 to vector<8x16x64xf32>
    %52 = arith.mulf %51, %48 : vector<8x16x64xf32>
    %53 = arith.select %50, %48, %52 : vector<8x16x64xi1>, vector<8x16x64xf32>
    %54 = arith.truncf %53 : vector<8x16x64xf32> to vector<8x16x64xbf16>
    %c8_i32_26 = arith.constant 8 : i32
    %55 = arith.muli %c1_i32, %c8_i32_26 : i32
    %56 = arith.index_cast %55 : i32 to index
    %c0_27 = arith.constant 0 : index
    %c0_28 = arith.constant 0 : index
    %57 = vector.load %arg7[%56, %c0_27, %c0_28] : memref<16x16x64xbf16, #tpu.memory_space<vmem>>, vector<8x16x64xbf16>
    tpu.vector_store %arg7[%56, %c0_27, %c0_28], %54 {strides = array<i32>} : memref<16x16x64xbf16, #tpu.memory_space<vmem>>, vector<8x16x64xbf16>,
    %c2_i32 = arith.constant 2 : i32
    %c0_29 = arith.constant 0 : index
    %c0_30 = arith.constant 0 : index
    %c0_31 = arith.constant 0 : index
    %58 = vector.load %arg7[%c0_29, %c0_30, %c0_31] : memref<16x16x64xbf16, #tpu.memory_space<vmem>>, vector<16x16x64xbf16>
    %59 = tpu.concatenate %3, %58, %4 in 1 : vector<16x1x64xbf16>, vector<16x16x64xbf16>, vector<16x7x64xbf16> -> vector<16x24x64xbf16>
    %60 = vector.shape_cast %59 : vector<16x24x64xbf16> to vector<384x64xbf16>
    %c0_32 = arith.constant 0 : index
    %c64_33 = arith.constant 64 : index
    %61 = vector.load %arg6[%c0_32, %c64_33] : memref<384x192xbf16, #tpu.memory_space<vmem>>, vector<384x64xbf16>
    tpu.vector_store %arg6[%c0_32, %c64_33], %60 {strides = array<i32>} : memref<384x192xbf16, #tpu.memory_space<vmem>>, vector<384x64xbf16>,
    %62 = vector.extract_strided_slice %60 {offsets = [0, 0], sizes = [360, 64], strides = [1, 1]} : vector<384x64xbf16> to vector<360x64xbf16>
    %c24_34 = arith.constant 24 : index
    %c0_35 = arith.constant 0 : index
    %63 = vector.load %arg6[%c24_34, %c0_35] : memref<384x192xbf16, #tpu.memory_space<vmem>>, vector<360x64xbf16>
    tpu.vector_store %arg6[%c24_34, %c0_35], %62 {strides = array<i32>} : memref<384x192xbf16, #tpu.memory_space<vmem>>, vector<360x64xbf16>,
    %64 = vector.extract_strided_slice %60 {offsets = [24, 0], sizes = [360, 64], strides = [1, 1]} : vector<384x64xbf16> to vector<360x64xbf16>
    %c0_36 = arith.constant 0 : index
    %c128_37 = arith.constant 128 : index
    %65 = vector.load %arg6[%c0_36, %c128_37] : memref<384x192xbf16, #tpu.memory_space<vmem>>, vector<360x64xbf16>
    tpu.vector_store %arg6[%c0_36, %c128_37], %64 {strides = array<i32>} : memref<384x192xbf16, #tpu.memory_space<vmem>>, vector<360x64xbf16>,
    %c0_i32_38 = arith.constant 0 : i32
    %c192_i32_39 = arith.constant 192 : i32
    %66 = arith.muli %c0_i32_38, %c192_i32_39 : i32
    %67 = tpu.assume_multiple %66, 192 : i32
    %68 = arith.index_cast %67 : i32 to index
    %c0_40 = arith.constant 0 : index
    %69 = vector.load %arg6[%68, %c0_40] : memref<384x192xbf16, #tpu.memory_space<vmem>>, vector<192x192xbf16>
    %c0_41 = arith.constant 0 : index
    %c0_42 = arith.constant 0 : index
    %70 = vector.load %arg3[%c0_41, %c0_42] : memref<192x192xbf16, #tpu.memory_space<vmem>>, vector<192x192xbf16>
    %cst_43 = arith.constant dense<0.000000e+00> : vector<192x192xf32>
    %71 = tpu.matmul %69, %70, %cst_43 {dimension_numbers = #tpu.dot_dimension_numbers<[1], [0], [0], [1], [0, 0, 1, 1], [], []>} : vector<192x192xbf16>, vector<192x192xbf16>, vector<192x192xf32> -> vector<192x192xf32>
    %72 = vector.shape_cast %71 : vector<192x192xf32> to vector<8x24x192xf32>
    %73 = vector.extract_strided_slice %72 {offsets = [0, 0, 0], sizes = [8, 16, 64], strides = [1, 1, 1]} : vector<8x24x192xf32> to vector<8x16x64xf32>
    %74 = vector.extract_strided_slice %72 {offsets = [0, 1, 64], sizes = [8, 16, 64], strides = [1, 1, 1]} : vector<8x24x192xf32> to vector<8x16x64xf32>
    %75 = arith.addf %73, %74 : vector<8x16x64xf32>
    %76 = vector.extract_strided_slice %72 {offsets = [0, 2, 128], sizes = [8, 16, 64], strides = [1, 1, 1]} : vector<8x24x192xf32> to vector<8x16x64xf32>
    %77 = arith.addf %75, %76 : vector<8x16x64xf32>
    %c8_i32_44 = arith.constant 8 : i32
    %78 = arith.muli %c0_i32_38, %c8_i32_44 : i32
    %c0_45 = arith.constant 0 : index
    %79 = arith.index_cast %78 : i32 to index
    %c0_46 = arith.constant 0 : index
    %c0_47 = arith.constant 0 : index
    %80 = vector.load %arg1[%c0_45, %79, %c0_46, %c0_47] : memref<1x16x16x64xf32, #tpu.memory_space<vmem>>, vector<1x8x16x64xf32>
    %81 = vector.shape_cast %80 : vector<1x8x16x64xf32> to vector<8x16x64xf32>
    %82 = arith.addf %77, %81 : vector<8x16x64xf32>
    %c0_48 = arith.constant 0 : index
    %83 = arith.index_cast %78 : i32 to index
    %c0_49 = arith.constant 0 : index
    %c0_50 = arith.constant 0 : index
    %84 = vector.load %arg5[%c0_48, %83, %c0_49, %c0_50] : memref<1x16x16x64xf32, #tpu.memory_space<vmem>>, vector<1x8x16x64xf32>
    %85 = vector.shape_cast %84 : vector<1x8x16x64xf32> to vector<8x16x64xf32>
    %86 = vector.shape_cast %82 : vector<8x16x64xf32> to vector<1x8x16x64xf32>
    tpu.vector_store %arg5[%c0_48, %83, %c0_49, %c0_50], %86 {strides = array<i32>} : memref<1x16x16x64xf32, #tpu.memory_space<vmem>>, vector<1x8x16x64xf32>,
    %c1_i32_51 = arith.constant 1 : i32
    %c192_i32_52 = arith.constant 192 : i32
    %87 = arith.muli %c1_i32_51, %c192_i32_52 : i32
    %88 = tpu.assume_multiple %87, 192 : i32
    %89 = arith.index_cast %88 : i32 to index
    %c0_53 = arith.constant 0 : index
    %90 = vector.load %arg6[%89, %c0_53] : memref<384x192xbf16, #tpu.memory_space<vmem>>, vector<192x192xbf16>
    %c0_54 = arith.constant 0 : index
    %c0_55 = arith.constant 0 : index
    %91 = vector.load %arg3[%c0_54, %c0_55] : memref<192x192xbf16, #tpu.memory_space<vmem>>, vector<192x192xbf16>
    %cst_56 = arith.constant dense<0.000000e+00> : vector<192x192xf32>
    %92 = tpu.matmul %90, %91, %cst_56 {dimension_numbers = #tpu.dot_dimension_numbers<[1], [0], [0], [1], [0, 0, 1, 1], [], []>} : vector<192x192xbf16>, vector<192x192xbf16>, vector<192x192xf32> -> vector<192x192xf32>
    %93 = vector.shape_cast %92 : vector<192x192xf32> to vector<8x24x192xf32>
    %94 = vector.extract_strided_slice %93 {offsets = [0, 0, 0], sizes = [8, 16, 64], strides = [1, 1, 1]} : vector<8x24x192xf32> to vector<8x16x64xf32>
    %95 = vector.extract_strided_slice %93 {offsets = [0, 1, 64], sizes = [8, 16, 64], strides = [1, 1, 1]} : vector<8x24x192xf32> to vector<8x16x64xf32>
    %96 = arith.addf %94, %95 : vector<8x16x64xf32>
    %97 = vector.extract_strided_slice %93 {offsets = [0, 2, 128], sizes = [8, 16, 64], strides = [1, 1, 1]} : vector<8x24x192xf32> to vector<8x16x64xf32>
    %98 = arith.addf %96, %97 : vector<8x16x64xf32>
    %c8_i32_57 = arith.constant 8 : i32
    %99 = arith.muli %c1_i32_51, %c8_i32_57 : i32
    %c0_58 = arith.constant 0 : index
    %100 = arith.index_cast %99 : i32 to index
    %c0_59 = arith.constant 0 : index
    %c0_60 = arith.constant 0 : index
    %101 = vector.load %arg1[%c0_58, %100, %c0_59, %c0_60] : memref<1x16x16x64xf32, #tpu.memory_space<vmem>>, vector<1x8x16x64xf32>
    %102 = vector.shape_cast %101 : vector<1x8x16x64xf32> to vector<8x16x64xf32>
    %103 = arith.addf %98, %102 : vector<8x16x64xf32>
    %c0_61 = arith.constant 0 : index
    %104 = arith.index_cast %99 : i32 to index
    %c0_62 = arith.constant 0 : index
    %c0_63 = arith.constant 0 : index
    %105 = vector.load %arg5[%c0_61, %104, %c0_62, %c0_63] : memref<1x16x16x64xf32, #tpu.memory_space<vmem>>, vector<1x8x16x64xf32>
    %106 = vector.shape_cast %105 : vector<1x8x16x64xf32> to vector<8x16x64xf32>
    %107 = vector.shape_cast %103 : vector<8x16x64xf32> to vector<1x8x16x64xf32>
    tpu.vector_store %arg5[%c0_61, %104, %c0_62, %c0_63], %107 {strides = array<i32>} : memref<1x16x16x64xf32, #tpu.memory_space<vmem>>, vector<1x8x16x64xf32>,
    %c2_i32_64 = arith.constant 2 : i32
    return
  }
  func.func @transform_0(%arg0: i32) -> (i32, i32, i32, i32) {
    %c0_i32 = arith.constant 0 : i32
    %c0_i32_0 = arith.constant 0 : i32
    %c0_i32_1 = arith.constant 0 : i32
    %c0_i32_2 = arith.constant 0 : i32
    return %arg0, %c0_i32, %c0_i32_0, %c0_i32_1 : i32, i32, i32, i32
  }
  func.func @transform_1(%arg0: i32) -> (i32, i32) {
    %c0_i32 = arith.constant 0 : i32
    %c0_i32_0 = arith.constant 0 : i32
    %c0_i32_1 = arith.constant 0 : i32
    return %c0_i32, %c0_i32_0 : i32, i32
  }
  func.func @transform_2(%arg0: i32) -> (i32, i32) {
    %c0_i32 = arith.constant 0 : i32
    %c0_i32_0 = arith.constant 0 : i32
    %c0_i32_1 = arith.constant 0 : i32
    return %c0_i32, %c0_i32_0 : i32, i32
  }
  func.func @transform_3(%arg0: i32) -> (i32, i32) {
    %c0_i32 = arith.constant 0 : i32
    %c0_i32_0 = arith.constant 0 : i32
    %c0_i32_1 = arith.constant 0 : i32
    return %c0_i32, %c0_i32_0 : i32, i32
  }
  func.func @transform_4(%arg0: i32) -> (i32, i32, i32, i32) {
    %c0_i32 = arith.constant 0 : i32
    %c0_i32_0 = arith.constant 0 : i32
    %c0_i32_1 = arith.constant 0 : i32
    %c0_i32_2 = arith.constant 0 : i32
    return %arg0, %c0_i32, %c0_i32_0, %c0_i32_1 : i32, i32, i32, i32
  }
}

</mosaic_0001>

<bundles_post_ra>
// kernel: tpu_custom_call.1
= control target key start
LH: loop header
LB: loop body
LE: loop exit
PB: predicated region body
PF: predicated region fallthrough
CT: control target
= control target key end

     0   :  { %s6240_s0 = inlined_call_operand.hbm [shape: f32[2,16,16,64], index: 0, kind: input, shape index: {}]   ;;  %s6241_s1 = inlined_call_operand.hbm [shape: bf16[192,192], index: 1, kind: input, shape index: {}]   ;;  %s6242_s2 = inlined_call_operand.hbm [shape: bf16[192,192], index: 2, kind: input, shape index: {}]   ;;  %s6243_s3 = inlined_call_operand.<no memory space> [shape: f32[1,1], index: 3, kind: input, shape index: {}]   ;;  %s6244_s4 = inlined_call_operand.hbm [shape: f32[2,16,16,64], index: 4, kind: output, shape index: {}]  }
   0x1   :  { %9 = sst [smem:[#allocation4]] %s6243_s3 }
   0x2   :  { %10 = vsyncpa [#allocation6], 0 }
   0x3   :  { %12 = vsyncpa [#allocation6 + $0x1], 0 }
   0x4   :  { %13 = vsyncpa [#allocation9], 0 }
   0x5   :  { %14 = vsyncpa [#allocation7], 0 }
   0x6   :  { %16 = vsyncpa [#allocation7 + $0x1], 0  ;;  %s4504_s17 = smov 0   ;;  %s4506_s18 = smov 0  }
   0x7   :  { %s4508_s19 = smov 0   ;;  %s4510_s20 = smov 0  }
   0x8 LB: > { %s4525_s3 = sadd.s32 4294967295, %s4464_s20   ;;  %s3934_s21 = sadd.s32 4294967294, %s4464_s20   ;;  %s4464_s20 = sphi %s4510_s20, %s6348_s20   ;;  %s4460_s19 = sphi %s4508_s19, %s6347_s19   ;;  %s4456_s18 = sphi %s4506_s18, %s6346_s18   ;;  %s4452_s17 = sphi %s4504_s17, %s6345_s17  }
   0x9   : > { %p42_p0 = scmp.ne.s32.totalorder %s4456_s18, %s4452_s17  ;;  %p6245_p1 = scmp.eq.s32.totalorder %s4525_s3, 0 }
   0xa   : > { %p135_p3 = scmp.eq.s32.totalorder %s3934_s21, 1  ;;  %p3935_p5 = scmp.ge.s32.totalorder %s4464_s20, 1 }
   0xb   : > { %p4534_p4 = por %p6245_p1, %p42_p0  ;;  %p142_p7 = scmp.lt.s32.totalorder %s4464_s20, 3 }
   0xc   : > { %p4539_p6 = por %p135_p3, %p42_p0  ;;  %s4466_s25 = smov [#allocation8]  }
   0xd   : > { %s6266_s22 = scalar_select %p4534_p4, 1, 0 }
   0xe   : > { %s6267_s23 = scalar_select %p4539_p6, 1, 0 }
   0xf   : > { %p4544_p8 = pnand %p3935_p5, %p142_p7  ;;  %s154_s26 = sshll.u32 %s4466_s25, 4  ;;  %s4548_s26 = int_to_ptr.vmem [resolvable:$true] %s154_s26 }
  0x10   : > { %s4467_s28 = smov [#allocation10]   ;;  %s4308_s6 = scalar_lea.hbm %s6241_s1, 3072 }
  0x11   : > { %p4176_p9 = pneg %p4544_p8  ;;  %s167_s29 = sshll.u32 %s4467_s28, 4  ;;  %s4559_s29 = int_to_ptr.vmem [resolvable:$true] %s167_s29 }
  0x12   : > { %p4309_p12 = scmp.ne.s32.totalorder %s6241_s1, %s4308_s6  ;;  %p4315_p5 = scmp.lt.u32.totalorder %s4308_s6, %s6241_s1 }
  0x13   : > { %p4555_p11 = pnand %p4176_p9, %p6245_p1 }
  0x15   : > { %p4310_p13 = pneg %p4555_p11 }
  0x17   : > { %p4311_p0 = pnand %p4310_p13, %p4309_p12 }
  0x19   : > { %p4312_p3 = pneg %p4311_p0 }
  0x1b   : > { %p4317_p7 = pnand %p4315_p5, %p4312_p3 }
  0x1d   : > { %4320 = shalt.err (!%p4317_p7)
}
  0x1e   : > { %s4321_s11 = scalar_lea.vmem %s4548_s26, 3072  ;;  %p4329_p2 = scmp.lt.s32.totalorder %s4548_s26, %s4548_s26 }
  0x1f   : > { %p4322_p9 = scmp.ne.s32.totalorder %s4548_s26, %s4321_s11  ;;  %p4330_p12 = scmp.lt.s32.totalorder %s4321_s11, %s4321_s11 }
  0x21   : > { %p4324_p10 = pnand %p4322_p9, %p4310_p13  ;;  %p4331_p0 = por %p4330_p12, %p4329_p2 }
  0x23   : > { %p4325_p1 = pneg %p4324_p10 }
  0x25   : > { %p4332_p6 = pnand %p4331_p0, %p4325_p1 }
  0x27   : > { %4335 = shalt.err (!%p4332_p6)
}
  0x28   : > { %s4468_s12 = smov 128   ;;  %s4469_s13 = smov 8  }
  0x29   : > { %4179 = dma.hbm_to_vmem [thread:$0]  (!%p4555_p11), %s6241_s1, 3072, %s4548_s26, [#allocation9], %s4468_s12, %s4468_s12, %s4469_s13  }
  0x2a   : > { %s4336_s25 = scalar_lea.hbm %s6242_s2, 3072 }
  0x2b   : > { %p4337_p1 = scmp.ne.s32.totalorder %s6242_s2, %s4336_s25  ;;  %p4343_p10 = scmp.lt.u32.totalorder %s4336_s25, %s6242_s2 }
  0x2d   : > { %p4339_p2 = pnand %p4337_p1, %p4310_p13 }
  0x2f   : > { %p4340_p6 = pneg %p4339_p2 }
  0x31   : > { %p4345_p3 = pnand %p4343_p10, %p4340_p6 }
  0x33   : > { %4348 = shalt.err (!%p4345_p3)
}
  0x34   : > { %s4349_s26 = scalar_lea.vmem %s4559_s29, 3072  ;;  %p4357_p12 = scmp.lt.s32.totalorder %s4559_s29, %s4559_s29 }
  0x35   : > { %p4350_p5 = scmp.ne.s32.totalorder %s4559_s29, %s4349_s26  ;;  %p4358_p0 = scmp.lt.s32.totalorder %s4349_s26, %s4349_s26 }
  0x37   : > { %p4352_p7 = pnand %p4350_p5, %p4310_p13  ;;  %p4359_p1 = por %p4358_p0, %p4357_p12 }
  0x39   : > { %p4353_p9 = pneg %p4352_p7 }
  0x3b   : > { %p4360_p2 = pnand %p4359_p1, %p4353_p9 }
  0x3d   : > { %4363 = shalt.err (!%p4360_p2)
}
  0x3e   : > { %4182 = dma.hbm_to_vmem [thread:$0]  (!%p4555_p11), %s6242_s2, 3072, %s4559_s29, [#allocation9], %s4468_s12, %s4468_s12, %s4469_s13  }
  0x3f   : > { %s4620_s27 = sadd.s32 1, %s4464_s20   ;;  %s29_s9 = sadd.s32 1, %s4460_s19 }
  0x40   : > { %s26_s10 = ssub.s32 %s4464_s20, %s4620_s27  ;;  %p36_p13 = scmp.ne.s32.totalorder %s4460_s19, %s4456_s18 }
  0x41   : > { %p27_p6 = scmp.eq.s32.totalorder %s26_s10, 0  ;;  %p37_p10 = scmp.eq.s32.totalorder %s4464_s20, 0 }
  0x42   : > { %p6270_p3 = scmp.eq.s32.totalorder %s4525_s3, 1  ;;  %p4193_p7 = scmp.lt.s32.totalorder %s4464_s20, 2 }
  0x43   : > { %s4636_s14 = scalar_select %p27_p6, %s4460_s19, %s29_s9  }
  0x44   : > { %p4630_p5 = por %p6270_p3, %p36_p13  ;;  %p38_p9 = por %p37_p10, %p36_p13 }
  0x45   : > { %s184_s15 = sand.u32 1, %s4460_s19   ;;  %s4162_s29 = sshll.u32 %s4464_s20, 12 }
  0x46   : > { %s6271_s11 = scalar_select %p4630_p5, 1, 0 }
  0x47   : > { %s3939_s16 = sshll.u32 %s184_s15, 8  ;;  %s4643_s28 = scalar_lea.hbm %s6240_s0, %s4162_s29 }
  0x48   : > { %s188_s30 = scalar_lea.vmem [#allocation5], %s3939_s16  ;;  %p4647_p11 = pnand %p4193_p7, %p38_p9 }
  0x49   : > { %s195_s5 = sshll.u32 %s188_s30, 4  ;;  %s4651_s26 = scalar_lea.sflag [#allocation6], %s184_s15  ;;  %s4645_s5 = int_to_ptr.vmem [resolvable:$true] %s195_s5 }
  0x4a   : > { %s4364_s7 = scalar_lea.hbm %s4643_s28, 4096  ;;  %p4366_p0 = pneg %p4647_p11 }
  0x4b   : > { %p4365_p12 = scmp.ne.s32.totalorder %s4643_s28, %s4364_s7  ;;  %s4369_s10 = scalar_lea.hbm %s6240_s0, 8192 }
  0x4c   : > { %p4370_p13 = scmp.lt.u32.totalorder %s4643_s28, %s6240_s0  ;;  %p4371_p6 = scmp.lt.u32.totalorder %s4369_s10, %s4364_s7 }
  0x4d   : > { %p4367_p1 = pnand %p4366_p0, %p4365_p12  ;;  %p4373_p3 = scmp.lt.u32.totalorder %s4364_s7, %s4643_s28 }
  0x4e   : > { %p4372_p10 = por %p4371_p6, %p4370_p13 }
  0x4f   : > { %p4368_p2 = pneg %p4367_p1 }
  0x50   : > { %p4374_p7 = por %p4373_p3, %p4372_p10 }
  0x52   : > { %p4375_p9 = pnand %p4374_p7, %p4368_p2 }
  0x54   : > { %4378 = shalt.err (!%p4375_p9)
}
  0x55   : > { %s4379_s15 = scalar_lea.vmem %s4645_s5, 4096  ;;  %s4470_s21 = smov [#allocation5]  }
  0x56   : > { %p4380_p12 = scmp.ne.s32.totalorder %s4645_s5, %s4379_s15  ;;  %s4384_s25 = sshll.u32 %s4470_s21, 4  ;;  %s4385_s25 = int_to_ptr.vmem [resolvable:$false] %s4384_s25 }
  0x57   : > { %s4386_s30 = scalar_lea.vmem %s4385_s25, 8192  ;;  %p4387_p4 = scmp.lt.s32.totalorder %s4645_s5, %s4385_s25 }
  0x58   : > { %p4382_p1 = pnand %p4380_p12, %p4366_p0  ;;  %p4388_p13 = scmp.lt.s32.totalorder %s4386_s30, %s4379_s15 }
  0x5a   : > { %p4383_p5 = pneg %p4382_p1  ;;  %p4389_p6 = por %p4388_p13, %p4387_p4 }
  0x5c   : > { %p4390_p10 = pnand %p4389_p6, %p4383_p5 }
  0x5e   : > { %4393 = shalt.err (!%p4390_p10)
}
  0x5f   : > { %4186 = dma.hbm_to_vmem [thread:$0]  (!%p4647_p11), %s4643_s28, 4096, %s4645_s5, %s4651_s26, %s4468_s12, %s4468_s12, %s4469_s13  }
  0x60   : > { %207 = sbr.rel (%p4544_p8) target bundleno = 1189 (0x4a5), region = 36 }
  0x67   : > { %s4685_s7 = sand.u32 1, %s4456_s18   ;;  %p6273_p4 = scmp.ne.s32.totalorder %s6266_s22, 0 }
  0x68   : > { %s3943_s8 = sshll.u32 %s4685_s7, 8  ;;  %s210_s9 = scalar_lea.sflag [#allocation6], %s4685_s7 }
  0x69   : > { %s4691_s6 = scalar_lea.vmem [#allocation5], %s3943_s8 }
  0x6a   : > { %4439 = dma.done.wait (%p6273_p4), %s210_s9, 4096  }
  0x6b   : > { %4441 = vsyncadd (%p6273_p4), %s210_s9, 4294963200  ;;  %p6274_p5 = scmp.eq.s32.totalorder %s4525_s3, 0 }
  0x6d   : > { %4443 = dma.done.wait (%p6274_p5), [#allocation9], 6144   ;;  %p6275_p8 = pmov %p6274_p5 }
  0x6e   : > { %vm247_vm0 = vcmask 523264   ;;  %v4471_v0 = vmov 0   ;;  %v254_v1 = vld [vmem:[%s4691_s6] sm:$0xff]  ;;  %v255_v2 = vld [vmem:[%s4691_s6 + $0x8] sm:$0xff]  ;;  %v256_v3 = vld [vmem:[%s4691_s6 + $0x10] sm:$0xff]  ;;  %vm447_vm1 = vcmask 1040384  }
  0x6f   : > { %4445 = vsyncadd (%p6275_p8), [#allocation9], 4294961152  ;;  %248 = vst.msk [vmem:[#allocation2] sm:$0xff] %vm247_vm0, %v4471_v0  ;;  %v287_v4 = vpack.c.bf16 %v255_v2, %v254_v1  ;;  %v257_v5 = vld [vmem:[%s4691_s6 + $0x18] sm:$0xff]  ;;  %v268_v6 = vld [vmem:[%s4691_s6 + $0x70] sm:$0xff]  ;;  %vm249_vm3 = vcmask 519168  }
  0x70   : > { %253 = vst.msk [vmem:[#allocation2 + $0x178] sm:$0xff] %vm247_vm0, %v4471_v0  ;;  %v269_v7 = vld [vmem:[%s4691_s6 + $0x78] sm:$0xff]  ;;  %vm448_vm2 = vsmask.f32 256  ;;  %v288_v8 = vpack.c.bf16 %v257_v5, %v256_v3  ;;  %v270_v9 = vld [vmem:[%s4691_s6 + $0x80] sm:$0xff]  ;;  %v271_v10 = vld [vmem:[%s4691_s6 + $0x88] sm:$0xff] }
  0x71   : > { %v4711_v11 = vpack.c.bf16 %v269_v7, %v268_v6  ;;  %v272_v12 = vld [vmem:[%s4691_s6 + $0x90] sm:$0xff]  ;;  %v304_v13 = vshrl.u32 %v287_v4, 16  ;;  %v307_v14 = vshll.u32 %v287_v4, 16  ;;  %v295_v15 = vpack.c.bf16 %v271_v10, %v270_v9  ;;  %v273_v16 = vld [vmem:[%s4691_s6 + $0x98] sm:$0xff]  ;;  %250 = vst.msk [vmem:[#allocation2 + $0x10] sm:$0xf] %vm249_vm3, %v4471_v0  ;;  %vm4720_vm5 = vmand %vm447_vm1, %vm448_vm2 }
  0x72   : > { %vm251_vm4 = vcmask 523268   ;;  %v311_v17 = vshrl.u32 %v288_v8, 16  ;;  %v314_v18 = vshll.u32 %v288_v8, 16  ;;  %v296_v24 = vpack.c.bf16 %v273_v16, %v272_v12  ;;  %v258_v25 = vld [vmem:[%s4691_s6 + $0x20] sm:$0xff]  ;;  %v259_v26 = vld [vmem:[%s4691_s6 + $0x28] sm:$0xff]  ;;  %v260_v30 = vld [vmem:[%s4691_s6 + $0x30] sm:$0xff] }
  0x73   : > { %v353_v19 = vshrl.u32 %v4711_v11, 16  ;;  %252 = vst.msk [vmem:[#allocation2 + $0x168] sm:$0xf0] %vm251_vm4, %v4471_v0  ;;  %v306_v20 = vrot.slane %v304_v13, 7  ;;  %v360_v22 = vshrl.u32 %v295_v15, 16  ;;  %v363_v23 = vshll.u32 %v295_v15, 16 }
  0x74   : > { %v313_v27 = vrot.slane %v311_v17, 7  ;;  %v356_v29 = vshll.u32 %v4711_v11, 16  ;;  %v261_v31 = vld [vmem:[%s4691_s6 + $0x38] sm:$0xff]  ;;  %v367_v35 = vshrl.u32 %v296_v24, 16  ;;  %v289_v39 = vpack.c.bf16 %v259_v26, %v258_v25  ;;  %s4472_s22 = smov 64   ;;  %v274_v53 = vld [vmem:[%s4691_s6 + $0xa0] sm:$0xff] }
  0x75   : > { %v4726_v28 = vrot.slane %v353_v19, 7  ;;  %v309_v32 = vor.u32 %v307_v14, %v306_v20  ;;  %v466_v33 = vsel %vm4720_vm5, %v306_v20, 0  ;;  %v362_v34 = vrot.slane %v360_v22, 7  ;;  %v4237_v48 = vld [vmem:[#allocation8 + $0x4] ss:$8 sps:$4 sm:$0xff]   ;;  %v276_v60 = vld [vmem:[%s4691_s6 + $0xb0] sm:$0xff] }
  0x76   : > { %v316_v36 = vor.u32 %v314_v18, %v313_v27  ;;  %v4735_v37 = vsel %vm4720_vm5, %v313_v27, 0  ;;  %v516_v38 = vunpack.c.l.b16 %v466_v33  ;;  %v290_v43 = vpack.c.bf16 %v261_v31, %v260_v30  ;;  %v275_v54 = vld [vmem:[%s4691_s6 + $0xa8] sm:$0xff]  ;;  %v277_v61 = vld [vmem:[%s4691_s6 + $0xb8] sm:$0xff]  ;;  %986 = vmatprep.subr.bf16.mxu0 %v4237_v48  ;;  %1637 = vmatprep.subr.bf16.mxu1 %v4237_v48  ;;  %v262_v3 = vld [vmem:[%s4691_s6 + $0x40] sm:$0xff]  ;;  %s286_s24 = sld [smem:[#allocation4]]  ;;  %s6030_s12 = scalar_lea.vmem [#allocation11], %s3943_s8 }
  0x77   : > { %v4739_v40 = vsel %vm4720_vm5, 0, %v309_v32  ;;  %v519_v41 = vunpack.c.l.b16 %v4735_v37  ;;  %v365_v42 = vor.u32 %v363_v23, %v362_v34  ;;  %v4752_v46 = vsel %vm4720_vm5, %v4726_v28, 0  ;;  %v4239_v55 = vld [vmem:[#allocation8] ss:$8 sps:$4 sm:$0xff]   ;;  %v4240_v62 = vld [vmem:[#allocation8 + $0x14] ss:$8 sps:$4 sm:$0xff]  }
  0x78   : > { %586 = vrot.lane.b32.xlu0 %v4739_v40, %s4472_s22  ;;  %v515_v44 = vunpack.c.h.b16 %v4739_v40  ;;  %v4747_v45 = vsel %vm4720_vm5, 0, %v316_v36  ;;  %v369_v47 = vrot.slane %v367_v35, 7  ;;  %v370_v52 = vshll.u32 %v296_v24, 16  ;;  %v263_v4 = vld [vmem:[%s4691_s6 + $0x48] sm:$0xff]  ;;  %987 = vmatpush1.bf16.msra.mxu0 %v4239_v55  ;;  %s4163_s13 = sshll.u32 %s4525_s3, 12  ;;  %s3841_s28 = sshll.u32 %s6030_s12, 4  ;;  %s6192_s28 = int_to_ptr.vmem [resolvable:$true] %s3841_s28 }
  0x79   : > { %v518_v49 = vunpack.c.h.b16 %v4747_v45  ;;  %756 = vst.msk [vmem:[#allocation2 + $0x8] sm:$0xff] %vm247_vm0, %v4747_v45  ;;  %v3947_v50 = vcombine.low %v466_v33, %v4747_v45  ;;  %v458_v51 = vsel %vm4720_vm5, 0, %v365_v42  ;;  %v4769_v59 = vsel %vm4720_vm5, %v362_v34, 0  ;;  %1638 = vmatpush1.bf16.msra.mxu1 %v4239_v55  ;;  %988 = vmatprep.subr.bf16.mxu0 %v4240_v62  ;;  %v279_v55 = vld [vmem:[%s4691_s6 + $0xc8] sm:$0xff]  ;;  %s6190_s10 = scalar_lea.hbm %s6244_s4, %s4163_s13  ;;  %s3828_s3 = scalar_lea.sflag [#allocation7], %s4685_s7 }
  0x7a   : > { %v4762_v56 = vpack.c.b16 %v516_v38, %v515_v44  ;;  %v539_v57 = vunpack.c.h.b16 %v458_v51  ;;  %v4765_v58 = vcombine.low %v4752_v46, %v458_v51  ;;  %v372_v0 = vor.u32 %v370_v52, %v369_v47  ;;  %1639 = vmatprep.subr.bf16.mxu1 %v4240_v62  ;;  %v264_v38 = vld [vmem:[%s4691_s6 + $0x50] sm:$0xff]  ;;  %s4394_s16 = scalar_lea.vmem %s6192_s28, 4096  ;;  %p6342_p0 = scmp.ne.s32.totalorder %s6271_s11, 0 }
  0x7b   : > { %v564_v63 = vpack.c.b16 %v519_v41, %v518_v49  ;;  %v540_v1 = vunpack.c.l.b16 %v4769_v59  ;;  %v318_v2 = vshrl.u32 %v289_v39, 16  ;;  %v321_v5 = vshll.u32 %v289_v39, 16  ;;  %p4395_p11 = scmp.ne.s32.totalorder %s6192_s28, %s4394_s16  ;;  %s4473_s29 = smov [#allocation11]  }
  0x7c   : > { %588 = vrot.lane.b32.xlu0 %v3947_v50, %s4472_s22  ;;  %766 = vst.msk [vmem:[#allocation2 + $0xa8] sm:$0xff] %vm247_vm0, %v4765_v58  ;;  %v475_v6 = vsel %vm4720_vm5, %v369_v47, 0  ;;  %v325_v7 = vshrl.u32 %v290_v43, 16  ;;  %v328_v8 = vshll.u32 %v290_v43, 16  ;;  %v4784_v9 = vsel %vm4720_vm5, 0, %v372_v0  ;;  %v265_v43 = vld [vmem:[%s4691_s6 + $0x58] sm:$0xff] }
  0x7d   : > { %590 = vrot.lane.b32.xlu1 %v564_v63, %s4472_s22  ;;  %v4786_v10 = vpack.c.b16 %v540_v1, %v539_v57  ;;  %v320_v12 = vrot.slane %v318_v2, 7  ;;  %v543_v13 = vunpack.c.l.b16 %v475_v6  ;;  %v3951_v14 = vcombine.low %v4769_v59, %v4784_v9  ;;  %768 = vst.msk [vmem:[#allocation2 + $0xc8] sm:$0xff] %vm247_vm0, %v4784_v9  ;;  %v278_v50 = vld [vmem:[%s4691_s6 + $0xc0] sm:$0xff]  ;;  %p4396_p2 = pnand %p4395_p11, %p6342_p0  ;;  %s4398_s15 = sshll.u32 %s4473_s29, 4  ;;  %s4399_s15 = int_to_ptr.vmem [resolvable:$false] %s4398_s15 }
  0x7e   : > { %v542_v15 = vunpack.c.h.b16 %v4784_v9  ;;  %v327_v16 = vrot.slane %v325_v7, 7  ;;  %v297_v17 = vpack.c.bf16 %v275_v54, %v274_v53  ;;  %v298_v20 = vpack.c.bf16 %v277_v61, %v276_v60  ;;  %v280_v7 = vld [vmem:[%s4691_s6 + $0xd0] sm:$0xff]  ;;  %s4400_s21 = scalar_lea.vmem %s4399_s15, 8192  ;;  %p4401_p7 = scmp.lt.s32.totalorder %s6192_s28, %s4399_s15 }
  0x7f   : > { %767 = vst.msk [vmem:[#allocation2 + $0xb8] sm:$0xff] %vm247_vm0, %v4786_v10  ;;  %v323_v18 = vor.u32 %v321_v5, %v320_v12  ;;  %v468_v19 = vsel %vm4720_vm5, %v320_v12, 0  ;;  %v291_v22 = vpack.c.bf16 %v263_v4, %v262_v3  ;;  %v292_v61 = vpack.c.bf16 %v265_v43, %v264_v38  ;;  %p4397_p3 = pneg %p4396_p2  ;;  %p4402_p9 = scmp.lt.s32.totalorder %s4400_s21, %s4394_s16 }
  0x80   : > { %v576_v23 = vpack.c.b16 %v543_v13, %v542_v15  ;;  %v330_v24 = vor.u32 %v328_v8, %v327_v16  ;;  %v522_v25 = vunpack.c.l.b16 %v468_v19  ;;  %v374_v26 = vshrl.u32 %v297_v17, 16  ;;  %v281_v8 = vld [vmem:[%s4691_s6 + $0xd8] sm:$0xff] }
  0x81   : > { %610 = vrot.lane.b32.xlu1 %v458_v51, %s4472_s22  ;;  %v452_v27 = vsel %vm4720_vm5, 0, %v323_v18  ;;  %v377_v30 = vshll.u32 %v297_v17, 16  ;;  %v4802_v31 = vsel %vm4720_vm5, %v327_v16, 0  ;;  %v381_v32 = vshrl.u32 %v298_v20, 16  ;;  %v266_v16 = vld [vmem:[%s4691_s6 + $0x60] sm:$0xff]  ;;  %v267_v17 = vld [vmem:[%s4691_s6 + $0x68] sm:$0xff]  ;;  %p4403_p12 = por %p4402_p9, %p4401_p7 }
  0x82   : > { %v521_v33 = vunpack.c.h.b16 %v452_v27  ;;  %v4805_v34 = vcombine.low %v4735_v37, %v452_v27  ;;  %592 = vrot.lane.b32.xlu0 %v452_v27, %s4472_s22  ;;  %v4810_v35 = vsel %vm4720_vm5, 0, %v330_v24  ;;  %v376_v36 = vrot.slane %v374_v26, 7 }
  0x83   : > { %v3948_v39 = vcombine.low %v468_v19, %v4810_v35  ;;  %759 = vst.msk [vmem:[#allocation2 + $0x38] sm:$0xff] %vm247_vm0, %v4810_v35  ;;  %v524_v41 = vunpack.c.h.b16 %v4810_v35  ;;  %v525_v37 = vunpack.c.l.b16 %v4802_v31  ;;  %v383_v42 = vrot.slane %v381_v32, 7  ;;  %p4404_p1 = pnand %p4403_p12, %p4397_p3 }
  0x84   : > { %757 = vst.msk [vmem:[#allocation2 + $0x18] sm:$0xff] %vm247_vm0, %v4805_v34  ;;  %v4821_v44 = vpack.c.b16 %v522_v25, %v521_v33  ;;  %v379_v47 = vor.u32 %v377_v30, %v376_v36  ;;  %v384_v48 = vshll.u32 %v298_v20, 16  ;;  %v4825_v49 = vsel %vm4720_vm5, %v376_v36, 0  ;;  %v1434_v30 = vld [vmem:[#allocation2 + $0xc8] sm:$0xff] }
  0x85   : > { %612 = vrot.lane.b32.xlu1 %v3951_v14, %s4472_s22  ;;  %v567_v51 = vpack.c.b16 %v525_v37, %v524_v41  ;;  %v546_v52 = vunpack.c.l.b16 %v4825_v49  ;;  %v332_v53 = vshrl.u32 %v291_v22, 16  ;;  %v335_v54 = vshll.u32 %v291_v22, 16  ;;  %v809_v41 = vld [vmem:[#allocation8 + $0x18] sm:$0xff]  ;;  %4024 = vmatprep.mubr.msk.bf16.mxu1 %vm247_vm0, %v1434_v30 }
  0x86   : > { %758 = vst.msk [vmem:[#allocation2 + $0x28] sm:$0xff] %vm247_vm0, %v4821_v44  ;;  %594 = vrot.lane.b32.xlu0 %v3948_v39, %s4472_s22  ;;  %v460_v57 = vsel %vm4720_vm5, 0, %v379_v47  ;;  %v386_v59 = vor.u32 %v384_v48, %v383_v42  ;;  %v4838_v60 = vsel %vm4720_vm5, %v383_v42, 0  ;;  %v4843_v62 = vor.u32 %v356_v29, %v4726_v28  ;;  %v808_v39 = vld [vmem:[#allocation8 + $0x10] sm:$0xff]  ;;  %v282_v47 = vld [vmem:[%s4691_s6 + $0xe0] sm:$0xff] }
  0x87   : > { %v545_v63 = vunpack.c.h.b16 %v460_v57  ;;  %v4845_v0 = vcombine.low %v475_v6, %v460_v57  ;;  %v334_v1 = vrot.slane %v332_v53, 7  ;;  %v339_v3 = vshrl.u32 %v292_v61, 16 }
  0x88   : > { %v4849_v2 = vsel %vm4720_vm5, 0, %v386_v59  ;;  %v342_v4 = vshll.u32 %v292_v61, 16  ;;  %v299_v5 = vpack.c.bf16 %v279_v55, %v278_v50  ;;  %v549_v6 = vunpack.c.l.b16 %v4838_v60  ;;  %v283_v59 = vld [vmem:[%s4691_s6 + $0xe8] sm:$0xff] }
  0x89   : > { %614 = vrot.lane.b32.xlu1 %v576_v23, %s4472_s22  ;;  %769 = vst.msk [vmem:[#allocation2 + $0xd8] sm:$0xff] %vm247_vm0, %v4845_v0  ;;  %v3952_v11 = vcombine.low %v4825_v49, %v4849_v2  ;;  %v4858_v28 = vpack.c.b16 %v546_v52, %v545_v63  ;;  %771 = vst.msk [vmem:[#allocation2 + $0xf8] sm:$0xff] %vm247_vm0, %v4849_v2  ;;  %v337_v29 = vor.u32 %v335_v54, %v334_v1  ;;  %v783_v23 = vld [vmem:[#allocation2 + $0x8] sm:$0xff]  ;;  %vm658_vm6 = vcmask 1048064  }
  0x8a   : > { %596 = vrot.lane.b32.xlu0 %v567_v51, %s4472_s22  ;;  %v341_v12 = vrot.slane %v339_v3, 7  ;;  %v470_v13 = vsel %vm4720_vm5, %v334_v1, 0  ;;  %v388_v14 = vshrl.u32 %v299_v5, 16  ;;  %v391_v15 = vshll.u32 %v299_v5, 16  ;;  %3988 = vmatprep.mubr.msk.bf16.mxu0 %vm247_vm0, %v783_v23  ;;  %v4242_v52 = vld [vmem:[#allocation8 + $0x24] ss:$8 sps:$4 sm:$0xff]  }
  0x8b   : > { %770 = vst.msk [vmem:[#allocation2 + $0xe8] sm:$0xff] %vm247_vm0, %v4858_v28  ;;  %v454_v18 = vsel %vm4720_vm5, 0, %v337_v29  ;;  %v548_v19 = vunpack.c.h.b16 %v4849_v2  ;;  %v528_v20 = vunpack.c.l.b16 %v470_v13  ;;  %v300_v22 = vpack.c.bf16 %v281_v8, %v280_v7  ;;  %v4244_v29 = vld [vmem:[#allocation8 + $0x20] ss:$8 sps:$4 sm:$0xff]  }
  0x8c   : > { %v527_v24 = vunpack.c.h.b16 %v454_v18  ;;  %v4874_v25 = vcombine.low %v4802_v31, %v454_v18  ;;  %v344_v26 = vor.u32 %v342_v4, %v341_v12  ;;  %v390_v27 = vrot.slane %v388_v14, 7  ;;  %v285_v14 = vld [vmem:[%s4691_s6 + $0xf8] sm:$0xff] }
  0x8d   : > { %616 = vrot.lane.b32.xlu1 %v460_v57, %s4472_s22  ;;  %v471_v32 = vsel %vm4720_vm5, %v341_v12, 0  ;;  %v395_v33 = vshrl.u32 %v300_v22, 16  ;;  %v398_v36 = vshll.u32 %v300_v22, 16  ;;  %v293_v38 = vpack.c.bf16 %v267_v17, %v266_v16  ;;  %v284_v12 = vld [vmem:[%s4691_s6 + $0xf0] sm:$0xff] }
  0x8e   : > { %760 = vst.msk [vmem:[#allocation2 + $0x48] sm:$0xff] %vm247_vm0, %v4874_v25  ;;  %598 = vrot.lane.b32.xlu0 %v454_v18, %s4472_s22  ;;  %v4886_v31 = vsel %vm4720_vm5, 0, %v344_v26  ;;  %v4888_v37 = vpack.c.b16 %v528_v20, %v527_v24  ;;  %v393_v42 = vor.u32 %v391_v15, %v390_v27  ;;  %v531_v43 = vunpack.c.l.b16 %v471_v32 }
  0x8f   : > { %v3949_v48 = vcombine.low %v470_v13, %v4886_v31  ;;  %762 = vst.msk [vmem:[#allocation2 + $0x68] sm:$0xff] %vm247_vm0, %v4886_v31  ;;  %v530_v49 = vunpack.c.h.b16 %v4886_v31  ;;  %v397_v50 = vrot.slane %v395_v33, 7  ;;  %v4897_v51 = vsel %vm4720_vm5, %v390_v27, 0  ;;  %v4245_v13 = vld [vmem:[#allocation8 + $0x34] ss:$8 sps:$4 sm:$0xff]  }
  0x90   : > { %761 = vst.msk [vmem:[#allocation2 + $0x58] sm:$0xff] %vm247_vm0, %v4888_v37  ;;  %v462_v53 = vsel %vm4720_vm5, 0, %v393_v42  ;;  %v552_v54 = vunpack.c.l.b16 %v4897_v51  ;;  %v346_v55 = vshrl.u32 %v293_v38, 16  ;;  %v349_v57 = vshll.u32 %v293_v38, 16  ;;  %v4248_v42 = vld [vmem:[#allocation8 + $0x44] ss:$8 sps:$4 sm:$0xff]  }
  0x91   : > { %618 = vrot.lane.b32.xlu1 %v3952_v11, %s4472_s22  ;;  %v579_v61 = vpack.c.b16 %v549_v6, %v548_v19  ;;  %v551_v63 = vunpack.c.h.b16 %v462_v53  ;;  %v4907_v1 = vcombine.low %v4838_v60, %v462_v53  ;;  %v400_v3 = vor.u32 %v398_v36, %v397_v50  ;;  %v4247_v36 = vld [vmem:[#allocation8 + $0x30] ss:$8 sps:$4 sm:$0xff]  }
  0x92   : > { %600 = vrot.lane.b32.xlu0 %v3949_v48, %s4472_s22  ;;  %v570_v4 = vpack.c.b16 %v531_v43, %v530_v49  ;;  %v348_v5 = vrot.slane %v346_v55, 7  ;;  %v4913_v7 = vsel %vm4720_vm5, 0, %v4843_v62  ;;  %v3966_v8 = vcombine.low %v808_v39, %v809_v41  ;;  %v4250_v55 = vld [vmem:[#allocation8 + $0x40] ss:$8 sps:$4 sm:$0xff]  }
  0x93   : > { %772 = vst.msk [vmem:[#allocation2 + $0x108] sm:$0xff] %vm247_vm0, %v4907_v1  ;;  %v4920_v60 = vsel %vm4720_vm5, 0, %v400_v3  ;;  %v4922_v11 = vpack.c.b16 %v552_v54, %v551_v63  ;;  %765 = vst.msk [vmem:[#allocation2 + $0x98] sm:$0xff] %vm247_vm0, %v4913_v7  ;;  %v301_v6 = vpack.c.bf16 %v283_v59, %v282_v47  ;;  %v479_v16 = vsel %vm4720_vm5, %v397_v50, 0  ;;  %v4251_v59 = vld [vmem:[#allocation8 + $0x54] ss:$8 sps:$4 sm:$0xff]  }
  0x94   : > { %774 = vst.msk [vmem:[#allocation2 + $0x128] sm:$0xff] %vm247_vm0, %v4920_v60  ;;  %v351_v62 = vor.u32 %v349_v57, %v348_v5  ;;  %v472_v15 = vsel %vm4720_vm5, %v348_v5, 0  ;;  %989 = vmatpush1.bf16.msra.mxu0 %v3966_v8  ;;  %1640 = vmatpush1.bf16.msra.mxu1 %v3966_v8  ;;  %v302_v26 = vpack.c.bf16 %v285_v14, %v284_v12  ;;  %v554_v30 = vunpack.c.h.b16 %v4920_v60  ;;  %v4253_v8 = vld [vmem:[#allocation8 + $0x50] ss:$8 sps:$4 sm:$0xff]   ;;  %v4256_v14 = vld [vmem:[#allocation8 + $0x60] ss:$8 sps:$4 sm:$0xff]  }
  0x95   : > { %620 = vrot.lane.b32.xlu1 %v579_v61, %s4472_s22  ;;  %773 = vst.msk [vmem:[#allocation2 + $0x118] sm:$0xff] %vm247_vm0, %v4922_v11  ;;  %v534_v17 = vunpack.c.l.b16 %v472_v15  ;;  %v402_v18 = vshrl.u32 %v301_v6, 16  ;;  %v405_v19 = vshll.u32 %v301_v6, 16  ;;  %990 = vmatprep.subr.bf16.mxu0 %v4242_v52  ;;  %v3953_v27 = vcombine.low %v4897_v51, %v4920_v60  ;;  %v4254_v6 = vld [vmem:[#allocation8 + $0x64] ss:$8 sps:$4 sm:$0xff]  }
  0x96   : > { %602 = vrot.lane.b32.xlu0 %v570_v4, %s4472_s22  ;;  %v456_v20 = vsel %vm4720_vm5, 0, %v351_v62  ;;  %1641 = vmatprep.subr.bf16.mxu1 %v4242_v52  ;;  %v555_v33 = vunpack.c.l.b16 %v479_v16  ;;  %v409_v39 = vshrl.u32 %v302_v26, 16  ;;  %v412_v41 = vshll.u32 %v302_v26, 16  ;;  %v4269_v26 = vld [vmem:[#allocation8 + $0xb4] ss:$8 sps:$4 sm:$0xff]  }
  0x97   : > { %v533_v22 = vunpack.c.h.b16 %v456_v20  ;;  %v4939_v23 = vcombine.low %v471_v32, %v456_v20  ;;  %v404_v24 = vrot.slane %v402_v18, 7  ;;  %v3950_v43 = vcombine.low %v472_v15, %v4913_v7  ;;  %v4257_v15 = vld [vmem:[#allocation8 + $0x74] ss:$8 sps:$4 sm:$0xff]   ;;  %v4262_v18 = vld [vmem:[#allocation8 + $0x80] ss:$8 sps:$4 sm:$0xff]  }
  0x98   : > { %991 = vmatpush1.bf16.msra.mxu0 %v4244_v29  ;;  %1642 = vmatpush1.bf16.msra.mxu1 %v4244_v29  ;;  %v536_v47 = vunpack.c.h.b16 %v4913_v7  ;;  %v537_v48 = vunpack.c.l.b16 %v4752_v46  ;;  %v411_v51 = vrot.slane %v409_v39, 7  ;;  %v582_v46 = vpack.c.b16 %v555_v33, %v554_v30  ;;  %v785_v39 = vld [vmem:[#allocation2 + $0x18] sm:$0xff] }
  0x99   : > { %622 = vrot.lane.b32.xlu1 %v462_v53, %s4472_s22  ;;  %763 = vst.msk [vmem:[#allocation2 + $0x78] sm:$0xff] %vm247_vm0, %v4939_v23  ;;  %v4947_v38 = vpack.c.b16 %v534_v17, %v533_v22  ;;  %v407_v32 = vor.u32 %v405_v19, %v404_v24  ;;  %992 = vmatprep.subr.bf16.mxu0 %v4245_v13  ;;  %v480_v49 = vsel %vm4720_vm5, %v404_v24, 0  ;;  %v4260_v17 = vld [vmem:[#allocation8 + $0x84] ss:$8 sps:$4 sm:$0xff]   ;;  %v4263_v19 = vld [vmem:[#allocation8 + $0x94] ss:$8 sps:$4 sm:$0xff]  }
  0x9a   : > { %604 = vrot.lane.b32.xlu0 %v456_v20, %s4472_s22  ;;  %1643 = vmatprep.subr.bf16.mxu1 %v4245_v13  ;;  %v558_v52 = vunpack.c.l.b16 %v480_v49  ;;  %v414_v57 = vor.u32 %v412_v41, %v411_v51  ;;  %v481_v61 = vsel %vm4720_vm5, %v411_v51, 0  ;;  %v573_v63 = vpack.c.b16 %v537_v48, %v536_v47  ;;  %v4265_v20 = vld [vmem:[#allocation8 + $0x90] ss:$8 sps:$4 sm:$0xff]   ;;  %v4266_v22 = vld [vmem:[#allocation8 + $0xa4] ss:$8 sps:$4 sm:$0xff]  }
  0x9b   : > { %764 = vst.msk [vmem:[#allocation2 + $0x88] sm:$0xff] %vm247_vm0, %v4947_v38  ;;  %v464_v50 = vsel %vm4720_vm5, 0, %v407_v32  ;;  %v3963_v4 = vcombine.low %v481_v61, %v481_v61  ;;  %v561_v12 = vunpack.c.l.b16 %v481_v61  ;;  %v4268_v24 = vld [vmem:[#allocation8 + $0xa0] ss:$8 sps:$4 sm:$0xff]   ;;  %v3955_v33 = vcombine.low %v4739_v40, %v4739_v40 }
  0x9c   : > { %v557_v53 = vunpack.c.h.b16 %v464_v50  ;;  %v4959_v54 = vcombine.low %v479_v16, %v464_v50  ;;  %993 = vmatpush1.bf16.msra.mxu0 %v4247_v36  ;;  %1644 = vmatpush1.bf16.msra.mxu1 %v4247_v36  ;;  %v465_v5 = vsel %vm4720_vm5, 0, %v414_v57  ;;  %v4259_v16 = vld [vmem:[#allocation8 + $0x70] ss:$8 sps:$4 sm:$0xff]   ;;  %v787_v48 = vld [vmem:[#allocation2 + $0x28] sm:$0xff]  ;;  %vm1163_vm7 = vcmask 1046528  }
  0x9d   : > { %624 = vrot.lane.b32.xlu1 %v3953_v27, %s4472_s22  ;;  %994 = vmatprep.subr.bf16.mxu0 %v4248_v42  ;;  %777 = vst.msk [vmem:[#allocation2 + $0x158] sm:$0xff] %vm247_vm0, %v465_v5  ;;  %v560_v29 = vunpack.c.h.b16 %v465_v5  ;;  %v3954_v13 = vcombine.low %v480_v49, %v465_v5  ;;  %v4271_v27 = vld [vmem:[#allocation8 + $0xb0] ss:$8 sps:$4 sm:$0xff]   ;;  %v791_v57 = vld [vmem:[#allocation2 + $0x48] sm:$0xff]  ;;  %vm1292_vm8 = vcmask 1045504  }
  0x9e   : > { %606 = vrot.lane.b32.xlu0 %v3950_v43, %s4472_s22  ;;  %775 = vst.msk [vmem:[#allocation2 + $0x138] sm:$0xff] %vm247_vm0, %v4959_v54  ;;  %v4967_v3 = vpack.c.b16 %v558_v52, %v557_v53  ;;  %1645 = vmatprep.subr.bf16.mxu1 %v4248_v42  ;;  %v1436_v49 = vld [vmem:[#allocation2 + $0xd8] sm:$0xff] }
  0x9f   : > { %778 = vst.msk [vmem:[#allocation2 + $0x168] sm:$0xf] %vm249_vm3, %v3963_v4  ;;  %v585_v62 = vpack.c.b16 %v561_v12, %v560_v29  ;;  %v789_v52 = vld [vmem:[#allocation2 + $0x38] sm:$0xff]  ;;  %v795_v12 = vld [vmem:[#allocation2 + $0x68] sm:$0xff] }
  0xa0   : > { %776 = vst.msk [vmem:[#allocation2 + $0x148] sm:$0xff] %vm247_vm0, %v4967_v3  ;;  %995 = vmatpush1.bf16.msra.mxu0 %v4250_v55  ;;  %1646 = vmatpush1.bf16.msra.mxu1 %v4250_v55  ;;  %v793_v4 = vld [vmem:[#allocation2 + $0x58] sm:$0xff] }
  0xa1   : > { %626 = vrot.lane.b32.xlu1 %v582_v46, %s4472_s22  ;;  %996 = vmatprep.subr.bf16.mxu0 %v4251_v59 }
  0xa2   : > { %608 = vrot.lane.b32.xlu0 %v573_v63, %s4472_s22  ;;  %1647 = vmatprep.subr.bf16.mxu1 %v4251_v59 }
  0xa4   : > { %997 = vmatpush1.bf16.msra.mxu0 %v4253_v8  ;;  %1648 = vmatpush1.bf16.msra.mxu1 %v4253_v8 }
  0xa5   : > { %628 = vrot.lane.b32.xlu1 %v464_v50, %s4472_s22  ;;  %998 = vmatprep.subr.bf16.mxu0 %v4254_v6 }
  0xa6   : > { %630 = vrot.lane.b32.xlu0 %v3954_v13, %s4472_s22  ;;  %1649 = vmatprep.subr.bf16.mxu1 %v4254_v6 }
  0xa8   : > { %999 = vmatpush1.bf16.msra.mxu0 %v4256_v14  ;;  %1650 = vmatpush1.bf16.msra.mxu1 %v4256_v14 }
  0xa9   : > { %632 = vrot.lane.b32.xlu1 %v585_v62, %s4472_s22  ;;  %1000 = vmatprep.subr.bf16.mxu0 %v4257_v15  ;;  %v1446_v62 = vld [vmem:[#allocation2 + $0x128] sm:$0xff] }
  0xaa   : > { %1651 = vmatprep.subr.bf16.mxu1 %v4257_v15  ;;  %v799_v15 = vld [vmem:[#allocation2 + $0x88] sm:$0xff] }
  0xac   : > { %1001 = vmatpush1.bf16.msra.mxu0 %v4259_v16  ;;  %1652 = vmatpush1.bf16.msra.mxu1 %v4259_v16 }
  0xad   : > { %1002 = vmatprep.subr.bf16.mxu0 %v4260_v17  ;;  %1653 = vmatprep.subr.bf16.mxu1 %v4260_v17  ;;  %v1448_v17 = vld [vmem:[#allocation2 + $0x138] sm:$0xff] }
  0xb0   : > { %1003 = vmatpush1.bf16.msra.mxu0 %v4262_v18  ;;  %1654 = vmatpush1.bf16.msra.mxu1 %v4262_v18  ;;  %v801_v18 = vld [vmem:[#allocation2 + $0x98] sm:$0xff] }
  0xb1   : > { %1004 = vmatprep.subr.bf16.mxu0 %v4263_v19  ;;  %1655 = vmatprep.subr.bf16.mxu1 %v4263_v19 }
  0xb4   : > { %1005 = vmatpush1.bf16.msra.mxu0 %v4265_v20  ;;  %1656 = vmatpush1.bf16.msra.mxu1 %v4265_v20  ;;  %v1450_v20 = vld [vmem:[#allocation2 + $0x148] sm:$0xff] }
  0xb5   : > { %1006 = vmatprep.subr.bf16.mxu0 %v4266_v22  ;;  %1657 = vmatprep.subr.bf16.mxu1 %v4266_v22 }
  0xb8   : > { %1007 = vmatpush1.bf16.msra.mxu0 %v4268_v24  ;;  %1658 = vmatpush1.bf16.msra.mxu1 %v4268_v24  ;;  %v803_v24 = vld [vmem:[#allocation2 + $0xa8] sm:$0xff] }
  0xb9   : > { %1008 = vmatprep.subr.bf16.mxu0 %v4269_v26  ;;  %1659 = vmatprep.subr.bf16.mxu1 %v4269_v26 }
  0xbc   : > { %1009 = vmatpush1.bf16.msra.mxu0 %v4271_v27  ;;  %1660 = vmatpush1.bf16.msra.mxu1 %v4271_v27  ;;  %v1452_v27 = vld [vmem:[#allocation2 + $0x158] sm:$0xff] }
  0xea   : > { %v587_v30 = vpop.permute.xlu0 %586 }
  0xeb   : > { %659 = vst.msk [vmem:[#allocation2] sm:$0xff] %vm658_vm6, %v587_v30 }
  0xee   : > { %v589_v36 = vpop.permute.xlu0 %588 }
  0xef   : > { %v591_v32 = vpop.permute.xlu1 %590  ;;  %660 = vst.msk [vmem:[#allocation2 + $0x10] sm:$0xff] %vm658_vm6, %v589_v36 }
  0xf0   : > { %661 = vst.msk [vmem:[#allocation2 + $0x20] sm:$0xff] %vm658_vm6, %v591_v32  ;;  %v1454_v32 = vld [vmem:[#allocation2 + $0x168] sm:$0xff] }
  0xf1   : > { %729 = vst.msk [vmem:[#allocation2 + $0x10] sm:$0xf0] %vm251_vm4, %v3955_v33  ;;  %v805_v33 = vld [vmem:[#allocation2 + $0xb8] sm:$0xff] }
  0xf2   : > { %730 = vst.msk [vmem:[#allocation2 + $0x20] sm:$0xff] %vm247_vm0, %v4762_v56  ;;  %v782_v41 = vld [vmem:[#allocation2] sm:$0xff] }
  0xf3   : > { %v611_v42 = vpop.permute.xlu1 %610  ;;  %1019 = vmatmul.mubr.bf16.vlgmr.msra.gmra.mrb[0].mxu0 %v782_v41 }
  0xf4   : > { %671 = vst.msk [vmem:[#allocation2 + $0xc0] sm:$0xff] %vm658_vm6, %v611_v42  ;;  %3989 = vmatprep.mubr.msk.bf16.mxu0 %vm247_vm0, %v785_v39  ;;  %v593_v40 = vpop.permute.xlu0 %592  ;;  %v1456_v42 = vld [vmem:[#allocation2 + $0x178] sm:$0xff] }
  0xf5   : > { %740 = vst.msk [vmem:[#allocation2 + $0xc0] sm:$0xff] %vm247_vm0, %v4913_v7 }
  0xf6   : > { %662 = vst.msk [vmem:[#allocation2 + $0x30] sm:$0xff] %vm658_vm6, %v593_v40 }
  0xf7   : > { %731 = vst.msk [vmem:[#allocation2 + $0x30] sm:$0xff] %vm247_vm0, %v4747_v45  ;;  %v613_v43 = vpop.permute.xlu1 %612 }
  0xf8   : > { %672 = vst.msk [vmem:[#allocation2 + $0xd0] sm:$0xff] %vm658_vm6, %v613_v43  ;;  %v784_v56 = vld [vmem:[#allocation2 + $0x10] sm:$0xff]  ;;  %v595_v47 = vpop.permute.xlu0 %594 }
  0xf9   : > { %741 = vst.msk [vmem:[#allocation2 + $0xd0] sm:$0xff] %vm247_vm0, %v4765_v58 }
  0xfa   : > { %663 = vst.msk [vmem:[#allocation2 + $0x40] sm:$0xff] %vm658_vm6, %v595_v47 }
  0xfb   : > { %732 = vst.msk [vmem:[#allocation2 + $0x40] sm:$0xff] %vm247_vm0, %v4805_v34  ;;  %1029 = vmatmul.mubr.bf16.gmra.mrb[4].mxu0 %v784_v56  ;;  %v615_v7 = vpop.permute.xlu1 %614  ;;  %v786_v34 = vld [vmem:[#allocation2 + $0x20] sm:$0xff] }
  0xfc   : > { %v1433_v50 = vld [vmem:[#allocation2 + $0xc0] sm:$0xff]  ;;  %673 = vst.msk [vmem:[#allocation2 + $0xe0] sm:$0xff] %vm658_vm6, %v615_v7  ;;  %3990 = vmatprep.mubr.msk.bf16.mxu0 %vm247_vm0, %v787_v48  ;;  %v597_v45 = vpop.permute.xlu0 %596 }
  0xfd   : > { %1670 = vmatmul.mubr.bf16.vlgmr.msra.gmra.mrb[0].mxu1 %v1433_v50  ;;  %742 = vst.msk [vmem:[#allocation2 + $0xe0] sm:$0xff] %vm247_vm0, %v4786_v10  ;;  %v1438_v10 = vld [vmem:[#allocation2 + $0xe8] sm:$0xff] }
  0xfe   : > { %664 = vst.msk [vmem:[#allocation2 + $0x50] sm:$0xff] %vm658_vm6, %v597_v45  ;;  %4025 = vmatprep.mubr.msk.bf16.mxu1 %vm247_vm0, %v1436_v49 }
  0xff   : > { %733 = vst.msk [vmem:[#allocation2 + $0x50] sm:$0xff] %vm247_vm0, %v4821_v44  ;;  %v617_v58 = vpop.permute.xlu1 %616 }
 0x100   : > { %674 = vst.msk [vmem:[#allocation2 + $0xf0] sm:$0xff] %vm658_vm6, %v617_v58  ;;  %v599_v51 = vpop.permute.xlu0 %598  ;;  %v1435_v53 = vld [vmem:[#allocation2 + $0xd0] sm:$0xff] }
 0x101   : > { %743 = vst.msk [vmem:[#allocation2 + $0xf0] sm:$0xff] %vm247_vm0, %v4784_v9 }
 0x102   : > { %665 = vst.msk [vmem:[#allocation2 + $0x60] sm:$0xff] %vm658_vm6, %v599_v51 }
 0x103   : > { %734 = vst.msk [vmem:[#allocation2 + $0x60] sm:$0xff] %vm247_vm0, %v4810_v35  ;;  %1039 = vmatmul.mubr.bf16.gmra.mrb[8].mxu0 %v786_v34  ;;  %v619_v55 = vpop.permute.xlu1 %618  ;;  %v788_v35 = vld [vmem:[#allocation2 + $0x30] sm:$0xff] }
 0x104   : > { %3991 = vmatprep.mubr.msk.bf16.mxu0 %vm247_vm0, %v789_v52  ;;  %675 = vst.msk [vmem:[#allocation2 + $0x100] sm:$0xff] %vm658_vm6, %v619_v55  ;;  %v601_v44 = vpop.permute.xlu0 %600  ;;  %v1437_v59 = vld [vmem:[#allocation2 + $0xe0] sm:$0xff] }
 0x105   : > { %1680 = vmatmul.mubr.bf16.gmra.mrb[4].mxu1 %v1435_v53  ;;  %744 = vst.msk [vmem:[#allocation2 + $0x100] sm:$0xff] %vm247_vm0, %v4845_v0  ;;  %v1440_v0 = vld [vmem:[#allocation2 + $0xf8] sm:$0xff] }
 0x106   : > { %666 = vst.msk [vmem:[#allocation2 + $0x70] sm:$0xff] %vm658_vm6, %v601_v44  ;;  %4026 = vmatprep.mubr.msk.bf16.mxu1 %vm247_vm0, %v1438_v10 }
 0x107   : > { %735 = vst.msk [vmem:[#allocation2 + $0x70] sm:$0xff] %vm247_vm0, %v4874_v25  ;;  %v621_v9 = vpop.permute.xlu1 %620 }
 0x108   : > { %676 = vst.msk [vmem:[#allocation2 + $0x110] sm:$0xff] %vm658_vm6, %v621_v9  ;;  %v603_v46 = vpop.permute.xlu0 %602  ;;  %v1439_v5 = vld [vmem:[#allocation2 + $0xf0] sm:$0xff] }
 0x109   : > { %745 = vst.msk [vmem:[#allocation2 + $0x110] sm:$0xff] %vm247_vm0, %v4858_v28 }
 0x10a   : > { %667 = vst.msk [vmem:[#allocation2 + $0x80] sm:$0xff] %vm658_vm6, %v603_v46 }
 0x10b   : > { %736 = vst.msk [vmem:[#allocation2 + $0x80] sm:$0xff] %vm247_vm0, %v4888_v37  ;;  %1049 = vmatmul.mubr.bf16.gmra.mrb[12].mxu0 %v788_v35  ;;  %v623_v61 = vpop.permute.xlu1 %622  ;;  %v790_v37 = vld [vmem:[#allocation2 + $0x40] sm:$0xff] }
 0x10c   : > { %3992 = vmatprep.mubr.msk.bf16.mxu0 %vm247_vm0, %v791_v57  ;;  %677 = vst.msk [vmem:[#allocation2 + $0x120] sm:$0xff] %vm658_vm6, %v623_v61  ;;  %v605_v25 = vpop.permute.xlu0 %604  ;;  %v1441_v6 = vld [vmem:[#allocation2 + $0x100] sm:$0xff] }
 0x10d   : > { %1690 = vmatmul.mubr.bf16.gmra.mrb[8].mxu1 %v1437_v59  ;;  %746 = vst.msk [vmem:[#allocation2 + $0x120] sm:$0xff] %vm247_vm0, %v4849_v2  ;;  %v1442_v2 = vld [vmem:[#allocation2 + $0x108] sm:$0xff] }
 0x10e   : > { %668 = vst.msk [vmem:[#allocation2 + $0x90] sm:$0xff] %vm658_vm6, %v605_v25  ;;  %4027 = vmatprep.mubr.msk.bf16.mxu1 %vm247_vm0, %v1440_v0 }
 0x10f   : > { %737 = vst.msk [vmem:[#allocation2 + $0x90] sm:$0xff] %vm247_vm0, %v4886_v31  ;;  %v625_v28 = vpop.permute.xlu1 %624 }
 0x110   : > { %678 = vst.msk [vmem:[#allocation2 + $0x130] sm:$0xff] %vm658_vm6, %v625_v28  ;;  %v607_v63 = vpop.permute.xlu0 %606  ;;  %v1443_v14 = vld [vmem:[#allocation2 + $0x110] sm:$0xff] }
 0x111   : > { %747 = vst.msk [vmem:[#allocation2 + $0x130] sm:$0xff] %vm247_vm0, %v4907_v1 }
 0x112   : > { %669 = vst.msk [vmem:[#allocation2 + $0xa0] sm:$0xff] %vm658_vm6, %v607_v63 }
 0x113   : > { %738 = vst.msk [vmem:[#allocation2 + $0xa0] sm:$0xff] %vm247_vm0, %v4939_v23  ;;  %1059 = vmatmul.mubr.bf16.gmra.mrb[16].mxu0 %v790_v37  ;;  %v627_v8 = vpop.permute.xlu1 %626  ;;  %v792_v23 = vld [vmem:[#allocation2 + $0x50] sm:$0xff] }
 0x114   : > { %3993 = vmatprep.mubr.msk.bf16.mxu0 %vm247_vm0, %v793_v4  ;;  %679 = vst.msk [vmem:[#allocation2 + $0x140] sm:$0xff] %vm658_vm6, %v627_v8  ;;  %v609_v31 = vpop.permute.xlu0 %608  ;;  %v1445_v16 = vld [vmem:[#allocation2 + $0x120] sm:$0xff] }
 0x115   : > { %1700 = vmatmul.mubr.bf16.gmra.mrb[12].mxu1 %v1439_v5  ;;  %748 = vst.msk [vmem:[#allocation2 + $0x140] sm:$0xff] %vm247_vm0, %v4922_v11  ;;  %v1444_v11 = vld [vmem:[#allocation2 + $0x118] sm:$0xff] }
 0x116   : > { %670 = vst.msk [vmem:[#allocation2 + $0xb0] sm:$0xff] %vm658_vm6, %v609_v31  ;;  %4028 = vmatprep.mubr.msk.bf16.mxu1 %vm247_vm0, %v1442_v2  ;;  %v800_v22 = vld [vmem:[#allocation2 + $0x90] sm:$0xff] }
 0x117   : > { %739 = vst.msk [vmem:[#allocation2 + $0xb0] sm:$0xff] %vm247_vm0, %v4947_v38  ;;  %v629_v1 = vpop.permute.xlu1 %628  ;;  %v797_v38 = vld [vmem:[#allocation2 + $0x78] sm:$0xff] }
 0x118   : > { %680 = vst.msk [vmem:[#allocation2 + $0x150] sm:$0xff] %vm658_vm6, %v629_v1  ;;  %v631_v29 = vpop.permute.xlu0 %630  ;;  %v1447_v19 = vld [vmem:[#allocation2 + $0x130] sm:$0xff] }
 0x119   : > { %749 = vst.msk [vmem:[#allocation2 + $0x150] sm:$0xff] %vm247_vm0, %v4920_v60  ;;  %v794_v60 = vld [vmem:[#allocation2 + $0x60] sm:$0xff] }
 0x11a   : > { %681 = vst.msk [vmem:[#allocation2 + $0x160] sm:$0xff] %vm658_vm6, %v631_v29  ;;  %v802_v30 = vld [vmem:[#allocation2 + $0xa0] sm:$0xff] }
 0x11b   : > { %750 = vst.msk [vmem:[#allocation2 + $0x160] sm:$0xff] %vm247_vm0, %v4959_v54  ;;  %1069 = vmatmul.mubr.bf16.gmra.mrb[20].mxu0 %v792_v23  ;;  %v633_v13 = vpop.permute.xlu1 %632  ;;  %v796_v54 = vld [vmem:[#allocation2 + $0x70] sm:$0xff] }
 0x11c   : > { %3994 = vmatprep.mubr.msk.bf16.mxu0 %vm247_vm0, %v795_v12  ;;  %682 = vst.msk [vmem:[#allocation2 + $0x170] sm:$0xff] %vm658_vm6, %v633_v13  ;;  %v1449_v26 = vld [vmem:[#allocation2 + $0x140] sm:$0xff] }
 0x11d   : > { %1710 = vmatmul.mubr.bf16.gmra.mrb[16].mxu1 %v1441_v6  ;;  %751 = vst.msk [vmem:[#allocation2 + $0x170] sm:$0xff] %vm247_vm0, %v4967_v3  ;;  %v798_v3 = vld [vmem:[#allocation2 + $0x80] sm:$0xff] }
 0x11e   : > { %4029 = vmatprep.mubr.msk.bf16.mxu1 %vm247_vm0, %v1444_v11  ;;  %v804_v39 = vld [vmem:[#allocation2 + $0xb0] sm:$0xff] }
 0x120   : > { %v1451_v36 = vld [vmem:[#allocation2 + $0x150] sm:$0xff] }
 0x122   : > { %v1453_v41 = vld [vmem:[#allocation2 + $0x160] sm:$0xff] }
 0x123   : > { %1079 = vmatmul.mubr.bf16.gmra.mrb[24].mxu0 %v794_v60 }
 0x124   : > { %3995 = vmatprep.mubr.msk.bf16.mxu0 %vm247_vm0, %v797_v38  ;;  %v1455_v40 = vld [vmem:[#allocation2 + $0x170] sm:$0xff] }
 0x125   : > { %1720 = vmatmul.mubr.bf16.gmra.mrb[20].mxu1 %v1443_v14 }
 0x126   : > { %4030 = vmatprep.mubr.msk.bf16.mxu1 %vm247_vm0, %v1446_v62 }
 0x12b   : > { %1089 = vmatmul.mubr.bf16.gmra.mrb[28].mxu0 %v796_v54 }
 0x12c   : > { %3996 = vmatprep.mubr.msk.bf16.mxu0 %vm247_vm0, %v799_v15 }
 0x12d   : > { %1730 = vmatmul.mubr.bf16.gmra.mrb[24].mxu1 %v1445_v16 }
 0x12e   : > { %4031 = vmatprep.mubr.msk.bf16.mxu1 %vm247_vm0, %v1448_v17 }
 0x133   : > { %1099 = vmatmul.mubr.bf16.gmra.mrb[32].mxu0 %v798_v3 }
 0x134   : > { %3997 = vmatprep.mubr.msk.bf16.mxu0 %vm247_vm0, %v801_v18 }
 0x135   : > { %1740 = vmatmul.mubr.bf16.gmra.mrb[28].mxu1 %v1447_v19 }
 0x136   : > { %4032 = vmatprep.mubr.msk.bf16.mxu1 %vm247_vm0, %v1450_v20 }
 0x13b   : > { %1109 = vmatmul.mubr.bf16.gmra.mrb[36].mxu0 %v800_v22 }
 0x13c   : > { %3998 = vmatprep.mubr.msk.bf16.mxu0 %vm247_vm0, %v803_v24 }
 0x13d   : > { %1750 = vmatmul.mubr.bf16.gmra.mrb[32].mxu1 %v1449_v26 }
 0x13e   : > { %4033 = vmatprep.mubr.msk.bf16.mxu1 %vm247_vm0, %v1452_v27 }
 0x143   : > { %1119 = vmatmul.mubr.bf16.gmra.mrb[40].mxu0 %v802_v30 }
 0x144   : > { %3999 = vmatprep.mubr.msk.bf16.mxu0 %vm247_vm0, %v805_v33 }
 0x145   : > { %1760 = vmatmul.mubr.bf16.gmra.mrb[36].mxu1 %v1451_v36 }
 0x146   : > { %4034 = vmatprep.mubr.msk.bf16.mxu1 %vm247_vm0, %v1454_v32 }
 0x14b   : > { %1129 = vmatmul.mubr.bf16.gmra.mrb[44].mxu0 %v804_v39 }
 0x14d   : > { %1770 = vmatmul.mubr.bf16.gmra.mrb[40].mxu1 %v1453_v41 }
 0x14e   : > { %4035 = vmatprep.mubr.msk.bf16.mxu1 %vm247_vm0, %v1456_v42 }
 0x155   : > { %1780 = vmatmul.mubr.bf16.gmra.mrb[44].mxu1 %v1455_v40 }
 0x1c6   : > { %v5073_v43 = vpop.f32.mrb[0].mxu0 }
 0x1c7   : > { %v1022_v56 = vpop.f32.mrb[1].mxu0  ;;  %v1164_v48 = vrot.slane %v5073_v43, 1 }
 0x1c8   : > { %v5075_v47 = vpop.f32.mrb[2].mxu0  ;;  %v1293_v50 = vrot.slane %v1022_v56, 2 }
 0x1c9   : > { %v1165_v7 = vrot.slane %v5075_v47, 1  ;;  %v1026_v49 = vpop.f32.mrb[3].mxu0 }
 0x1ca   : > { %v1294_v45 = vrot.slane %v1026_v49, 2 }
 0x1cb   : > { %v1166_v58 = vsel %vm1163_vm7, %v1164_v48, %v1165_v7 }
 0x1cc   : > { %1204 = vrot.lane.b32.xlu0 %v1166_v58, %s4472_s22  ;;  %v5082_v34 = vsel %vm1292_vm8, %v1293_v50, %v1294_v45 }
 0x1ce   : > { %v1030_v51 = vpop.f32.mrb[4].mxu0 }
 0x1cf   : > { %v1167_v52 = vrot.slane %v1030_v51, 1  ;;  %v1032_v53 = vpop.f32.mrb[5].mxu0 }
 0x1d0   : > { %v1296_v10 = vrot.slane %v1032_v53, 2  ;;  %v5084_v55 = vpop.f32.mrb[0].mxu1  ;;  %v5086_v44 = vpop.f32.mrb[6].mxu0 }
 0x1d1   : > { %v1814_v9 = vrot.slane %v5084_v55, 1  ;;  %v1673_v35 = vpop.f32.mrb[1].mxu1  ;;  %v1036_v46 = vpop.f32.mrb[7].mxu0  ;;  %v1168_v57 = vsel %vm1163_vm7, %v1165_v7, %v1167_v52  ;;  %v1169_v2 = vrot.slane %v5086_v44, 1 }
 0x1d2   : > { %v1942_v59 = vrot.slane %v1673_v35, 2  ;;  %v5090_v0 = vpop.f32.mrb[2].mxu1  ;;  %1206 = vrot.lane.b32.xlu1 %v1168_v57, %s4472_s22  ;;  %v5094_v61 = vsel %vm1292_vm8, %v1294_v45, %v1296_v10  ;;  %v1298_v1 = vrot.slane %v1036_v46, 2 }
 0x1d3   : > { %v1815_v25 = vrot.slane %v5090_v0, 1  ;;  %v1677_v28 = vpop.f32.mrb[3].mxu1 }
 0x1d4   : > { %v1943_v37 = vrot.slane %v1677_v28, 2 }
 0x1d5   : > { %v1816_v63 = vsel %vm1163_vm7, %v1814_v9, %v1815_v25 }
 0x1d6   : > { %1854 = vrot.lane.b32.xlu0 %v1816_v63, %s4472_s22  ;;  %v5099_v4 = vpop.f32.mrb[8].mxu0  ;;  %v5102_v5 = vsel %vm1292_vm8, %v1942_v59, %v1943_v37 }
 0x1d7   : > { %v1170_v8 = vrot.slane %v5099_v4, 1  ;;  %v1042_v31 = vpop.f32.mrb[9].mxu0 }
 0x1d8   : > { %v1299_v23 = vrot.slane %v1042_v31, 2  ;;  %v1681_v29 = vpop.f32.mrb[4].mxu1  ;;  %v1044_v12 = vpop.f32.mrb[10].mxu0 }
 0x1d9   : > { %v1817_v6 = vrot.slane %v1681_v29, 1  ;;  %v1172_v11 = vrot.slane %v1044_v12, 1  ;;  %v1683_v13 = vpop.f32.mrb[5].mxu1  ;;  %v1046_v60 = vpop.f32.mrb[11].mxu0  ;;  %v1171_v38 = vsel %vm1163_vm7, %v1169_v2, %v1170_v8 }
 0x1da   : > { %v1945_v14 = vrot.slane %v1683_v13, 2  ;;  %v1301_v62 = vrot.slane %v1046_v60, 2  ;;  %1208 = vrot.lane.b32.xlu0 %v1171_v38, %s4472_s22  ;;  %v5108_v54 = vpop.f32.mrb[6].mxu1  ;;  %v5111_v15 = vsel %vm1292_vm8, %v1298_v1, %v1299_v23 }
 0x1db   : > { %v1818_v16 = vsel %vm1163_vm7, %v1815_v25, %v1817_v6  ;;  %v1687_v17 = vpop.f32.mrb[7].mxu1  ;;  %v1173_v3 = vsel %vm1163_vm7, %v1170_v8, %v1172_v11  ;;  %v1819_v27 = vrot.slane %v5108_v54, 1 }
 0x1dc   : > { %1856 = vrot.lane.b32.xlu1 %v1818_v16, %s4472_s22  ;;  %v5117_v18 = vsel %vm1292_vm8, %v1943_v37, %v1945_v14  ;;  %v5120_v19 = vsel %vm1292_vm8, %v1299_v23, %v1301_v62  ;;  %v1947_v41 = vrot.slane %v1687_v17, 2 }
 0x1de   : > { %v5122_v20 = vpop.f32.mrb[12].mxu0 }
 0x1df   : > { %v1052_v22 = vpop.f32.mrb[13].mxu0  ;;  %v1174_v30 = vrot.slane %v5122_v20, 1 }
 0x1e0   : > { %v5124_v24 = vpop.f32.mrb[8].mxu1  ;;  %1210 = vrot.lane.b32.xlu1 %v1173_v3, %s4472_s22  ;;  %v5127_v26 = vpop.f32.mrb[14].mxu0  ;;  %v1303_v42 = vrot.slane %v1052_v22, 2 }
 0x1e1   : > { %v1820_v33 = vrot.slane %v5124_v24, 1  ;;  %v1175_v36 = vrot.slane %v5127_v26, 1  ;;  %v1693_v32 = vpop.f32.mrb[9].mxu1  ;;  %v1056_v39 = vpop.f32.mrb[15].mxu0 }
 0x1e2   : > { %v1948_v40 = vrot.slane %v1693_v32, 2  ;;  %v1304_v56 = vrot.slane %v1056_v39, 2  ;;  %v1695_v48 = vpop.f32.mrb[10].mxu1 }
 0x1e3   : > { %v1822_v7 = vrot.slane %v1695_v48, 1  ;;  %v1821_v49 = vsel %vm1163_vm7, %v1819_v27, %v1820_v33  ;;  %v1697_v50 = vpop.f32.mrb[11].mxu1  ;;  %v1176_v45 = vsel %vm1163_vm7, %v1174_v30, %v1175_v36 }
 0x1e4   : > { %1858 = vrot.lane.b32.xlu0 %v1821_v49, %s4472_s22  ;;  %v1950_v58 = vrot.slane %v1697_v50, 2  ;;  %v5137_v51 = vsel %vm1292_vm8, %v1947_v41, %v1948_v40  ;;  %v5140_v52 = vsel %vm1292_vm8, %v1303_v42, %v1304_v56 }
 0x1e5   : > { %v1823_v53 = vsel %vm1163_vm7, %v1820_v33, %v1822_v7 }
 0x1e6   : > { %1860 = vrot.lane.b32.xlu1 %v1823_v53, %s4472_s22  ;;  %v1060_v10 = vpop.f32.mrb[16].mxu0  ;;  %v5145_v9 = vsel %vm1292_vm8, %v1948_v40, %v1950_v58 }
 0x1e7   : > { %v1177_v35 = vrot.slane %v1060_v10, 1  ;;  %v1062_v46 = vpop.f32.mrb[17].mxu0 }
 0x1e8   : > { %v5147_v57 = vpop.f32.mrb[12].mxu1  ;;  %1212 = vrot.lane.b32.xlu0 %v1176_v45, %s4472_s22  ;;  %v1306_v59 = vrot.slane %v1062_v46, 2  ;;  %v5150_v25 = vpop.f32.mrb[18].mxu0 }
 0x1e9   : > { %v1824_v28 = vrot.slane %v5147_v57, 1  ;;  %v1703_v37 = vpop.f32.mrb[13].mxu1  ;;  %v1066_v63 = vpop.f32.mrb[19].mxu0  ;;  %v1178_v2 = vsel %vm1163_vm7, %v1175_v36, %v1177_v35  ;;  %v1179_v60 = vrot.slane %v5150_v25, 1 }
 0x1ea   : > { %v1952_v8 = vrot.slane %v1703_v37, 2  ;;  %v5154_v31 = vpop.f32.mrb[14].mxu1  ;;  %1214 = vrot.lane.b32.xlu1 %v1178_v2, %s4472_s22  ;;  %v5158_v1 = vsel %vm1292_vm8, %v1304_v56, %v1306_v59  ;;  %v1308_v62 = vrot.slane %v1066_v63, 2 }
 0x1eb   : > { %v1825_v23 = vrot.slane %v5154_v31, 1  ;;  %v1707_v29 = vpop.f32.mrb[15].mxu1 }
 0x1ec   : > { %v1953_v12 = vrot.slane %v1707_v29, 2 }
 0x1ed   : > { %v1826_v6 = vsel %vm1163_vm7, %v1824_v28, %v1825_v23 }
 0x1ee   : > { %1862 = vrot.lane.b32.xlu0 %v1826_v6, %s4472_s22  ;;  %v5163_v11 = vpop.f32.mrb[20].mxu0  ;;  %v5166_v13 = vsel %vm1292_vm8, %v1952_v8, %v1953_v12 }
 0x1ef   : > { %v1180_v38 = vrot.slane %v5163_v11, 1  ;;  %v1072_v14 = vpop.f32.mrb[21].mxu0 }
 0x1f0   : > { %v1309_v16 = vrot.slane %v1072_v14, 2  ;;  %v1711_v17 = vpop.f32.mrb[16].mxu1  ;;  %v1074_v3 = vpop.f32.mrb[22].mxu0 }
 0x1f1   : > { %v1827_v22 = vrot.slane %v1711_v17, 1  ;;  %v1182_v27 = vrot.slane %v1074_v3, 1  ;;  %v1713_v30 = vpop.f32.mrb[17].mxu1  ;;  %v1076_v33 = vpop.f32.mrb[23].mxu0  ;;  %v1181_v36 = vsel %vm1163_vm7, %v1179_v60, %v1180_v38 }
 0x1f2   : > { %v1955_v32 = vrot.slane %v1713_v30, 2  ;;  %v1311_v39 = vrot.slane %v1076_v33, 2  ;;  %1216 = vrot.lane.b32.xlu0 %v1181_v36, %s4472_s22  ;;  %v5172_v41 = vpop.f32.mrb[18].mxu1  ;;  %v5175_v42 = vsel %vm1292_vm8, %v1308_v62, %v1309_v16 }
 0x1f3   : > { %v1828_v40 = vsel %vm1163_vm7, %v1825_v23, %v1827_v22  ;;  %v1717_v56 = vpop.f32.mrb[19].mxu1  ;;  %v1183_v48 = vsel %vm1163_vm7, %v1180_v38, %v1182_v27  ;;  %v1829_v10 = vrot.slane %v5172_v41, 1 }
 0x1f4   : > { %1864 = vrot.lane.b32.xlu1 %v1828_v40, %s4472_s22  ;;  %v5181_v7 = vsel %vm1292_vm8, %v1953_v12, %v1955_v32  ;;  %v5184_v49 = vsel %vm1292_vm8, %v1309_v16, %v1311_v39  ;;  %v1957_v63 = vrot.slane %v1717_v56, 2 }
 0x1f6   : > { %v5186_v50 = vpop.f32.mrb[24].mxu0 }
 0x1f7   : > { %v1082_v45 = vpop.f32.mrb[25].mxu0  ;;  %v1184_v35 = vrot.slane %v5186_v50, 1 }
 0x1f8   : > { %v5188_v58 = vpop.f32.mrb[20].mxu1  ;;  %1218 = vrot.lane.b32.xlu1 %v1183_v48, %s4472_s22  ;;  %v5191_v53 = vpop.f32.mrb[26].mxu0  ;;  %v1313_v2 = vrot.slane %v1082_v45, 2 }
 0x1f9   : > { %v1830_v46 = vrot.slane %v5188_v58, 1  ;;  %v1185_v59 = vrot.slane %v5191_v53, 1  ;;  %v1723_v28 = vpop.f32.mrb[21].mxu1  ;;  %v1086_v37 = vpop.f32.mrb[27].mxu0 }
 0x1fa   : > { %v1958_v8 = vrot.slane %v1723_v28, 2  ;;  %v1314_v23 = vrot.slane %v1086_v37, 2  ;;  %v1725_v29 = vpop.f32.mrb[22].mxu1 }
 0x1fb   : > { %v1832_v12 = vrot.slane %v1725_v29, 1  ;;  %v1831_v6 = vsel %vm1163_vm7, %v1829_v10, %v1830_v46  ;;  %v1727_v60 = vpop.f32.mrb[23].mxu1  ;;  %v1186_v38 = vsel %vm1163_vm7, %v1184_v35, %v1185_v59 }
 0x1fc   : > { %1866 = vrot.lane.b32.xlu0 %v1831_v6, %s4472_s22  ;;  %v1960_v14 = vrot.slane %v1727_v60, 2  ;;  %v5201_v62 = vsel %vm1292_vm8, %v1957_v63, %v1958_v8  ;;  %v5204_v16 = vsel %vm1292_vm8, %v1313_v2, %v1314_v23 }
 0x1fd   : > { %v1833_v17 = vsel %vm1163_vm7, %v1830_v46, %v1832_v12 }
 0x1fe   : > { %1868 = vrot.lane.b32.xlu1 %v1833_v17, %s4472_s22  ;;  %v1090_v3 = vpop.f32.mrb[28].mxu0  ;;  %v5209_v22 = vsel %vm1292_vm8, %v1958_v8, %v1960_v14 }
 0x1ff   : > { %v1187_v27 = vrot.slane %v1090_v3, 1  ;;  %v1092_v30 = vpop.f32.mrb[29].mxu0 }
 0x200   : > { %v5211_v33 = vpop.f32.mrb[24].mxu1  ;;  %1220 = vrot.lane.b32.xlu0 %v1186_v38, %s4472_s22  ;;  %v1316_v36 = vrot.slane %v1092_v30, 2  ;;  %v5214_v32 = vpop.f32.mrb[30].mxu0 }
 0x201   : > { %v1834_v39 = vrot.slane %v5211_v33, 1  ;;  %v1733_v40 = vpop.f32.mrb[25].mxu1  ;;  %v1096_v56 = vpop.f32.mrb[31].mxu0  ;;  %v1188_v48 = vsel %vm1163_vm7, %v1185_v59, %v1187_v27  ;;  %v1189_v8 = vrot.slane %v5214_v32, 1 }
 0x202   : > { %v1962_v45 = vrot.slane %v1733_v40, 2  ;;  %v5218_v10 = vpop.f32.mrb[26].mxu1  ;;  %1222 = vrot.lane.b32.xlu1 %v1188_v48, %s4472_s22  ;;  %v5222_v35 = vsel %vm1292_vm8, %v1314_v23, %v1316_v36  ;;  %v1318_v23 = vrot.slane %v1096_v56, 2 }
 0x203   : > { %6278 = vst [vmem:[#allocation15_spill] sm:$0xff] %v5218_v10  ;;  %v1835_v46 = vrot.slane %v5218_v10, 1  ;;  %v1737_v28 = vpop.f32.mrb[27].mxu1 }
 0x204   : > { %v1963_v37 = vrot.slane %v1737_v28, 2 }
 0x205   : > { %v1836_v63 = vsel %vm1163_vm7, %v1834_v39, %v1835_v46 }
 0x206   : > { %1870 = vrot.lane.b32.xlu0 %v1836_v63, %s4472_s22  ;;  %v5227_v2 = vpop.f32.mrb[32].mxu0  ;;  %v5230_v59 = vsel %vm1292_vm8, %v1962_v45, %v1963_v37 }
 0x207   : > { %6279 = vst [vmem:[#allocation16_spill] sm:$0xff] %v5227_v2  ;;  %v1190_v29 = vrot.slane %v5227_v2, 1  ;;  %v1102_v12 = vpop.f32.mrb[33].mxu0 }
 0x208   : > { %v1319_v6 = vrot.slane %v1102_v12, 2  ;;  %v1741_v60 = vpop.f32.mrb[28].mxu1  ;;  %v1104_v38 = vpop.f32.mrb[34].mxu0  ;;  %v4272_v12 = vld [vmem:[#allocation10] ss:$8 sps:$4 sm:$0xff]  }
 0x209   : > { %v1837_v14 = vrot.slane %v1741_v60, 1  ;;  %v1192_v17 = vrot.slane %v1104_v38, 1  ;;  %v1743_v3 = vpop.f32.mrb[29].mxu1  ;;  %v1106_v27 = vpop.f32.mrb[35].mxu0  ;;  %v1191_v30 = vsel %vm1163_vm7, %v1189_v8, %v1190_v29  ;;  %v4274_v60 = vld [vmem:[#allocation10 + $0x4] ss:$8 sps:$4 sm:$0xff]  }
 0x20a   : > { %v1965_v36 = vrot.slane %v1743_v3, 2  ;;  %v1321_v39 = vrot.slane %v1106_v27, 2  ;;  %1224 = vrot.lane.b32.xlu0 %v1191_v30, %s4472_s22  ;;  %v5236_v40 = vpop.f32.mrb[30].mxu1  ;;  %v5239_v48 = vsel %vm1292_vm8, %v1318_v23, %v1319_v6  ;;  %2771 = vmatprep.subr.bf16.mxu0 %v4274_v60 }
 0x20b   : > { %6280 = vst [vmem:[#allocation17_spill] sm:$0xff] %v5236_v40  ;;  %6281 = vst [vmem:[#allocation18_spill] sm:$0xff] %v5239_v48  ;;  %v1838_v56 = vsel %vm1163_vm7, %v1835_v46, %v1837_v14  ;;  %v1747_v45 = vpop.f32.mrb[31].mxu1  ;;  %v1193_v28 = vsel %vm1163_vm7, %v1190_v29, %v1192_v17  ;;  %3400 = vmatprep.subr.bf16.mxu1 %v4274_v60  ;;  %v1839_v46 = vrot.slane %v5236_v40, 1  ;;  %2772 = vmatpush1.bf16.msra.mxu0 %v4272_v12  ;;  %v4275_v40 = vld [vmem:[#allocation10 + $0x10] ss:$8 sps:$4 sm:$0xff]  }
 0x20c   : > { %1872 = vrot.lane.b32.xlu1 %v1838_v56, %s4472_s22  ;;  %v5245_v63 = vsel %vm1292_vm8, %v1963_v37, %v1965_v36  ;;  %v5248_v8 = vsel %vm1292_vm8, %v1319_v6, %v1321_v39  ;;  %v1967_v37 = vrot.slane %v1747_v45, 2  ;;  %3401 = vmatpush1.bf16.msra.mxu1 %v4272_v12 }
 0x20d   : > { %6282 = vst [vmem:[#allocation19_spill] sm:$0xff] %v5245_v63  ;;  %6283 = vst [vmem:[#allocation20_spill] sm:$0xff] %v5248_v8  ;;  %v4277_v63 = vld [vmem:[#allocation10 + $0x14] ss:$8 sps:$4 sm:$0xff]  }
 0x20e   : > { %v5250_v38 = vpop.f32.mrb[36].mxu0  ;;  %2773 = vmatprep.subr.bf16.mxu0 %v4277_v63  ;;  %3402 = vmatprep.subr.bf16.mxu1 %v4277_v63 }
 0x20f   : > { %6284 = vst [vmem:[#allocation21_spill] sm:$0xff] %v5250_v38  ;;  %v1112_v3 = vpop.f32.mrb[37].mxu0  ;;  %v1194_v6 = vrot.slane %v5250_v38, 1  ;;  %2774 = vmatpush1.bf16.msra.mxu0 %v4275_v40 }
 0x210   : > { %v5253_v23 = vpop.f32.mrb[32].mxu1  ;;  %1226 = vrot.lane.b32.xlu1 %v1193_v28, %s4472_s22  ;;  %v5256_v29 = vpop.f32.mrb[38].mxu0  ;;  %v1323_v36 = vrot.slane %v1112_v3, 2  ;;  %3403 = vmatpush1.bf16.msra.mxu1 %v4275_v40 }
 0x211   : > { %6285 = vst [vmem:[#allocation22_spill] sm:$0xff] %v5253_v23  ;;  %6286 = vst [vmem:[#allocation23_spill] sm:$0xff] %v5256_v29  ;;  %v1840_v14 = vrot.slane %v5253_v23, 1  ;;  %v1195_v17 = vrot.slane %v5256_v29, 1  ;;  %v1753_v27 = vpop.f32.mrb[33].mxu1  ;;  %v1116_v30 = vpop.f32.mrb[39].mxu0 }
 0x212   : > { %v1968_v39 = vrot.slane %v1753_v27, 2  ;;  %v1324_v56 = vrot.slane %v1116_v30, 2  ;;  %v1755_v60 = vpop.f32.mrb[34].mxu1 }
 0x213   : > { %v1842_v8 = vrot.slane %v1755_v60, 1  ;;  %v1841_v28 = vsel %vm1163_vm7, %v1839_v46, %v1840_v14  ;;  %v1757_v2 = vpop.f32.mrb[35].mxu1  ;;  %v1196_v45 = vsel %vm1163_vm7, %v1194_v6, %v1195_v17 }
 0x214   : > { %1874 = vrot.lane.b32.xlu0 %v1841_v28, %s4472_s22  ;;  %v1970_v38 = vrot.slane %v1757_v2, 2  ;;  %v5265_v29 = vsel %vm1292_vm8, %v1967_v37, %v1968_v39  ;;  %v5268_v12 = vsel %vm1292_vm8, %v1323_v36, %v1324_v56 }
 0x215   : > { %6287 = vst [vmem:[#allocation24_spill] sm:$0xff] %v5265_v29  ;;  %6288 = vst [vmem:[#allocation25_spill] sm:$0xff] %v5268_v12  ;;  %v1843_v3 = vsel %vm1163_vm7, %v1840_v14, %v1842_v8 }
 0x216   : > { %1876 = vrot.lane.b32.xlu1 %v1843_v3, %s4472_s22  ;;  %v1120_v46 = vpop.f32.mrb[40].mxu0  ;;  %v5273_v27 = vsel %vm1292_vm8, %v1968_v39, %v1970_v38 }
 0x217   : > { %6289 = vst [vmem:[#allocation26_spill] sm:$0xff] %v5273_v27  ;;  %v1197_v6 = vrot.slane %v1120_v46, 1  ;;  %v1122_v30 = vpop.f32.mrb[41].mxu0  ;;  %v4278_v46 = vld [vmem:[#allocation10 + $0x20] ss:$8 sps:$4 sm:$0xff]  }
 0x218   : > { %v1326_v2 = vrot.slane %v1122_v30, 2  ;;  %v5275_v37 = vpop.f32.mrb[42].mxu0  ;;  %v5277_v60 = vpop.f32.mrb[36].mxu1  ;;  %v4280_v30 = vld [vmem:[#allocation10 + $0x24] ss:$8 sps:$4 sm:$0xff]  }
 0x219   : > { %6290 = vst [vmem:[#allocation27_spill] sm:$0xff] %v5277_v60  ;;  %v1126_v36 = vpop.f32.mrb[43].mxu0  ;;  %v1844_v8 = vrot.slane %v5277_v60, 1  ;;  %v1763_v14 = vpop.f32.mrb[37].mxu1  ;;  %v1198_v63 = vsel %vm1163_vm7, %v1195_v17, %v1197_v6  ;;  %2775 = vmatprep.subr.bf16.mxu0 %v4280_v30  ;;  %3404 = vmatprep.subr.bf16.mxu1 %v4280_v30 }
 0x21a   : > { %v1972_v28 = vrot.slane %v1763_v14, 2  ;;  %v5281_v3 = vpop.f32.mrb[38].mxu1  ;;  %v5284_v38 = vsel %vm1292_vm8, %v1324_v56, %v1326_v2  ;;  %2776 = vmatpush1.bf16.msra.mxu0 %v4278_v46  ;;  %3405 = vmatpush1.bf16.msra.mxu1 %v4278_v46  ;;  %v1199_v56 = vrot.slane %v5275_v37, 1  ;;  %v1328_v14 = vrot.slane %v1126_v36, 2 }
 0x21b   : > { %6291 = vst [vmem:[#allocation28_spill] sm:$0xff] %v5281_v3  ;;  %6292 = vst [vmem:[#allocation29_spill] sm:$0xff] %v5284_v38  ;;  %v1845_v39 = vrot.slane %v5281_v3, 1  ;;  %v1767_v40 = vpop.f32.mrb[39].mxu1 }
 0x21c   : > { %v1973_v12 = vrot.slane %v1767_v40, 2 }
 0x21d   : > { %v1846_v27 = vsel %vm1163_vm7, %v1844_v8, %v1845_v39 }
 0x21e   : > { %v5288_v60 = vpop.f32.mrb[44].mxu0  ;;  %v5291_v17 = vsel %vm1292_vm8, %v1972_v28, %v1973_v12 }
 0x21f   : > { %6293 = vst [vmem:[#allocation30_spill] sm:$0xff] %v5288_v60  ;;  %6294 = vst [vmem:[#allocation31_spill] sm:$0xff] %v5291_v17  ;;  %v1200_v6 = vrot.slane %v5288_v60, 1  ;;  %v1132_v2 = vpop.f32.mrb[45].mxu0 }
 0x220   : > { %v1329_v3 = vrot.slane %v1132_v2, 2  ;;  %v1771_v38 = vpop.f32.mrb[40].mxu1  ;;  %v1134_v40 = vpop.f32.mrb[46].mxu0 }
 0x221   : > { %v1847_v23 = vrot.slane %v1771_v38, 1  ;;  %v1202_v8 = vrot.slane %v1134_v40, 1  ;;  %v1773_v29 = vpop.f32.mrb[41].mxu1  ;;  %v1136_v30 = vpop.f32.mrb[47].mxu0  ;;  %v1201_v10 = vsel %vm1163_vm7, %v1199_v56, %v1200_v6  ;;  %v4281_v56 = vld [vmem:[#allocation10 + $0x30] ss:$8 sps:$4 sm:$0xff]  }
 0x222   : > { %v1975_v48 = vrot.slane %v1773_v29, 2  ;;  %v1331_v46 = vrot.slane %v1136_v30, 2  ;;  %1232 = vrot.lane.b32.xlu0 %v1201_v10, %s4472_s22  ;;  %v5297_v28 = vpop.f32.mrb[42].mxu1  ;;  %v5300_v17 = vsel %vm1292_vm8, %v1328_v14, %v1329_v3  ;;  %v4283_v10 = vld [vmem:[#allocation10 + $0x34] ss:$8 sps:$4 sm:$0xff]  }
 0x223   : > { %v1777_v60 = vpop.f32.mrb[43].mxu1  ;;  %v1203_v36 = vsel %vm1163_vm7, %v1200_v6, %v1202_v8  ;;  %v1848_v2 = vsel %vm1163_vm7, %v1845_v39, %v1847_v23  ;;  %2777 = vmatprep.subr.bf16.mxu0 %v4283_v10  ;;  %3406 = vmatprep.subr.bf16.mxu1 %v4283_v10  ;;  %v1849_v23 = vrot.slane %v5297_v28, 1  ;;  %v4286_v10 = vld [vmem:[#allocation10 + $0x44] ss:$8 sps:$4 sm:$0xff]  }
 0x224   : > { %1234 = vrot.lane.b32.xlu1 %v1203_v36, %s4472_s22  ;;  %v5306_v38 = vsel %vm1292_vm8, %v1329_v3, %v1331_v46  ;;  %v5309_v29 = vsel %vm1292_vm8, %v1973_v12, %v1975_v48  ;;  %2778 = vmatpush1.bf16.msra.mxu0 %v4281_v56  ;;  %v1977_v6 = vrot.slane %v1777_v60, 2  ;;  %v4284_v36 = vld [vmem:[#allocation10 + $0x40] ss:$8 sps:$4 sm:$0xff]  }
 0x225   : > { %3407 = vmatpush1.bf16.msra.mxu1 %v4281_v56  ;;  %2779 = vmatprep.subr.bf16.mxu0 %v4286_v10  ;;  %v4287_v56 = vld [vmem:[#allocation10 + $0x50] ss:$8 sps:$4 sm:$0xff]  }
 0x226   : > { %1228 = vrot.lane.b32.xlu0 %v1196_v45, %s4472_s22  ;;  %3408 = vmatprep.subr.bf16.mxu1 %v4286_v10  ;;  %v4299_v10 = vld [vmem:[#allocation10 + $0x90] ss:$8 sps:$4 sm:$0xff]  }
 0x228   : > { %v5312_v14 = vpop.f32.mrb[44].mxu1  ;;  %1230 = vrot.lane.b32.xlu1 %v1198_v63, %s4472_s22  ;;  %2780 = vmatpush1.bf16.msra.mxu0 %v4284_v36 }
 0x229   : > { %v1850_v39 = vrot.slane %v5312_v14, 1  ;;  %v1783_v3 = vpop.f32.mrb[45].mxu1  ;;  %3409 = vmatpush1.bf16.msra.mxu1 %v4284_v36 }
 0x22a   : > { %v1978_v48 = vrot.slane %v1783_v3, 2  ;;  %1878 = vrot.lane.b32.xlu0 %v1846_v27, %s4472_s22  ;;  %v1785_v12 = vpop.f32.mrb[46].mxu1  ;;  %v4289_v27 = vld [vmem:[#allocation10 + $0x54] ss:$8 sps:$4 sm:$0xff]   ;;  %v4293_v3 = vld [vmem:[#allocation10 + $0x70] ss:$8 sps:$4 sm:$0xff]  }
 0x22b   : > { %v1852_v40 = vrot.slane %v1785_v12, 1  ;;  %v1787_v45 = vpop.f32.mrb[47].mxu1  ;;  %v1851_v8 = vsel %vm1163_vm7, %v1849_v23, %v1850_v39  ;;  %2781 = vmatprep.subr.bf16.mxu0 %v4289_v27  ;;  %3410 = vmatprep.subr.bf16.mxu1 %v4289_v27  ;;  %v4292_v23 = vld [vmem:[#allocation10 + $0x64] ss:$8 sps:$4 sm:$0xff]  }
 0x22c   : > { %v1980_v30 = vrot.slane %v1787_v45, 2  ;;  %1880 = vrot.lane.b32.xlu1 %v1848_v2, %s4472_s22  ;;  %v5321_v63 = vsel %vm1292_vm8, %v1977_v6, %v1978_v48  ;;  %2782 = vmatpush1.bf16.msra.mxu0 %v4287_v56  ;;  %v4290_v2 = vld [vmem:[#allocation10 + $0x60] ss:$8 sps:$4 sm:$0xff]   ;;  %v4295_v6 = vld [vmem:[#allocation10 + $0x74] ss:$8 sps:$4 sm:$0xff]  }
 0x22d   : > { %v1853_v46 = vsel %vm1163_vm7, %v1850_v39, %v1852_v40  ;;  %3411 = vmatpush1.bf16.msra.mxu1 %v4287_v56  ;;  %2783 = vmatprep.subr.bf16.mxu0 %v4292_v23  ;;  %v4296_v40 = vld [vmem:[#allocation10 + $0x80] ss:$8 sps:$4 sm:$0xff]   ;;  %v4298_v45 = vld [vmem:[#allocation10 + $0x84] ss:$8 sps:$4 sm:$0xff]  }
 0x22e   : > { %1882 = vrot.lane.b32.xlu0 %v1851_v8, %s4472_s22  ;;  %v5326_v60 = vsel %vm1292_vm8, %v1978_v48, %v1980_v30  ;;  %3412 = vmatprep.subr.bf16.mxu1 %v4292_v23  ;;  %v4301_v8 = vld [vmem:[#allocation10 + $0x94] ss:$8 sps:$4 sm:$0xff]   ;;  %v5331_v30 = vstv %s286_s24 }
 0x230   : > { %1884 = vrot.lane.b32.xlu1 %v1853_v46, %s4472_s22  ;;  %2784 = vmatpush1.bf16.msra.mxu0 %v4290_v2 }
 0x231   : > { %3413 = vmatpush1.bf16.msra.mxu1 %v4290_v2  ;;  %2785 = vmatprep.subr.bf16.mxu0 %v4295_v6 }
 0x232   : > { %3414 = vmatprep.subr.bf16.mxu1 %v4295_v6 }
 0x234   : > { %2786 = vmatpush1.bf16.msra.mxu0 %v4293_v3 }
 0x235   : > { %3415 = vmatpush1.bf16.msra.mxu1 %v4293_v3  ;;  %2787 = vmatprep.subr.bf16.mxu0 %v4298_v45 }
 0x236   : > { %3416 = vmatprep.subr.bf16.mxu1 %v4298_v45 }
 0x238   : > { %2788 = vmatpush1.bf16.msra.mxu0 %v4296_v40 }
 0x239   : > { %3417 = vmatpush1.bf16.msra.mxu1 %v4296_v40  ;;  %2789 = vmatprep.subr.bf16.mxu0 %v4301_v8 }
 0x23a   : > { %3418 = vmatprep.subr.bf16.mxu1 %v4301_v8  ;;  %v4302_v8 = vld [vmem:[#allocation10 + $0xa0] ss:$8 sps:$4 sm:$0xff]  }
 0x23c   : > { %2790 = vmatpush1.bf16.msra.mxu0 %v4299_v10 }
 0x23d   : > { %3419 = vmatpush1.bf16.msra.mxu1 %v4299_v10 }
 0x23e   : > { %v1205_v39 = vpop.permute.xlu0 %1204 }
 0x23f   : > { %v1252_v48 = vadd.f32 %v1205_v39, %v5073_v43 }
 0x241   : > { %v1349_v12 = vadd.f32 %v5082_v34, %v1252_v48 }
 0x243   : > { %v1382_v43 = vmul.f32 %v5331_v30, %v1349_v12  ;;  %vm1365_vm9 = vcmp.ge.f32.partialorder %v1349_v12, 0.0 }
 0x244   : > { %v1207_v46 = vpop.permute.xlu1 %1206 }
 0x245   : > { %v1253_v36 = vadd.f32 %v1207_v46, %v5075_v47  ;;  %v1398_v23 = vsel %vm1365_vm9, %v1349_v12, %v1382_v43  ;;  %v4304_v46 = vld [vmem:[#allocation10 + $0xa4] ss:$8 sps:$4 sm:$0xff]  }
 0x246   : > { %2791 = vmatprep.subr.bf16.mxu0 %v4304_v46  ;;  %3420 = vmatprep.subr.bf16.mxu1 %v4304_v46 }
 0x247   : > { %v1350_v34 = vadd.f32 %v5094_v61, %v1253_v36  ;;  %v4307_v36 = vld [vmem:[#allocation10 + $0xb4] ss:$8 sps:$4 sm:$0xff]   ;;  %2792 = vmatpush1.bf16.msra.mxu0 %v4302_v8  ;;  %3421 = vmatpush1.bf16.msra.mxu1 %v4302_v8 }
 0x248   : > { %v1855_v27 = vpop.permute.xlu0 %1854  ;;  %2793 = vmatprep.subr.bf16.mxu0 %v4307_v36  ;;  %3422 = vmatprep.subr.bf16.mxu1 %v4307_v36 }
 0x249   : > { %vm1366_vm10 = vcmp.ge.f32.partialorder %v1350_v34, 0.0  ;;  %v1383_v56 = vmul.f32 %v5331_v30, %v1350_v34  ;;  %v1902_v2 = vadd.f32 %v1855_v27, %v5084_v55 }
 0x24b   : > { %v1399_v47 = vsel %vm1366_vm10, %v1350_v34, %v1383_v56  ;;  %v1998_v39 = vadd.f32 %v5102_v5, %v1902_v2 }
 0x24c   : > { %v1414_v3 = vpack.c.bf16 %v1399_v47, %v1398_v23  ;;  %v1209_v6 = vpop.permute.xlu0 %1208 }
 0x24d   : > { %v1254_v48 = vadd.f32 %v1209_v6, %v5086_v44  ;;  %v2030_v55 = vmul.f32 %v1998_v39, %v5331_v30  ;;  %vm2014_vm11 = vcmp.ge.f32.partialorder %v1998_v39, 0.0 }
 0x24e   : > { %1422 = vst.msk [vmem:[#allocation3] sm:$0xff] %vm247_vm0, %v1414_v3  ;;  %v1857_v61 = vpop.permute.xlu1 %1856 }
 0x24f   : > { %v1351_v40 = vadd.f32 %v5111_v15, %v1254_v48  ;;  %v1903_v45 = vadd.f32 %v1857_v61, %v5090_v0  ;;  %v4305_v15 = vld [vmem:[#allocation10 + $0xb0] ss:$8 sps:$4 sm:$0xff]   ;;  %v2046_v0 = vsel %vm2014_vm11, %v1998_v39, %v2030_v55 }
 0x250   : > { %2794 = vmatpush1.bf16.msra.mxu0 %v4305_v15  ;;  %3423 = vmatpush1.bf16.msra.mxu1 %v4305_v15 }
 0x251   : > { %v1999_v12 = vadd.f32 %v5117_v18, %v1903_v45  ;;  %v1384_v43 = vmul.f32 %v5331_v30, %v1351_v40  ;;  %vm1367_vm13 = vcmp.ge.f32.partialorder %v1351_v40, 0.0 }
 0x252   : > { %v1211_v5 = vpop.permute.xlu1 %1210 }
 0x253   : > { %vm2015_vm12 = vcmp.ge.f32.partialorder %v1999_v12, 0.0  ;;  %v2031_v44 = vmul.f32 %v1999_v12, %v5331_v30  ;;  %v1255_v10 = vadd.f32 %v1211_v5, %v5099_v4  ;;  %v1400_v48 = vsel %vm1367_vm13, %v1351_v40, %v1384_v43 }
 0x255   : > { %v2047_v34 = vsel %vm2015_vm12, %v1999_v12, %v2031_v44  ;;  %v1352_v18 = vadd.f32 %v5120_v19, %v1255_v10  ;;  %v2079_v27 = vld [vmem:[#allocation3] sm:$0xff] }
 0x256   : > { %v2062_v56 = vpack.c.bf16 %v2047_v34, %v2046_v0  ;;  %v1859_v2 = vpop.permute.xlu0 %1858  ;;  %v2096_v23 = vshrl.u32 %v2079_v27, 16  ;;  %v2099_v6 = vshll.u32 %v2079_v27, 16 }
 0x257   : > { %vm1368_vm14 = vcmp.ge.f32.partialorder %v1352_v18, 0.0  ;;  %v1385_v47 = vmul.f32 %v5331_v30, %v1352_v18  ;;  %v1904_v4 = vadd.f32 %v1859_v2, %v5108_v54 }
 0x258   : > { %2071 = vst.msk [vmem:[#allocation3 + $0x40] sm:$0xff] %vm247_vm0, %v2062_v56  ;;  %v1861_v39 = vpop.permute.xlu1 %1860  ;;  %v2098_v3 = vrot.slane %v2096_v23, 7 }
 0x259   : > { %v1401_v61 = vsel %vm1368_vm14, %v1352_v18, %v1385_v47  ;;  %v2000_v19 = vadd.f32 %v5137_v51, %v1904_v4  ;;  %v1905_v45 = vadd.f32 %v1861_v39, %v5124_v24 }
 0x25a   : > { %v1415_v8 = vpack.c.bf16 %v1401_v61, %v1400_v48  ;;  %v1213_v46 = vpop.permute.xlu0 %1212  ;;  %v2101_v55 = vor.u32 %v2099_v6, %v2098_v3  ;;  %v5364_v24 = vsel %vm4720_vm5, %v2098_v3, 0 }
 0x25b   : > { %v2032_v12 = vmul.f32 %v2000_v19, %v5331_v30  ;;  %v2001_v54 = vadd.f32 %v5145_v9, %v1905_v45  ;;  %v1256_v36 = vadd.f32 %v1213_v46, %v5122_v20  ;;  %vm2016_vm15 = vcmp.ge.f32.partialorder %v2000_v19, 0.0 }
 0x25c   : > { %1423 = vst.msk [vmem:[#allocation3 + $0x8] sm:$0xff] %vm247_vm0, %v1415_v8  ;;  %v1215_v5 = vpop.permute.xlu1 %1214  ;;  %v5360_v40 = vsel %vm4720_vm5, 0, %v2101_v55  ;;  %v2305_v43 = vunpack.c.l.b16 %v5364_v24 }
 0x25d   : > { %vm2017_vm1 = vcmp.ge.f32.partialorder %v2001_v54, 0.0  ;;  %v2033_v51 = vmul.f32 %v2001_v54, %v5331_v30  ;;  %v1353_v44 = vadd.f32 %v5140_v52, %v1256_v36  ;;  %2375 = vrot.lane.b32.xlu1 %v5360_v40, %s4472_s22  ;;  %v1257_v20 = vadd.f32 %v1215_v5, %v5127_v26 }
 0x25e   : > { %v2304_v9 = vunpack.c.h.b16 %v5360_v40  ;;  %v2048_v10 = vsel %vm2016_vm15, %v2000_v19, %v2032_v12 }
 0x25f   : > { %v2049_v15 = vsel %vm2017_vm1, %v2001_v54, %v2033_v51  ;;  %v2087_v0 = vld [vmem:[#allocation3 + $0x40] sm:$0xff]  ;;  %v1386_v18 = vmul.f32 %v5331_v30, %v1353_v44  ;;  %v1354_v27 = vadd.f32 %v5158_v1, %v1257_v20  ;;  %vm1369_vm2 = vcmp.ge.f32.partialorder %v1353_v44, 0.0 }
 0x260   : > { %v2063_v34 = vpack.c.bf16 %v2049_v15, %v2048_v10  ;;  %v1863_v56 = vpop.permute.xlu0 %1862  ;;  %v2152_v2 = vshrl.u32 %v2087_v0, 16  ;;  %v5376_v23 = vpack.c.b16 %v2305_v43, %v2304_v9  ;;  %v2155_v4 = vshll.u32 %v2087_v0, 16 }
 0x261   : > { %v1906_v52 = vadd.f32 %v1863_v56, %v5147_v57  ;;  %vm1370_vm9 = vcmp.ge.f32.partialorder %v1354_v27, 0.0  ;;  %v1387_v26 = vmul.f32 %v5331_v30, %v1354_v27  ;;  %v1402_v6 = vsel %vm1369_vm2, %v1353_v44, %v1386_v18 }
 0x262   : > { %2072 = vst.msk [vmem:[#allocation3 + $0x48] sm:$0xff] %vm247_vm0, %v2063_v34  ;;  %v2154_v47 = vrot.slane %v2152_v2, 7 }
 0x263   : > { %v2002_v39 = vadd.f32 %v5166_v13, %v1906_v52  ;;  %v2080_v3 = vld [vmem:[#allocation3 + $0x8] sm:$0xff]  ;;  %v1403_v48 = vsel %vm1370_vm9, %v1354_v27, %v1387_v26 }
 0x264   : > { %v1217_v1 = vpop.permute.xlu0 %1216  ;;  %v2157_v61 = vor.u32 %v2155_v4, %v2154_v47  ;;  %v2103_v19 = vshrl.u32 %v2080_v3, 16  ;;  %v1416_v45 = vpack.c.bf16 %v1403_v48, %v1402_v6  ;;  %v2106_v12 = vshll.u32 %v2080_v3, 16 }
 0x265   : > { %v1258_v57 = vadd.f32 %v1217_v1, %v5150_v25  ;;  %v5388_v54 = vsel %vm4720_vm5, %v2154_v47, 0  ;;  %vm2018_vm10 = vcmp.ge.f32.partialorder %v2002_v39, 0.0  ;;  %v2034_v44 = vmul.f32 %v2002_v39, %v5331_v30 }
 0x266   : > { %v1865_v8 = vpop.permute.xlu1 %1864  ;;  %v5384_v46 = vsel %vm4720_vm5, 0, %v2157_v61  ;;  %v2105_v55 = vrot.slane %v2103_v19, 7  ;;  %1424 = vst.msk [vmem:[#allocation3 + $0x10] sm:$0xff] %vm247_vm0, %v1416_v45  ;;  %v2329_v51 = vunpack.c.l.b16 %v5388_v54 }
 0x267   : > { %v1355_v13 = vadd.f32 %v5175_v42, %v1258_v57  ;;  %v1907_v36 = vadd.f32 %v1865_v8, %v5154_v31  ;;  %v2328_v5 = vunpack.c.h.b16 %v5384_v46  ;;  %2399 = vrot.lane.b32.xlu0 %v5384_v46, %s4472_s22  ;;  %v2050_v52 = vsel %vm2018_vm10, %v2002_v39, %v2034_v44 }
 0x268   : > { %v2108_v25 = vor.u32 %v2106_v12, %v2105_v55  ;;  %v5405_v31 = vsel %vm4720_vm5, %v2105_v55, 0 }
 0x269   : > { %v2003_v20 = vadd.f32 %v5181_v7, %v1907_v36  ;;  %v2088_v9 = vld [vmem:[#allocation3 + $0x48] sm:$0xff]  ;;  %v5407_v0 = vpack.c.b16 %v2329_v51, %v2328_v5  ;;  %v1388_v43 = vmul.f32 %v5331_v30, %v1355_v13  ;;  %vm1371_vm12 = vcmp.ge.f32.partialorder %v1355_v13, 0.0 }
 0x26a   : > { %v1219_v10 = vpop.permute.xlu1 %1218  ;;  %v5401_v42 = vsel %vm4720_vm5, 0, %v2108_v25  ;;  %v2159_v15 = vshrl.u32 %v2088_v9, 16  ;;  %v2162_v2 = vshll.u32 %v2088_v9, 16  ;;  %v2308_v3 = vunpack.c.l.b16 %v5405_v31 }
 0x26b   : > { %vm2019_vm11 = vcmp.ge.f32.partialorder %v2003_v20, 0.0  ;;  %v2035_v34 = vmul.f32 %v2003_v20, %v5331_v30  ;;  %v1259_v7 = vadd.f32 %v1219_v10, %v5163_v11  ;;  %2544 = vst.msk [vmem:[#allocation2 + $0x8] sm:$0xff] %vm247_vm0, %v5401_v42  ;;  %v4036_v18 = vcombine.low %v5364_v24, %v5401_v42  ;;  %2555 = vst.msk [vmem:[#allocation2 + $0xb8] sm:$0xff] %vm247_vm0, %v5407_v0 }
 0x26c   : > { %v2307_v27 = vunpack.c.h.b16 %v5401_v42  ;;  %v2161_v56 = vrot.slane %v2159_v15, 7  ;;  %v1404_v19 = vsel %vm1371_vm12, %v1355_v13, %v1388_v43 }
 0x26d   : > { %v2051_v26 = vsel %vm2019_vm11, %v2003_v20, %v2035_v34  ;;  %v1356_v47 = vadd.f32 %v5184_v49, %v1259_v7  ;;  %2377 = vrot.lane.b32.xlu0 %v4036_v18, %s4472_s22  ;;  %v2081_v6 = vld [vmem:[#allocation3 + $0x10] sm:$0xff] }
 0x26e   : > { %v2064_v11 = vpack.c.bf16 %v2051_v26, %v2050_v52  ;;  %v1867_v4 = vpop.permute.xlu0 %1866  ;;  %v2164_v24 = vor.u32 %v2162_v2, %v2161_v56  ;;  %v5425_v48 = vsel %vm4720_vm5, %v2161_v56, 0  ;;  %v2110_v61 = vshrl.u32 %v2081_v6, 16 }
 0x26f   : > { %vm1372_vm13 = vcmp.ge.f32.partialorder %v1356_v47, 0.0  ;;  %v1389_v1 = vmul.f32 %v5331_v30, %v1356_v47  ;;  %v1908_v39 = vadd.f32 %v1867_v4, %v5172_v41  ;;  %v2353_v45 = vpack.c.b16 %v2308_v3, %v2307_v27 }
 0x270   : > { %2073 = vst.msk [vmem:[#allocation3 + $0x50] sm:$0xff] %vm247_vm0, %v2064_v11  ;;  %v1869_v49 = vpop.permute.xlu1 %1868  ;;  %v5432_v57 = vsel %vm4720_vm5, 0, %v2164_v24  ;;  %v2113_v8 = vshll.u32 %v2081_v6, 16  ;;  %v2112_v51 = vrot.slane %v2110_v61, 7  ;;  %v2332_v20 = vunpack.c.l.b16 %v5425_v48 }
 0x271   : > { %v1405_v55 = vsel %vm1372_vm13, %v1356_v47, %v1389_v1  ;;  %v2004_v12 = vadd.f32 %v5201_v62, %v1908_v39  ;;  %v1909_v36 = vadd.f32 %v1869_v49, %v5188_v58  ;;  %v4040_v5 = vcombine.low %v5388_v54, %v5432_v57  ;;  %2556 = vst.msk [vmem:[#allocation2 + $0xc8] sm:$0xff] %vm247_vm0, %v5432_v57 }
 0x272   : > { %v1417_v41 = vpack.c.bf16 %v1405_v55, %v1404_v19  ;;  %2379 = vrot.lane.b32.xlu0 %v2353_v45, %s4472_s22  ;;  %v1221_v13 = vpop.permute.xlu0 %1220  ;;  %v2568_v25 = vld [vmem:[#allocation2 + $0x8] sm:$0xff]  ;;  %v2331_v44 = vunpack.c.h.b16 %v5432_v57  ;;  %v2115_v10 = vor.u32 %v2113_v8, %v2112_v51  ;;  %v5451_v15 = vsel %vm4720_vm5, %v2112_v51, 0 }
 0x273   : > { %vm2020_vm14 = vcmp.ge.f32.partialorder %v2004_v12, 0.0  ;;  %v2036_v62 = vmul.f32 %v2004_v12, %v5331_v30  ;;  %v2005_v58 = vadd.f32 %v5209_v22, %v1909_v36  ;;  %v1260_v54 = vadd.f32 %v1221_v13, %v5186_v50  ;;  %4077 = vmatprep.mubr.msk.bf16.mxu0 %vm247_vm0, %v2568_v25  ;;  %2401 = vrot.lane.b32.xlu1 %v4040_v5, %s4472_s22  ;;  %v6295_v25 = vld [vmem:[#allocation18_spill] sm:$0xff] }
 0x274   : > { %1425 = vst.msk [vmem:[#allocation3 + $0x18] sm:$0xff] %vm247_vm0, %v1417_v41  ;;  %v1223_v9 = vpop.permute.xlu1 %1222  ;;  %v2365_v22 = vpack.c.b16 %v2332_v20, %v2331_v44  ;;  %v2241_v18 = vsel %vm4720_vm5, 0, %v2115_v10  ;;  %v2311_v26 = vunpack.c.l.b16 %v5451_v15  ;;  %v6296_v44 = vld [vmem:[#allocation15_spill] sm:$0xff] }
 0x275   : > { %vm2021_vm15 = vcmp.ge.f32.partialorder %v2005_v58, 0.0  ;;  %v2037_v43 = vmul.f32 %v2005_v58, %v5331_v30  ;;  %v1357_v34 = vadd.f32 %v5204_v16, %v1260_v54  ;;  %v2052_v7 = vsel %vm2020_vm14, %v2004_v12, %v2036_v62  ;;  %v6297_v10 = vld [vmem:[#allocation19_spill] sm:$0xff] }
 0x276   : > { %v1261_v50 = vadd.f32 %v1223_v9, %v5191_v53  ;;  %v2310_v2 = vunpack.c.h.b16 %v2241_v18  ;;  %2381 = vrot.lane.b32.xlu0 %v2241_v18, %s4472_s22  ;;  %v5464_v11 = vcombine.low %v5405_v31, %v2241_v18 }
 0x277   : > { %v2053_v27 = vsel %vm2021_vm15, %v2005_v58, %v2037_v43  ;;  %v1390_v56 = vmul.f32 %v5331_v30, %v1357_v34  ;;  %2403 = vrot.lane.b32.xlu1 %v2365_v22, %s4472_s22  ;;  %v2089_v52 = vld [vmem:[#allocation3 + $0x50] sm:$0xff]  ;;  %vm1373_vm1 = vcmp.ge.f32.partialorder %v1357_v34, 0.0 }
 0x278   : > { %v2065_v47 = vpack.c.bf16 %v2053_v27, %v2052_v7  ;;  %v1358_v16 = vadd.f32 %v5222_v35, %v1261_v50  ;;  %v1871_v53 = vpop.permute.xlu0 %1870  ;;  %v3197_v4 = vld [vmem:[#allocation2 + $0xc8] sm:$0xff]  ;;  %v2166_v3 = vshrl.u32 %v2089_v52, 16  ;;  %v5468_v6 = vpack.c.b16 %v2311_v26, %v2310_v2  ;;  %2545 = vst.msk [vmem:[#allocation2 + $0x18] sm:$0xff] %vm247_vm0, %v5464_v11 }
 0x279   : > { %v1910_v24 = vadd.f32 %v1871_v53, %v5211_v33  ;;  %4113 = vmatprep.mubr.msk.bf16.mxu1 %vm247_vm0, %v3197_v4  ;;  %v2169_v31 = vshll.u32 %v2089_v52, 16  ;;  %v1406_v33 = vsel %vm1373_vm1, %v1357_v34, %v1390_v56  ;;  %v6298_v2 = vld [vmem:[#allocation16_spill] sm:$0xff] }
 0x27a   : > { %2074 = vst.msk [vmem:[#allocation3 + $0x58] sm:$0xff] %vm247_vm0, %v2065_v47  ;;  %vm1374_vm2 = vcmp.ge.f32.partialorder %v1358_v16, 0.0  ;;  %v1391_v1 = vmul.f32 %v5331_v30, %v1358_v16  ;;  %v2168_v35 = vrot.slane %v2166_v3, 7  ;;  %2546 = vst.msk [vmem:[#allocation2 + $0x28] sm:$0xff] %vm247_vm0, %v5468_v6 }
 0x27b   : > { %v2006_v39 = vadd.f32 %v5230_v59, %v1910_v24  ;;  %v2082_v61 = vld [vmem:[#allocation3 + $0x18] sm:$0xff]  ;;  %v6299_v24 = vld [vmem:[#allocation20_spill] sm:$0xff] }
 0x27c   : > { %v1407_v19 = vsel %vm1374_vm2, %v1358_v16, %v1391_v1  ;;  %v1225_v49 = vpop.permute.xlu0 %1224  ;;  %v2171_v45 = vor.u32 %v2169_v31, %v2168_v35  ;;  %v2117_v8 = vshrl.u32 %v2082_v61, 16  ;;  %v2120_v13 = vshll.u32 %v2082_v61, 16 }
 0x27d   : > { %v1418_v55 = vpack.c.bf16 %v1407_v19, %v1406_v33  ;;  %v1262_v12 = vadd.f32 %v1225_v49, %v5214_v32  ;;  %v2265_v59 = vsel %vm4720_vm5, %v2168_v35, 0  ;;  %vm2022_vm9 = vcmp.ge.f32.partialorder %v2006_v39, 0.0  ;;  %v6300_v49 = vld [vmem:[#allocation17_spill] sm:$0xff] }
 0x27e   : > { %v1873_v36 = vpop.permute.xlu1 %1872  ;;  %v2249_v5 = vsel %vm4720_vm5, 0, %v2171_v45  ;;  %v2119_v41 = vrot.slane %v2117_v8, 7  ;;  %v2335_v54 = vunpack.c.l.b16 %v2265_v59  ;;  %v2038_v9 = vmul.f32 %v2006_v39, %v5331_v30 }
 0x27f   : > { %1426 = vst.msk [vmem:[#allocation3 + $0x20] sm:$0xff] %vm247_vm0, %v1418_v55  ;;  %v1359_v51 = vadd.f32 %v6295_v25, %v1262_v12  ;;  %v1911_v20 = vadd.f32 %v1873_v36, %v6296_v44  ;;  %v2334_v62 = vunpack.c.h.b16 %v2249_v5  ;;  %2405 = vrot.lane.b32.xlu1 %v2249_v5, %s4472_s22  ;;  %v5487_v32 = vcombine.low %v5425_v48, %v2249_v5  ;;  %v6302_v44 = vld [vmem:[#allocation22_spill] sm:$0xff] }
 0x280   : > { %v2122_v58 = vor.u32 %v2120_v13, %v2119_v41  ;;  %v2258_v48 = vsel %vm4720_vm5, %v2119_v41, 0  ;;  %v2054_v4 = vsel %vm2022_vm9, %v2006_v39, %v2038_v9  ;;  %v6301_v13 = vld [vmem:[#allocation24_spill] sm:$0xff] }
 0x281   : > { %v2007_v43 = vadd.f32 %v6297_v10, %v1911_v20  ;;  %v2090_v34 = vld [vmem:[#allocation3 + $0x58] sm:$0xff]  ;;  %2557 = vst.msk [vmem:[#allocation2 + $0xd8] sm:$0xff] %vm247_vm0, %v5487_v32  ;;  %v5499_v18 = vpack.c.b16 %v2335_v54, %v2334_v62  ;;  %v1392_v27 = vmul.f32 %v5331_v30, %v1359_v51  ;;  %vm1375_vm11 = vcmp.ge.f32.partialorder %v1359_v51, 0.0 }
 0x282   : > { %v1227_v22 = vpop.permute.xlu1 %1226  ;;  %v5495_v7 = vsel %vm4720_vm5, 0, %v2122_v58  ;;  %v2173_v50 = vshrl.u32 %v2090_v34, 16  ;;  %v2176_v53 = vshll.u32 %v2090_v34, 16  ;;  %v2314_v61 = vunpack.c.l.b16 %v2258_v48 }
 0x283   : > { %vm2023_vm10 = vcmp.ge.f32.partialorder %v2007_v43, 0.0  ;;  %v2039_v56 = vmul.f32 %v2007_v43, %v5331_v30  ;;  %v1263_v52 = vadd.f32 %v1227_v22, %v6298_v2  ;;  %2547 = vst.msk [vmem:[#allocation2 + $0x38] sm:$0xff] %vm247_vm0, %v5495_v7  ;;  %v4037_v26 = vcombine.low %v5451_v15, %v5495_v7  ;;  %2558 = vst.msk [vmem:[#allocation2 + $0xe8] sm:$0xff] %vm247_vm0, %v5499_v18 }
 0x284   : > { %v2313_v47 = vunpack.c.h.b16 %v5495_v7  ;;  %v2175_v16 = vrot.slane %v2173_v50, 7  ;;  %v1408_v55 = vsel %vm1375_vm11, %v1359_v51, %v1392_v27 }
 0x285   : > { %v2055_v3 = vsel %vm2023_vm10, %v2007_v43, %v2039_v56  ;;  %v1360_v1 = vadd.f32 %v6299_v24, %v1263_v52  ;;  %2383 = vrot.lane.b32.xlu0 %v4037_v26, %s4472_s22  ;;  %v6303_v43 = vld [vmem:[#allocation26_spill] sm:$0xff] }
 0x286   : > { %v2066_v35 = vpack.c.bf16 %v2055_v3, %v2054_v4  ;;  %v1875_v31 = vpop.permute.xlu0 %1874  ;;  %v2178_v33 = vor.u32 %v2176_v53, %v2175_v16  ;;  %v2083_v15 = vld [vmem:[#allocation3 + $0x20] sm:$0xff]  ;;  %v2356_v12 = vpack.c.b16 %v2314_v61, %v2313_v47  ;;  %v2266_v5 = vsel %vm4720_vm5, %v2175_v16, 0 }
 0x287   : > { %vm1376_vm12 = vcmp.ge.f32.partialorder %v1360_v1, 0.0  ;;  %v1393_v19 = vmul.f32 %v5331_v30, %v1360_v1  ;;  %v1912_v45 = vadd.f32 %v1875_v31, %v6300_v49  ;;  %v2124_v8 = vshrl.u32 %v2083_v15, 16 }
 0x288   : > { %2075 = vst.msk [vmem:[#allocation3 + $0x60] sm:$0xff] %vm247_vm0, %v2066_v35  ;;  %v1877_v39 = vpop.permute.xlu1 %1876  ;;  %v5519_v36 = vsel %vm4720_vm5, 0, %v2178_v33  ;;  %v2127_v54 = vshll.u32 %v2083_v15, 16  ;;  %v2338_v22 = vunpack.c.l.b16 %v2266_v5 }
 0x289   : > { %v1409_v41 = vsel %vm1376_vm12, %v1360_v1, %v1393_v19  ;;  %v2008_v25 = vadd.f32 %v6301_v13, %v1912_v45  ;;  %v1913_v20 = vadd.f32 %v1877_v39, %v6302_v44  ;;  %v4041_v62 = vcombine.low %v2265_v59, %v5519_v36  ;;  %2559 = vst.msk [vmem:[#allocation2 + $0xf8] sm:$0xff] %vm247_vm0, %v5519_v36  ;;  %v6304_v13 = vld [vmem:[#allocation30_spill] sm:$0xff] }
 0x28a   : > { %v1419_v51 = vpack.c.bf16 %v1409_v41, %v1408_v55  ;;  %2385 = vrot.lane.b32.xlu0 %v2356_v12, %s4472_s22  ;;  %v2126_v58 = vrot.slane %v2124_v8, 7  ;;  %v2337_v9 = vunpack.c.h.b16 %v5519_v36 }
 0x28b   : > { %vm2024_vm13 = vcmp.ge.f32.partialorder %v2008_v25, 0.0  ;;  %v2040_v10 = vmul.f32 %v2008_v25, %v5331_v30  ;;  %v2009_v34 = vadd.f32 %v6303_v43, %v1913_v20  ;;  %2407 = vrot.lane.b32.xlu1 %v4041_v62, %s4472_s22 }
 0x28c   : > { %1427 = vst.msk [vmem:[#allocation3 + $0x28] sm:$0xff] %vm247_vm0, %v1419_v51  ;;  %v2129_v59 = vor.u32 %v2127_v54, %v2126_v58  ;;  %v5536_v50 = vsel %vm4720_vm5, %v2126_v58, 0  ;;  %v2368_v56 = vpack.c.b16 %v2338_v22, %v2337_v9 }
 0x28d   : > { %vm2025_vm14 = vcmp.ge.f32.partialorder %v2009_v34, 0.0  ;;  %v2041_v27 = vmul.f32 %v2009_v34, %v5331_v30  ;;  %v2056_v2 = vsel %vm2024_vm13, %v2008_v25, %v2040_v10  ;;  %v2317_v4 = vunpack.c.l.b16 %v5536_v50 }
 0x28e   : > { %v2243_v52 = vsel %vm4720_vm5, 0, %v2129_v59 }
 0x28f   : > { %v2057_v26 = vsel %vm2025_vm14, %v2009_v34, %v2041_v27  ;;  %v2316_v47 = vunpack.c.h.b16 %v2243_v52  ;;  %v5541_v16 = vcombine.low %v2258_v48, %v2243_v52  ;;  %2387 = vrot.lane.b32.xlu0 %v2243_v52, %s4472_s22  ;;  %2409 = vrot.lane.b32.xlu1 %v2368_v56, %s4472_s22  ;;  %v2091_v53 = vld [vmem:[#allocation3 + $0x60] sm:$0xff] }
 0x290   : > { %v2067_v3 = vpack.c.bf16 %v2057_v26, %v2056_v2  ;;  %v2180_v24 = vshrl.u32 %v2091_v53, 16  ;;  %v2183_v31 = vshll.u32 %v2091_v53, 16  ;;  %v6306_v2 = vld [vmem:[#allocation25_spill] sm:$0xff] }
 0x291   : > { %2548 = vst.msk [vmem:[#allocation2 + $0x48] sm:$0xff] %vm247_vm0, %v5541_v16  ;;  %v5548_v1 = vpack.c.b16 %v2317_v4, %v2316_v47 }
 0x292   : > { %2076 = vst.msk [vmem:[#allocation3 + $0x68] sm:$0xff] %vm247_vm0, %v2067_v3  ;;  %v2182_v35 = vrot.slane %v2180_v24, 7 }
 0x293   : > { %v2084_v48 = vld [vmem:[#allocation3 + $0x28] sm:$0xff]  ;;  %2549 = vst.msk [vmem:[#allocation2 + $0x58] sm:$0xff] %vm247_vm0, %v5548_v1 }
 0x294   : > { %v1233_v61 = vpop.permute.xlu0 %1232  ;;  %v2185_v33 = vor.u32 %v2183_v31, %v2182_v35  ;;  %v2131_v15 = vshrl.u32 %v2084_v48, 16  ;;  %v5556_v49 = vsel %vm4720_vm5, %v2182_v35, 0  ;;  %v2134_v39 = vshll.u32 %v2084_v48, 16  ;;  %v6308_v31 = vld [vmem:[#allocation27_spill] sm:$0xff] }
 0x295   : > { %v1266_v19 = vadd.f32 %v1233_v61, %v5275_v37  ;;  %v2341_v51 = vunpack.c.l.b16 %v5556_v49 }
 0x296   : > { %v2251_v45 = vsel %vm4720_vm5, 0, %v2185_v33  ;;  %v1235_v8 = vpop.permute.xlu1 %1234  ;;  %v2133_v55 = vrot.slane %v2131_v15, 7  ;;  %v6309_v33 = vld [vmem:[#allocation29_spill] sm:$0xff] }
 0x297   : > { %v1363_v12 = vadd.f32 %v5300_v17, %v1266_v19  ;;  %v5561_v41 = vcombine.low %v2266_v5, %v2251_v45  ;;  %2411 = vrot.lane.b32.xlu1 %v2251_v45, %s4472_s22  ;;  %v1267_v25 = vadd.f32 %v1235_v8, %v6304_v13  ;;  %v2340_v44 = vunpack.c.h.b16 %v2251_v45  ;;  %v6305_v5 = vld [vmem:[#allocation21_spill] sm:$0xff]  ;;  %v6310_v8 = vld [vmem:[#allocation31_spill] sm:$0xff] }
 0x298   : > { %v1229_v37 = vpop.permute.xlu0 %1228  ;;  %v2136_v20 = vor.u32 %v2134_v39, %v2133_v55  ;;  %v5567_v62 = vsel %vm4720_vm5, %v2133_v55, 0 }
 0x299   : > { %vm1379_vm15 = vcmp.ge.f32.partialorder %v1363_v12, 0.0  ;;  %v1396_v58 = vmul.f32 %v5331_v30, %v1363_v12  ;;  %2560 = vst.msk [vmem:[#allocation2 + $0x108] sm:$0xff] %vm247_vm0, %v5561_v41  ;;  %v1364_v17 = vadd.f32 %v5306_v38, %v1267_v25  ;;  %v1264_v54 = vadd.f32 %v1229_v37, %v6305_v5  ;;  %v2092_v9 = vld [vmem:[#allocation3 + $0x68] sm:$0xff]  ;;  %v6307_v38 = vld [vmem:[#allocation23_spill] sm:$0xff] }
 0x29a   : > { %v1231_v10 = vpop.permute.xlu1 %1230  ;;  %v5577_v43 = vsel %vm4720_vm5, 0, %v2136_v20  ;;  %v2320_v34 = vunpack.c.l.b16 %v5567_v62  ;;  %v2187_v22 = vshrl.u32 %v2092_v9, 16  ;;  %v2190_v59 = vshll.u32 %v2092_v9, 16 }
 0x29b   : > { %v1412_v27 = vsel %vm1379_vm15, %v1363_v12, %v1396_v58  ;;  %vm1380_vm1 = vcmp.ge.f32.partialorder %v1364_v17, 0.0  ;;  %v1397_v56 = vmul.f32 %v5331_v30, %v1364_v17  ;;  %v1361_v52 = vadd.f32 %v6306_v2, %v1264_v54  ;;  %2550 = vst.msk [vmem:[#allocation2 + $0x68] sm:$0xff] %vm247_vm0, %v5577_v43 }
 0x29c   : > { %v1265_v26 = vadd.f32 %v1231_v10, %v6307_v38  ;;  %v4038_v47 = vcombine.low %v5536_v50, %v5577_v43  ;;  %v1879_v53 = vpop.permute.xlu0 %1878  ;;  %v2319_v4 = vunpack.c.h.b16 %v5577_v43  ;;  %v2189_v3 = vrot.slane %v2187_v22, 7  ;;  %v6311_v50 = vld [vmem:[#allocation28_spill] sm:$0xff] }
 0x29d   : > { %v1413_v24 = vsel %vm1380_vm1, %v1364_v17, %v1397_v56  ;;  %vm1377_vm2 = vcmp.ge.f32.partialorder %v1361_v52, 0.0  ;;  %v1394_v35 = vmul.f32 %v5331_v30, %v1361_v52  ;;  %v1914_v48 = vadd.f32 %v1879_v53, %v6308_v31 }
 0x29e   : > { %v1421_v61 = vpack.c.bf16 %v1413_v24, %v1412_v27  ;;  %v1362_v15 = vadd.f32 %v6309_v33, %v1265_v26  ;;  %2389 = vrot.lane.b32.xlu0 %v4038_v47, %s4472_s22  ;;  %v1881_v19 = vpop.permute.xlu1 %1880  ;;  %v2192_v45 = vor.u32 %v2190_v59, %v2189_v3  ;;  %v2359_v12 = vpack.c.b16 %v2320_v34, %v2319_v4 }
 0x29f   : > { %v2010_v55 = vadd.f32 %v6310_v8, %v1914_v48  ;;  %v1915_v39 = vadd.f32 %v1881_v19, %v6311_v50  ;;  %v5594_v13 = vpack.c.b16 %v2341_v51, %v2340_v44  ;;  %v1410_v25 = vsel %vm1377_vm2, %v1361_v52, %v1394_v35 }
 0x2a0   : > { %1429 = vst.msk [vmem:[#allocation3 + $0x38] sm:$0xff] %vm247_vm0, %v1421_v61  ;;  %vm1378_vm9 = vcmp.ge.f32.partialorder %v1362_v15, 0.0  ;;  %v1395_v37 = vmul.f32 %v5331_v30, %v1362_v15  ;;  %v1883_v20 = vpop.permute.xlu0 %1882  ;;  %v5600_v58 = vsel %vm4720_vm5, 0, %v2192_v45  ;;  %v5611_v44 = vsel %vm4720_vm5, %v2189_v3, 0 }
 0x2a1   : > { %v2042_v17 = vmul.f32 %v2010_v55, %v5331_v30  ;;  %v2011_v5 = vadd.f32 %v5309_v29, %v1915_v39  ;;  %v1916_v54 = vadd.f32 %v1883_v20, %v5297_v28  ;;  %2561 = vst.msk [vmem:[#allocation2 + $0x118] sm:$0xff] %vm247_vm0, %v5594_v13  ;;  %2562 = vst.msk [vmem:[#allocation2 + $0x128] sm:$0xff] %vm247_vm0, %v5600_v58  ;;  %vm2026_vm10 = vcmp.ge.f32.partialorder %v2010_v55, 0.0 }
 0x2a2   : > { %v1411_v51 = vsel %vm1378_vm9, %v1362_v15, %v1395_v37  ;;  %2391 = vrot.lane.b32.xlu0 %v2359_v12, %s4472_s22  ;;  %v4042_v9 = vcombine.low %v5556_v49, %v5600_v58  ;;  %v1885_v29 = vpop.permute.xlu1 %1884  ;;  %v2343_v28 = vunpack.c.h.b16 %v5600_v58  ;;  %v2344_v27 = vunpack.c.l.b16 %v5611_v44 }
 0x2a3   : > { %v1420_v10 = vpack.c.bf16 %v1411_v51, %v1410_v25  ;;  %vm2027_vm11 = vcmp.ge.f32.partialorder %v2011_v5, 0.0  ;;  %v2043_v34 = vmul.f32 %v2011_v5, %v5331_v30  ;;  %v2012_v22 = vadd.f32 %v5321_v63, %v1916_v54 }
 0x2a4   : > { %2413 = vrot.lane.b32.xlu1 %v4042_v9, %s4472_s22  ;;  %v1917_v59 = vadd.f32 %v1885_v29, %v5312_v14  ;;  %v2058_v56 = vsel %vm2026_vm10, %v2010_v55, %v2042_v17  ;;  %v2371_v26 = vpack.c.b16 %v2344_v27, %v2343_v28 }
 0x2a5   : > { %1428 = vst.msk [vmem:[#allocation3 + $0x30] sm:$0xff] %vm247_vm0, %v1420_v10  ;;  %v2059_v2 = vsel %vm2027_vm11, %v2011_v5, %v2043_v34  ;;  %v2044_v52 = vmul.f32 %v2012_v22, %v5331_v30  ;;  %vm2028_vm12 = vcmp.ge.f32.partialorder %v2012_v22, 0.0 }
 0x2a6   : > { %v2068_v49 = vpack.c.bf16 %v2059_v2, %v2058_v56  ;;  %v2013_v38 = vadd.f32 %v5326_v60, %v1917_v59 }
 0x2a7   : > { %v2086_v47 = vld [vmem:[#allocation3 + $0x38] sm:$0xff]  ;;  %v2060_v53 = vsel %vm2028_vm12, %v2012_v22, %v2044_v52 }
 0x2a8   : > { %2077 = vst.msk [vmem:[#allocation3 + $0x70] sm:$0xff] %vm247_vm0, %v2068_v49  ;;  %vm2029_vm13 = vcmp.ge.f32.partialorder %v2013_v38, 0.0  ;;  %v2045_v63 = vmul.f32 %v2013_v38, %v5331_v30  ;;  %2415 = vrot.lane.b32.xlu1 %v2371_v26, %s4472_s22  ;;  %v2145_v14 = vshrl.u32 %v2086_v47, 16  ;;  %v2148_v24 = vshll.u32 %v2086_v47, 16 }
 0x2aa   : > { %v2061_v4 = vsel %vm2029_vm13, %v2013_v38, %v2045_v63  ;;  %v2147_v3 = vrot.slane %v2145_v14, 7 }
 0x2ab   : > { %v2069_v35 = vpack.c.bf16 %v2061_v4, %v2060_v53 }
 0x2ac   : > { %v2085_v31 = vld [vmem:[#allocation3 + $0x30] sm:$0xff]  ;;  %v2150_v48 = vor.u32 %v2148_v24, %v2147_v3  ;;  %v2262_v60 = vsel %vm4720_vm5, %v2147_v3, 0  ;;  %v2570_v3 = vld [vmem:[#allocation2 + $0x18] sm:$0xff] }
 0x2ad   : > { %2078 = vst.msk [vmem:[#allocation3 + $0x78] sm:$0xff] %vm247_vm0, %v2069_v35  ;;  %v2138_v61 = vshrl.u32 %v2085_v31, 16  ;;  %v5632_v33 = vcombine.low %v2262_v60, %v5384_v46  ;;  %v2141_v19 = vshll.u32 %v2085_v31, 16  ;;  %v2326_v56 = vunpack.c.l.b16 %v2262_v60  ;;  %v3199_v60 = vld [vmem:[#allocation2 + $0xd8] sm:$0xff] }
 0x2ae   : > { %v2246_v30 = vsel %vm4720_vm5, 0, %v2150_v48  ;;  %v4044_v35 = vcombine.low %v5360_v40, %v5360_v40 }
 0x2af   : > { %v2140_v15 = vrot.slane %v2138_v61, 7  ;;  %v2093_v45 = vld [vmem:[#allocation3 + $0x70] sm:$0xff]  ;;  %2553 = vst.msk [vmem:[#allocation2 + $0x98] sm:$0xff] %vm247_vm0, %v2246_v30  ;;  %2554 = vst.msk [vmem:[#allocation2 + $0xa8] sm:$0xff] %vm247_vm0, %v5632_v33  ;;  %v2325_v51 = vunpack.c.h.b16 %v2246_v30 }
 0x2b0   : > { %v2194_v8 = vshrl.u32 %v2093_v45, 16  ;;  %v2197_v12 = vshll.u32 %v2093_v45, 16  ;;  %v2572_v45 = vld [vmem:[#allocation2 + $0x28] sm:$0xff] }
 0x2b1   : > { %v2143_v55 = vor.u32 %v2141_v19, %v2140_v15  ;;  %v2261_v50 = vsel %vm4720_vm5, %v2140_v15, 0  ;;  %v2362_v38 = vpack.c.b16 %v2326_v56, %v2325_v51  ;;  %v2578_v51 = vld [vmem:[#allocation2 + $0x58] sm:$0xff] }
 0x2b2   : > { %v2196_v39 = vrot.slane %v2194_v8, 7  ;;  %v2323_v25 = vunpack.c.l.b16 %v2261_v50  ;;  %v4039_v28 = vcombine.low %v2261_v50, %v2246_v30  ;;  %v2574_v50 = vld [vmem:[#allocation2 + $0x38] sm:$0xff] }
 0x2b3   : > { %v2245_v46 = vsel %vm4720_vm5, 0, %v2143_v55 }
 0x2b4   : > { %2393 = vrot.lane.b32.xlu0 %v2245_v46, %s4472_s22  ;;  %v2322_v37 = vunpack.c.h.b16 %v2245_v46  ;;  %v5645_v20 = vcombine.low %v5567_v62, %v2245_v46  ;;  %v2199_v17 = vor.u32 %v2197_v12, %v2196_v39  ;;  %v2094_v5 = vld [vmem:[#allocation3 + $0x78] sm:$0xff]  ;;  %v2269_v54 = vsel %vm4720_vm5, %v2196_v39, 0  ;;  %v2576_v46 = vld [vmem:[#allocation2 + $0x48] sm:$0xff] }
 0x2b5   : > { %v2201_v9 = vshrl.u32 %v2094_v5, 16  ;;  %v2204_v34 = vshll.u32 %v2094_v5, 16  ;;  %v2347_v27 = vunpack.c.l.b16 %v2269_v54 }
 0x2b6   : > { %2551 = vst.msk [vmem:[#allocation2 + $0x78] sm:$0xff] %vm247_vm0, %v5645_v20  ;;  %v2253_v29 = vsel %vm4720_vm5, 0, %v2199_v17  ;;  %v5653_v10 = vpack.c.b16 %v2323_v25, %v2322_v37  ;;  %v3205_v17 = vld [vmem:[#allocation2 + $0x108] sm:$0xff] }
 0x2b7   : > { %2417 = vrot.lane.b32.xlu1 %v2253_v29, %s4472_s22  ;;  %v2346_v62 = vunpack.c.h.b16 %v2253_v29  ;;  %v5657_v22 = vcombine.low %v5611_v44, %v2253_v29  ;;  %v2203_v59 = vrot.slane %v2201_v9, 7 }
 0x2b8   : > { %2552 = vst.msk [vmem:[#allocation2 + $0x88] sm:$0xff] %vm247_vm0, %v5653_v10  ;;  %2395 = vrot.lane.b32.xlu0 %v4039_v28, %s4472_s22  ;;  %v2580_v28 = vld [vmem:[#allocation2 + $0x68] sm:$0xff] }
 0x2b9   : > { %2563 = vst.msk [vmem:[#allocation2 + $0x138] sm:$0xff] %vm247_vm0, %v5657_v22  ;;  %v2206_v2 = vor.u32 %v2204_v34, %v2203_v59  ;;  %v5664_v49 = vpack.c.b16 %v2347_v27, %v2346_v62  ;;  %v2270_v52 = vsel %vm4720_vm5, %v2203_v59, 0 }
 0x2ba   : > { %v4052_v44 = vcombine.low %v2270_v52, %v2270_v52  ;;  %v2350_v14 = vunpack.c.l.b16 %v2270_v52 }
 0x2bb   : > { %v2254_v26 = vsel %vm4720_vm5, 0, %v2206_v2  ;;  %2564 = vst.msk [vmem:[#allocation2 + $0x148] sm:$0xff] %vm247_vm0, %v5664_v49 }
 0x2bc   : > { %2397 = vrot.lane.b32.xlu0 %v2362_v38, %s4472_s22  ;;  %v4043_v47 = vcombine.low %v2269_v54, %v2254_v26  ;;  %2565 = vst.msk [vmem:[#allocation2 + $0x158] sm:$0xff] %vm247_vm0, %v2254_v26  ;;  %v2349_v63 = vunpack.c.h.b16 %v2254_v26 }
 0x2bd   : > { %2566 = vst.msk [vmem:[#allocation2 + $0x168] sm:$0xf] %vm249_vm3, %v4052_v44  ;;  %v2582_v59 = vld [vmem:[#allocation2 + $0x78] sm:$0xff] }
 0x2be   : > { %2419 = vrot.lane.b32.xlu1 %v4043_v47, %s4472_s22  ;;  %v2374_v53 = vpack.c.b16 %v2350_v14, %v2349_v63 }
 0x2bf   : > { %v2584_v38 = vld [vmem:[#allocation2 + $0x88] sm:$0xff] }
 0x2c0   : > { %v3211_v2 = vld [vmem:[#allocation2 + $0x138] sm:$0xff] }
 0x2c2   : > { %2421 = vrot.lane.b32.xlu1 %v2374_v53, %s4472_s22  ;;  %v3213_v44 = vld [vmem:[#allocation2 + $0x148] sm:$0xff] }
 0x2c3   : > { %v3215_v14 = vld [vmem:[#allocation2 + $0x158] sm:$0xff] }
 0x2cf   : > { %v2376_v4 = vpop.permute.xlu1 %2375 }
 0x2d0   : > { %2447 = vst.msk [vmem:[#allocation2] sm:$0xff] %vm658_vm6, %v2376_v4 }
 0x2d7   : > { %v2567_v21 = vld [vmem:[#allocation2] sm:$0xff] }
 0x2d8   : > { %2804 = vmatmul.mubr.bf16.vlgmr.msra.gmra.mrb[48].mxu0 %v2567_v21 }
 0x2d9   : > { %v2400_v24 = vpop.permute.xlu0 %2399  ;;  %4078 = vmatprep.mubr.msk.bf16.mxu0 %vm247_vm0, %v2570_v3  ;;  %v2588_v3 = vld [vmem:[#allocation2 + $0xa8] sm:$0xff] }
 0x2da   : > { %2459 = vst.msk [vmem:[#allocation2 + $0xc0] sm:$0xff] %vm658_vm6, %v2400_v24 }
 0x2db   : > { %2528 = vst.msk [vmem:[#allocation2 + $0xc0] sm:$0xff] %vm247_vm0, %v2246_v30 }
 0x2df   : > { %v2378_v31 = vpop.permute.xlu0 %2377 }
 0x2e0   : > { %2448 = vst.msk [vmem:[#allocation2 + $0x10] sm:$0xff] %vm658_vm6, %v2378_v31  ;;  %v3219_v31 = vld [vmem:[#allocation2 + $0x178] sm:$0xff] }
 0x2e1   : > { %2517 = vst.msk [vmem:[#allocation2 + $0x10] sm:$0xf0] %vm251_vm4, %v4044_v35  ;;  %v2590_v35 = vld [vmem:[#allocation2 + $0xb8] sm:$0xff] }
 0x2e2   : > { %v3196_v48 = vld [vmem:[#allocation2 + $0xc0] sm:$0xff] }
 0x2e3   : > { %3433 = vmatmul.mubr.bf16.vlgmr.msra.gmra.mrb[48].mxu1 %v3196_v48 }
 0x2e4   : > { %v2380_v61 = vpop.permute.xlu0 %2379  ;;  %4114 = vmatprep.mubr.msk.bf16.mxu1 %vm247_vm0, %v3199_v60 }
 0x2e5   : > { %2449 = vst.msk [vmem:[#allocation2 + $0x20] sm:$0xff] %vm658_vm6, %v2380_v61  ;;  %v2402_v15 = vpop.permute.xlu1 %2401 }
 0x2e6   : > { %2518 = vst.msk [vmem:[#allocation2 + $0x20] sm:$0xff] %vm247_vm0, %v5376_v23 }
 0x2e7   : > { %2460 = vst.msk [vmem:[#allocation2 + $0xd0] sm:$0xff] %vm658_vm6, %v2402_v15 }
 0x2e8   : > { %2529 = vst.msk [vmem:[#allocation2 + $0xd0] sm:$0xff] %vm247_vm0, %v5632_v33  ;;  %v2382_v40 = vpop.permute.xlu0 %2381  ;;  %v2569_v30 = vld [vmem:[#allocation2 + $0x10] sm:$0xff]  ;;  %v3201_v33 = vld [vmem:[#allocation2 + $0xe8] sm:$0xff] }
 0x2e9   : > { %v2404_v19 = vpop.permute.xlu1 %2403  ;;  %2450 = vst.msk [vmem:[#allocation2 + $0x30] sm:$0xff] %vm658_vm6, %v2382_v40  ;;  %2814 = vmatmul.mubr.bf16.gmra.mrb[52].mxu0 %v2569_v30 }
 0x2ea   : > { %2461 = vst.msk [vmem:[#allocation2 + $0xe0] sm:$0xff] %vm658_vm6, %v2404_v19  ;;  %4079 = vmatprep.mubr.msk.bf16.mxu0 %vm247_vm0, %v2572_v45 }
 0x2eb   : > { %2519 = vst.msk [vmem:[#allocation2 + $0x30] sm:$0xff] %vm247_vm0, %v5401_v42  ;;  %2530 = vst.msk [vmem:[#allocation2 + $0xe0] sm:$0xff] %vm247_vm0, %v5407_v0  ;;  %v3203_v0 = vld [vmem:[#allocation2 + $0xf8] sm:$0xff] }
 0x2ed   : > { %v2571_v8 = vld [vmem:[#allocation2 + $0x20] sm:$0xff] }
 0x2ef   : > { %v3198_v23 = vld [vmem:[#allocation2 + $0xd0] sm:$0xff] }
 0x2f0   : > { %3443 = vmatmul.mubr.bf16.gmra.mrb[52].mxu1 %v3198_v23 }
 0x2f1   : > { %4115 = vmatprep.mubr.msk.bf16.mxu1 %vm247_vm0, %v3201_v33  ;;  %v2406_v55 = vpop.permute.xlu1 %2405  ;;  %2824 = vmatmul.mubr.bf16.gmra.mrb[56].mxu0 %v2571_v8 }
 0x2f2   : > { %2462 = vst.msk [vmem:[#allocation2 + $0xf0] sm:$0xff] %vm658_vm6, %v2406_v55  ;;  %4080 = vmatprep.mubr.msk.bf16.mxu0 %vm247_vm0, %v2574_v50  ;;  %v3200_v42 = vld [vmem:[#allocation2 + $0xe0] sm:$0xff]  ;;  %v2573_v12 = vld [vmem:[#allocation2 + $0x30] sm:$0xff] }
 0x2f3   : > { %2531 = vst.msk [vmem:[#allocation2 + $0xf0] sm:$0xff] %vm247_vm0, %v5432_v57 }
 0x2f7   : > { %v2384_v39 = vpop.permute.xlu0 %2383 }
 0x2f8   : > { %3453 = vmatmul.mubr.bf16.gmra.mrb[56].mxu1 %v3200_v42  ;;  %2451 = vst.msk [vmem:[#allocation2 + $0x40] sm:$0xff] %vm658_vm6, %v2384_v39 }
 0x2f9   : > { %4116 = vmatprep.mubr.msk.bf16.mxu1 %vm247_vm0, %v3203_v0  ;;  %2520 = vst.msk [vmem:[#allocation2 + $0x40] sm:$0xff] %vm247_vm0, %v5464_v11  ;;  %2834 = vmatmul.mubr.bf16.gmra.mrb[60].mxu0 %v2573_v12 }
 0x2fa   : > { %4081 = vmatprep.mubr.msk.bf16.mxu0 %vm247_vm0, %v2576_v46  ;;  %v3202_v37 = vld [vmem:[#allocation2 + $0xf0] sm:$0xff] }
 0x2fc   : > { %v2386_v25 = vpop.permute.xlu0 %2385 }
 0x2fd   : > { %2452 = vst.msk [vmem:[#allocation2 + $0x50] sm:$0xff] %vm658_vm6, %v2386_v25  ;;  %v2408_v57 = vpop.permute.xlu1 %2407 }
 0x2fe   : > { %2521 = vst.msk [vmem:[#allocation2 + $0x50] sm:$0xff] %vm247_vm0, %v5468_v6 }
 0x2ff   : > { %2463 = vst.msk [vmem:[#allocation2 + $0x100] sm:$0xff] %vm658_vm6, %v2408_v57 }
 0x300   : > { %2532 = vst.msk [vmem:[#allocation2 + $0x100] sm:$0xff] %vm247_vm0, %v5487_v32  ;;  %3463 = vmatmul.mubr.bf16.gmra.mrb[60].mxu1 %v3202_v37  ;;  %v2575_v5 = vld [vmem:[#allocation2 + $0x40] sm:$0xff]  ;;  %v3207_v32 = vld [vmem:[#allocation2 + $0x118] sm:$0xff] }
 0x301   : > { %4117 = vmatprep.mubr.msk.bf16.mxu1 %vm247_vm0, %v3205_v17  ;;  %v2388_v11 = vpop.permute.xlu0 %2387  ;;  %v2410_v54 = vpop.permute.xlu1 %2409  ;;  %2844 = vmatmul.mubr.bf16.gmra.mrb[64].mxu0 %v2575_v5 }
 0x302   : > { %2453 = vst.msk [vmem:[#allocation2 + $0x60] sm:$0xff] %vm658_vm6, %v2388_v11  ;;  %2464 = vst.msk [vmem:[#allocation2 + $0x110] sm:$0xff] %vm658_vm6, %v2410_v54  ;;  %4082 = vmatprep.mubr.msk.bf16.mxu0 %vm247_vm0, %v2578_v51 }
 0x303   : > { %2522 = vst.msk [vmem:[#allocation2 + $0x60] sm:$0xff] %vm247_vm0, %v5495_v7  ;;  %2533 = vst.msk [vmem:[#allocation2 + $0x110] sm:$0xff] %vm247_vm0, %v5499_v18  ;;  %v3209_v18 = vld [vmem:[#allocation2 + $0x128] sm:$0xff] }
 0x305   : > { %v2577_v9 = vld [vmem:[#allocation2 + $0x50] sm:$0xff] }
 0x307   : > { %v3204_v6 = vld [vmem:[#allocation2 + $0x100] sm:$0xff] }
 0x308   : > { %3473 = vmatmul.mubr.bf16.gmra.mrb[64].mxu1 %v3204_v6 }
 0x309   : > { %4118 = vmatprep.mubr.msk.bf16.mxu1 %vm247_vm0, %v3207_v32  ;;  %v2412_v29 = vpop.permute.xlu1 %2411  ;;  %2854 = vmatmul.mubr.bf16.gmra.mrb[68].mxu0 %v2577_v9 }
 0x30a   : > { %2465 = vst.msk [vmem:[#allocation2 + $0x120] sm:$0xff] %vm658_vm6, %v2412_v29  ;;  %4083 = vmatprep.mubr.msk.bf16.mxu0 %vm247_vm0, %v2580_v28  ;;  %v3206_v7 = vld [vmem:[#allocation2 + $0x110] sm:$0xff]  ;;  %v2579_v62 = vld [vmem:[#allocation2 + $0x60] sm:$0xff] }
 0x30b   : > { %2534 = vst.msk [vmem:[#allocation2 + $0x120] sm:$0xff] %vm247_vm0, %v5519_v36 }
 0x310   : > { %3483 = vmatmul.mubr.bf16.gmra.mrb[68].mxu1 %v3206_v7  ;;  %v2390_v34 = vpop.permute.xlu0 %2389 }
 0x311   : > { %4119 = vmatprep.mubr.msk.bf16.mxu1 %vm247_vm0, %v3209_v18  ;;  %2454 = vst.msk [vmem:[#allocation2 + $0x70] sm:$0xff] %vm658_vm6, %v2390_v34  ;;  %2864 = vmatmul.mubr.bf16.gmra.mrb[72].mxu0 %v2579_v62 }
 0x312   : > { %2523 = vst.msk [vmem:[#allocation2 + $0x70] sm:$0xff] %vm247_vm0, %v5541_v16  ;;  %4084 = vmatprep.mubr.msk.bf16.mxu0 %vm247_vm0, %v2582_v59  ;;  %v3208_v56 = vld [vmem:[#allocation2 + $0x120] sm:$0xff] }
 0x314   : > { %v2392_v27 = vpop.permute.xlu0 %2391 }
 0x315   : > { %2455 = vst.msk [vmem:[#allocation2 + $0x80] sm:$0xff] %vm658_vm6, %v2392_v27 }
 0x316   : > { %2524 = vst.msk [vmem:[#allocation2 + $0x80] sm:$0xff] %vm247_vm0, %v5548_v1  ;;  %v2414_v36 = vpop.permute.xlu1 %2413 }
 0x317   : > { %2466 = vst.msk [vmem:[#allocation2 + $0x130] sm:$0xff] %vm658_vm6, %v2414_v36 }
 0x318   : > { %3493 = vmatmul.mubr.bf16.gmra.mrb[72].mxu1 %v3208_v56  ;;  %2535 = vst.msk [vmem:[#allocation2 + $0x130] sm:$0xff] %vm247_vm0, %v5561_v41  ;;  %v2586_v41 = vld [vmem:[#allocation2 + $0x98] sm:$0xff] }
 0x319   : > { %4120 = vmatprep.mubr.msk.bf16.mxu1 %vm247_vm0, %v3211_v2  ;;  %v2581_v16 = vld [vmem:[#allocation2 + $0x70] sm:$0xff] }
 0x31a   : > { %2874 = vmatmul.mubr.bf16.gmra.mrb[76].mxu0 %v2581_v16  ;;  %v2416_v52 = vpop.permute.xlu1 %2415 }
 0x31b   : > { %2467 = vst.msk [vmem:[#allocation2 + $0x140] sm:$0xff] %vm658_vm6, %v2416_v52  ;;  %4085 = vmatprep.mubr.msk.bf16.mxu0 %vm247_vm0, %v2584_v38 }
 0x31c   : > { %2536 = vst.msk [vmem:[#allocation2 + $0x140] sm:$0xff] %vm247_vm0, %v5594_v13 }
 0x31d   : > { %v2583_v26 = vld [vmem:[#allocation2 + $0x80] sm:$0xff] }
 0x31f   : > { %v3210_v1 = vld [vmem:[#allocation2 + $0x130] sm:$0xff] }
 0x320   : > { %3503 = vmatmul.mubr.bf16.gmra.mrb[76].mxu1 %v3210_v1 }
 0x321   : > { %4121 = vmatprep.mubr.msk.bf16.mxu1 %vm247_vm0, %v3213_v44 }
 0x322   : > { %2884 = vmatmul.mubr.bf16.gmra.mrb[80].mxu0 %v2583_v26 }
 0x323   : > { %4086 = vmatprep.mubr.msk.bf16.mxu0 %vm247_vm0, %v2586_v41  ;;  %v3212_v63 = vld [vmem:[#allocation2 + $0x140] sm:$0xff] }
 0x326   : > { %v2394_v47 = vpop.permute.xlu0 %2393 }
 0x327   : > { %2456 = vst.msk [vmem:[#allocation2 + $0x90] sm:$0xff] %vm658_vm6, %v2394_v47 }
 0x328   : > { %2525 = vst.msk [vmem:[#allocation2 + $0x90] sm:$0xff] %vm247_vm0, %v5577_v43  ;;  %3513 = vmatmul.mubr.bf16.gmra.mrb[80].mxu1 %v3212_v63 }
 0x329   : > { %4122 = vmatprep.mubr.msk.bf16.mxu1 %vm247_vm0, %v3215_v14  ;;  %v2418_v13 = vpop.permute.xlu1 %2417 }
 0x32a   : > { %2468 = vst.msk [vmem:[#allocation2 + $0x150] sm:$0xff] %vm658_vm6, %v2418_v13  ;;  %v2396_v53 = vpop.permute.xlu0 %2395 }
 0x32b   : > { %2537 = vst.msk [vmem:[#allocation2 + $0x150] sm:$0xff] %vm247_vm0, %v5600_v58 }
 0x32c   : > { %2457 = vst.msk [vmem:[#allocation2 + $0xa0] sm:$0xff] %vm658_vm6, %v2396_v53 }
 0x32d   : > { %2526 = vst.msk [vmem:[#allocation2 + $0xa0] sm:$0xff] %vm247_vm0, %v5645_v20  ;;  %v3217_v20 = vld [vmem:[#allocation2 + $0x168] sm:$0xff] }
 0x32e   : > { %v2398_v4 = vpop.permute.xlu0 %2397 }
 0x32f   : > { %2458 = vst.msk [vmem:[#allocation2 + $0xb0] sm:$0xff] %vm658_vm6, %v2398_v4  ;;  %v2585_v43 = vld [vmem:[#allocation2 + $0x90] sm:$0xff] }
 0x330   : > { %2527 = vst.msk [vmem:[#allocation2 + $0xb0] sm:$0xff] %vm247_vm0, %v5653_v10  ;;  %v2420_v21 = vpop.permute.xlu1 %2419  ;;  %2894 = vmatmul.mubr.bf16.gmra.mrb[84].mxu0 %v2585_v43 }
 0x331   : > { %2469 = vst.msk [vmem:[#allocation2 + $0x160] sm:$0xff] %vm658_vm6, %v2420_v21  ;;  %4087 = vmatprep.mubr.msk.bf16.mxu0 %vm247_vm0, %v2588_v3 }
 0x332   : > { %2538 = vst.msk [vmem:[#allocation2 + $0x160] sm:$0xff] %vm247_vm0, %v5657_v22  ;;  %v3214_v58 = vld [vmem:[#allocation2 + $0x150] sm:$0xff] }
 0x333   : > { %3523 = vmatmul.mubr.bf16.gmra.mrb[84].mxu1 %v3214_v58 }
 0x334   : > { %v2422_v24 = vpop.permute.xlu1 %2421  ;;  %4123 = vmatprep.mubr.msk.bf16.mxu1 %vm247_vm0, %v3217_v20  ;;  %v2587_v10 = vld [vmem:[#allocation2 + $0xa0] sm:$0xff] }
 0x335   : > { %2470 = vst.msk [vmem:[#allocation2 + $0x170] sm:$0xff] %vm658_vm6, %v2422_v24 }
 0x336   : > { %2539 = vst.msk [vmem:[#allocation2 + $0x170] sm:$0xff] %vm247_vm0, %v5664_v49 }
 0x337   : > { %v2589_v22 = vld [vmem:[#allocation2 + $0xb0] sm:$0xff] }
 0x338   : > { %2904 = vmatmul.mubr.bf16.gmra.mrb[88].mxu0 %v2587_v10 }
 0x339   : > { %4088 = vmatprep.mubr.msk.bf16.mxu0 %vm247_vm0, %v2590_v35  ;;  %v3216_v48 = vld [vmem:[#allocation2 + $0x160] sm:$0xff] }
 0x33b   : > { %3533 = vmatmul.mubr.bf16.gmra.mrb[88].mxu1 %v3216_v48 }
 0x33c   : > { %4124 = vmatprep.mubr.msk.bf16.mxu1 %vm247_vm0, %v3219_v31 }
 0x33d   : > { %v3218_v60 = vld [vmem:[#allocation2 + $0x170] sm:$0xff] }
 0x340   : > { %2914 = vmatmul.mubr.bf16.gmra.mrb[92].mxu0 %v2589_v22 }
 0x343   : > { %3543 = vmatmul.mubr.bf16.gmra.mrb[92].mxu1 %v3218_v60 }
 0x3ab   : > { %v5769_v61 = vpop.f32.mrb[48].mxu0 }
 0x3ac   : > { %v2807_v15 = vpop.f32.mrb[49].mxu0  ;;  %v2948_v49 = vrot.slane %v5769_v61, 1 }
 0x3ad   : > { %v5771_v40 = vpop.f32.mrb[50].mxu0  ;;  %v3076_v45 = vrot.slane %v2807_v15, 2 }
 0x3ae   : > { %v2949_v30 = vrot.slane %v5771_v40, 1  ;;  %v2811_v19 = vpop.f32.mrb[51].mxu0 }
 0x3af   : > { %v3077_v23 = vrot.slane %v2811_v19, 2 }
 0x3b0   : > { %v2950_v33 = vsel %vm1163_vm7, %v2948_v49, %v2949_v30 }
 0x3b1   : > { %2988 = vrot.lane.b32.xlu0 %v2950_v33, %s4472_s22  ;;  %v5778_v8 = vsel %vm1292_vm8, %v3076_v45, %v3077_v23 }
 0x3b6   : > { %v5780_v55 = vpop.f32.mrb[48].mxu1 }
 0x3b7   : > { %v3436_v50 = vpop.f32.mrb[49].mxu1  ;;  %v3577_v0 = vrot.slane %v5780_v55, 1 }
 0x3b8   : > { %v5782_v42 = vpop.f32.mrb[50].mxu1  ;;  %v3705_v46 = vrot.slane %v3436_v50, 2 }
 0x3b9   : > { %v3578_v39 = vrot.slane %v5782_v42, 1  ;;  %v3440_v12 = vpop.f32.mrb[51].mxu1 }
 0x3ba   : > { %v3706_v25 = vrot.slane %v3440_v12, 2 }
 0x3bb   : > { %v3579_v57 = vsel %vm1163_vm7, %v3577_v0, %v3578_v39 }
 0x3bc   : > { %3617 = vrot.lane.b32.xlu0 %v3579_v57, %s4472_s22  ;;  %v5789_v37 = vsel %vm1292_vm8, %v3705_v46, %v3706_v25  ;;  %v2815_v17 = vpop.f32.mrb[52].mxu0 }
 0x3bd   : > { %v2951_v11 = vrot.slane %v2815_v17, 1  ;;  %v2817_v5 = vpop.f32.mrb[53].mxu0 }
 0x3be   : > { %v3079_v54 = vrot.slane %v2817_v5, 2  ;;  %v5791_v51 = vpop.f32.mrb[54].mxu0 }
 0x3bf   : > { %v2821_v6 = vpop.f32.mrb[55].mxu0  ;;  %v2952_v32 = vsel %vm1163_vm7, %v2949_v30, %v2951_v11  ;;  %v2953_v36 = vrot.slane %v5791_v51, 1 }
 0x3c0   : > { %2990 = vrot.lane.b32.xlu1 %v2952_v32, %s4472_s22  ;;  %v5796_v9 = vsel %vm1292_vm8, %v3077_v23, %v3079_v54  ;;  %v3081_v52 = vrot.slane %v2821_v6, 2 }
 0x3c3   : > { %v3444_v29 = vpop.f32.mrb[52].mxu1 }
 0x3c4   : > { %v3580_v28 = vrot.slane %v3444_v29, 1  ;;  %v3446_v7 = vpop.f32.mrb[53].mxu1  ;;  %v5800_v62 = vpop.f32.mrb[56].mxu0 }
 0x3c5   : > { %v3708_v18 = vrot.slane %v3446_v7, 2  ;;  %v5798_v34 = vpop.f32.mrb[54].mxu1  ;;  %v2954_v56 = vrot.slane %v5800_v62, 1  ;;  %v2827_v2 = vpop.f32.mrb[57].mxu0 }
 0x3c6   : > { %v3450_v59 = vpop.f32.mrb[55].mxu1  ;;  %v3581_v27 = vsel %vm1163_vm7, %v3578_v39, %v3580_v28  ;;  %v3082_v38 = vrot.slane %v2827_v2, 2  ;;  %v2829_v1 = vpop.f32.mrb[58].mxu0  ;;  %v3582_v53 = vrot.slane %v5798_v34, 1 }
 0x3c7   : > { %3619 = vrot.lane.b32.xlu1 %v3581_v27, %s4472_s22  ;;  %v5807_v16 = vsel %vm1292_vm8, %v3706_v25, %v3708_v18  ;;  %v2956_v44 = vrot.slane %v2829_v1, 1  ;;  %v2831_v26 = vpop.f32.mrb[59].mxu0  ;;  %v2955_v41 = vsel %vm1163_vm7, %v2953_v36, %v2954_v56  ;;  %v3710_v3 = vrot.slane %v3450_v59, 2 }
 0x3c8   : > { %v3084_v47 = vrot.slane %v2831_v26, 2  ;;  %2992 = vrot.lane.b32.xlu0 %v2955_v41, %s4472_s22  ;;  %v5812_v63 = vsel %vm1292_vm8, %v3081_v52, %v3082_v38 }
 0x3c9   : > { %v2957_v14 = vsel %vm1163_vm7, %v2954_v56, %v2956_v44 }
 0x3ca   : > { %v5821_v21 = vsel %vm1292_vm8, %v3082_v38, %v3084_v47 }
 0x3cb   : > { %v5815_v13 = vpop.f32.mrb[56].mxu1  ;;  %2994 = vrot.lane.b32.xlu1 %v2957_v14, %s4472_s22 }
 0x3cc   : > { %v3583_v4 = vrot.slane %v5815_v13, 1  ;;  %v3456_v43 = vpop.f32.mrb[57].mxu1  ;;  %v5823_v24 = vpop.f32.mrb[60].mxu0 }
 0x3cd   : > { %v3711_v58 = vrot.slane %v3456_v43, 2  ;;  %v3458_v20 = vpop.f32.mrb[58].mxu1  ;;  %v2837_v48 = vpop.f32.mrb[61].mxu0  ;;  %v2958_v30 = vrot.slane %v5823_v24, 1 }
 0x3ce   : > { %v3585_v10 = vrot.slane %v3458_v20, 1  ;;  %v3460_v35 = vpop.f32.mrb[59].mxu1  ;;  %v3584_v31 = vsel %vm1163_vm7, %v3582_v53, %v3583_v4  ;;  %v5830_v15 = vpop.f32.mrb[62].mxu0  ;;  %v3086_v33 = vrot.slane %v2837_v48, 2 }
 0x3cf   : > { %v3713_v22 = vrot.slane %v3460_v35, 2  ;;  %3621 = vrot.lane.b32.xlu0 %v3584_v31, %s4472_s22  ;;  %v5828_v60 = vsel %vm1292_vm8, %v3710_v3, %v3711_v58  ;;  %v2959_v19 = vrot.slane %v5830_v15, 1  ;;  %v2841_v45 = vpop.f32.mrb[63].mxu0 }
 0x3d0   : > { %v3586_v49 = vsel %vm1163_vm7, %v3583_v4, %v3585_v10  ;;  %v3087_v50 = vrot.slane %v2841_v45, 2 }
 0x3d1   : > { %3623 = vrot.lane.b32.xlu1 %v3586_v49, %s4472_s22  ;;  %v5837_v23 = vsel %vm1292_vm8, %v3711_v58, %v3713_v22  ;;  %v2960_v39 = vsel %vm1163_vm7, %v2958_v30, %v2959_v19 }
 0x3d2   : > { %v5844_v46 = vsel %vm1292_vm8, %v3086_v33, %v3087_v50 }
 0x3d3   : > { %v5839_v0 = vpop.f32.mrb[60].mxu1  ;;  %2996 = vrot.lane.b32.xlu0 %v2960_v39, %s4472_s22 }
 0x3d4   : > { %v3466_v12 = vpop.f32.mrb[61].mxu1  ;;  %v3587_v57 = vrot.slane %v5839_v0, 1  ;;  %v2845_v17 = vpop.f32.mrb[64].mxu0 }
 0x3d5   : > { %v5846_v25 = vpop.f32.mrb[62].mxu1  ;;  %v3715_v54 = vrot.slane %v3466_v12, 2  ;;  %v2961_v6 = vrot.slane %v2845_v17, 1  ;;  %v2847_v32 = vpop.f32.mrb[65].mxu0 }
 0x3d6   : > { %v3588_v11 = vrot.slane %v5846_v25, 1  ;;  %v3470_v5 = vpop.f32.mrb[63].mxu1  ;;  %v3089_v28 = vrot.slane %v2847_v32, 2  ;;  %v5850_v7 = vpop.f32.mrb[66].mxu0 }
 0x3d7   : > { %v3716_v29 = vrot.slane %v3470_v5, 2  ;;  %v2851_v59 = vpop.f32.mrb[67].mxu0  ;;  %v2962_v27 = vsel %vm1163_vm7, %v2959_v19, %v2961_v6  ;;  %v2963_v14 = vrot.slane %v5850_v7, 1 }
 0x3d8   : > { %v3589_v18 = vsel %vm1163_vm7, %v3587_v57, %v3588_v11  ;;  %2998 = vrot.lane.b32.xlu1 %v2962_v27, %s4472_s22  ;;  %v5860_v56 = vsel %vm1292_vm8, %v3087_v50, %v3089_v28  ;;  %v3091_v3 = vrot.slane %v2851_v59, 2 }
 0x3d9   : > { %3625 = vrot.lane.b32.xlu0 %v3589_v18, %s4472_s22  ;;  %v5856_v36 = vsel %vm1292_vm8, %v3715_v54, %v3716_v29 }
 0x3db   : > { %v3474_v2 = vpop.f32.mrb[64].mxu1 }
 0x3dc   : > { %v3590_v52 = vrot.slane %v3474_v2, 1  ;;  %v3476_v38 = vpop.f32.mrb[65].mxu1  ;;  %v5864_v26 = vpop.f32.mrb[68].mxu0 }
 0x3dd   : > { %v3718_v1 = vrot.slane %v3476_v38, 2  ;;  %v5862_v44 = vpop.f32.mrb[66].mxu1  ;;  %v2964_v53 = vrot.slane %v5864_v26, 1  ;;  %v2857_v4 = vpop.f32.mrb[69].mxu0 }
 0x3de   : > { %v3480_v41 = vpop.f32.mrb[67].mxu1  ;;  %v3591_v47 = vsel %vm1163_vm7, %v3588_v11, %v3590_v52  ;;  %v3092_v58 = vrot.slane %v2857_v4, 2  ;;  %v2859_v20 = vpop.f32.mrb[70].mxu0  ;;  %v3592_v19 = vrot.slane %v5862_v44, 1 }
 0x3df   : > { %3627 = vrot.lane.b32.xlu1 %v3591_v47, %s4472_s22  ;;  %v5871_v43 = vsel %vm1292_vm8, %v3716_v29, %v3718_v1  ;;  %v2966_v10 = vrot.slane %v2859_v20, 1  ;;  %v2861_v35 = vpop.f32.mrb[71].mxu0  ;;  %v2965_v31 = vsel %vm1163_vm7, %v2963_v14, %v2964_v53  ;;  %v3720_v39 = vrot.slane %v3480_v41, 2 }
 0x3e0   : > { %v3094_v48 = vrot.slane %v2861_v35, 2  ;;  %3000 = vrot.lane.b32.xlu0 %v2965_v31, %s4472_s22  ;;  %v5876_v22 = vsel %vm1292_vm8, %v3091_v3, %v3092_v58 }
 0x3e1   : > { %v2967_v49 = vsel %vm1163_vm7, %v2964_v53, %v2966_v10 }
 0x3e2   : > { %v5885_v50 = vsel %vm1292_vm8, %v3092_v58, %v3094_v48 }
 0x3e3   : > { %v5879_v30 = vpop.f32.mrb[68].mxu1  ;;  %3002 = vrot.lane.b32.xlu1 %v2967_v49, %s4472_s22 }
 0x3e4   : > { %v3593_v45 = vrot.slane %v5879_v30, 1  ;;  %v3486_v33 = vpop.f32.mrb[69].mxu1  ;;  %v5887_v17 = vpop.f32.mrb[72].mxu0 }
 0x3e5   : > { %v3721_v12 = vrot.slane %v3486_v33, 2  ;;  %v3488_v57 = vpop.f32.mrb[70].mxu1  ;;  %v2867_v6 = vpop.f32.mrb[73].mxu0  ;;  %v2968_v59 = vrot.slane %v5887_v17, 1 }
 0x3e6   : > { %v3595_v11 = vrot.slane %v3488_v57, 1  ;;  %v3490_v5 = vpop.f32.mrb[71].mxu1  ;;  %v3594_v54 = vsel %vm1163_vm7, %v3592_v19, %v3593_v45  ;;  %v5894_v28 = vpop.f32.mrb[74].mxu0  ;;  %v3096_v38 = vrot.slane %v2867_v6, 2 }
 0x3e7   : > { %v3723_v32 = vrot.slane %v3490_v5, 2  ;;  %3629 = vrot.lane.b32.xlu0 %v3594_v54, %s4472_s22  ;;  %v5892_v29 = vsel %vm1292_vm8, %v3720_v39, %v3721_v12  ;;  %v2969_v27 = vrot.slane %v5894_v28, 1  ;;  %v2871_v2 = vpop.f32.mrb[75].mxu0 }
 0x3e8   : > { %v3596_v18 = vsel %vm1163_vm7, %v3593_v45, %v3595_v11  ;;  %v3097_v1 = vrot.slane %v2871_v2, 2 }
 0x3e9   : > { %3631 = vrot.lane.b32.xlu1 %v3596_v18, %s4472_s22  ;;  %v5901_v52 = vsel %vm1292_vm8, %v3721_v12, %v3723_v32  ;;  %v2970_v47 = vsel %vm1163_vm7, %v2968_v59, %v2969_v27 }
 0x3ea   : > { %v5908_v53 = vsel %vm1292_vm8, %v3096_v38, %v3097_v1 }
 0x3eb   : > { %v5903_v41 = vpop.f32.mrb[72].mxu1  ;;  %3004 = vrot.lane.b32.xlu0 %v2970_v47, %s4472_s22 }
 0x3ec   : > { %v3496_v14 = vpop.f32.mrb[73].mxu1  ;;  %v3597_v3 = vrot.slane %v5903_v41, 1 }
 0x3ed   : > { %v5910_v4 = vpop.f32.mrb[74].mxu1  ;;  %v2875_v58 = vpop.f32.mrb[76].mxu0  ;;  %v3725_v35 = vrot.slane %v3496_v14, 2 }
 0x3ee   : > { %v3598_v20 = vrot.slane %v5910_v4, 1  ;;  %v3500_v10 = vpop.f32.mrb[75].mxu1  ;;  %v2971_v31 = vrot.slane %v2875_v58, 1  ;;  %v2877_v48 = vpop.f32.mrb[77].mxu0 }
 0x3ef   : > { %v3726_v49 = vrot.slane %v3500_v10, 2  ;;  %v3099_v19 = vrot.slane %v2877_v48, 2  ;;  %v5914_v45 = vpop.f32.mrb[78].mxu0 }
 0x3f0   : > { %v3599_v33 = vsel %vm1163_vm7, %v3597_v3, %v3598_v20  ;;  %v2881_v39 = vpop.f32.mrb[79].mxu0  ;;  %v2972_v12 = vsel %vm1163_vm7, %v2969_v27, %v2971_v31  ;;  %v2973_v27 = vrot.slane %v5914_v45, 1 }
 0x3f1   : > { %3633 = vrot.lane.b32.xlu0 %v3599_v33, %s4472_s22  ;;  %v5920_v57 = vsel %vm1292_vm8, %v3725_v35, %v3726_v49  ;;  %3006 = vrot.lane.b32.xlu1 %v2972_v12, %s4472_s22  ;;  %v5924_v11 = vsel %vm1292_vm8, %v3097_v1, %v3099_v19  ;;  %v3101_v3 = vrot.slane %v2881_v39, 2 }
 0x3f3   : > { %v3504_v5 = vpop.f32.mrb[76].mxu1 }
 0x3f4   : > { %v3600_v54 = vrot.slane %v3504_v5, 1  ;;  %v3506_v6 = vpop.f32.mrb[77].mxu1 }
 0x3f5   : > { %v3728_v32 = vrot.slane %v3506_v6, 2  ;;  %v5926_v18 = vpop.f32.mrb[80].mxu0  ;;  %v5928_v59 = vpop.f32.mrb[78].mxu1 }
 0x3f6   : > { %6312 = vst [vmem:[#allocation18_spill] sm:$0xff] %v5928_v59  ;;  %v2974_v2 = vrot.slane %v5926_v18, 1  ;;  %v2887_v38 = vpop.f32.mrb[81].mxu0  ;;  %v3510_v47 = vpop.f32.mrb[79].mxu1  ;;  %v3601_v14 = vsel %vm1163_vm7, %v3598_v20, %v3600_v54 }
 0x3f7   : > { %v3102_v58 = vrot.slane %v2887_v38, 2  ;;  %v2889_v1 = vpop.f32.mrb[82].mxu0  ;;  %3635 = vrot.lane.b32.xlu1 %v3601_v14, %s4472_s22  ;;  %v5935_v10 = vsel %vm1292_vm8, %v3726_v49, %v3728_v32  ;;  %v3602_v49 = vrot.slane %v5928_v59, 1  ;;  %v3730_v6 = vrot.slane %v3510_v47, 2 }
 0x3f8   : > { %v2976_v35 = vrot.slane %v2889_v1, 1  ;;  %v2891_v31 = vpop.f32.mrb[83].mxu0  ;;  %v2975_v48 = vsel %vm1163_vm7, %v2973_v27, %v2974_v2 }
 0x3f9   : > { %v3104_v19 = vrot.slane %v2891_v31, 2  ;;  %3008 = vrot.lane.b32.xlu0 %v2975_v48, %s4472_s22  ;;  %v5940_v33 = vsel %vm1292_vm8, %v3101_v3, %v3102_v58 }
 0x3fa   : > { %v2977_v20 = vsel %vm1163_vm7, %v2974_v2, %v2976_v35 }
 0x3fb   : > { %3010 = vrot.lane.b32.xlu1 %v2977_v20, %s4472_s22  ;;  %v5944_v39 = vpop.f32.mrb[80].mxu1  ;;  %v5947_v12 = vsel %vm1292_vm8, %v3102_v58, %v3104_v19 }
 0x3fc   : > { %6313 = vst [vmem:[#allocation15_spill] sm:$0xff] %v5944_v39  ;;  %v3603_v5 = vrot.slane %v5944_v39, 1  ;;  %v3516_v54 = vpop.f32.mrb[81].mxu1 }
 0x3fd   : > { %v3731_v32 = vrot.slane %v3516_v54, 2  ;;  %v3518_v27 = vpop.f32.mrb[82].mxu1 }
 0x3fe   : > { %v3605_v38 = vrot.slane %v3518_v27, 1  ;;  %v3520_v14 = vpop.f32.mrb[83].mxu1  ;;  %v3604_v3 = vsel %vm1163_vm7, %v3602_v49, %v3603_v5 }
 0x3ff   : > { %v3733_v2 = vrot.slane %v3520_v14, 2  ;;  %3637 = vrot.lane.b32.xlu0 %v3604_v3, %s4472_s22  ;;  %v5954_v1 = vsel %vm1292_vm8, %v3730_v6, %v3731_v32 }
 0x400   : > { %6314 = vst [vmem:[#allocation19_spill] sm:$0xff] %v5954_v1  ;;  %v3606_v58 = vsel %vm1163_vm7, %v3603_v5, %v3605_v38 }
 0x401   : > { %3639 = vrot.lane.b32.xlu1 %v3606_v58, %s4472_s22  ;;  %v5959_v35 = vsel %vm1292_vm8, %v3731_v32, %v3733_v2 }
 0x402   : > { %6315 = vst [vmem:[#allocation16_spill] sm:$0xff] %v5959_v35 }
 0x403   : > { %v5961_v47 = vpop.f32.mrb[84].mxu0 }
 0x404   : > { %6316 = vst [vmem:[#allocation20_spill] sm:$0xff] %v5961_v47  ;;  %v2897_v31 = vpop.f32.mrb[85].mxu0  ;;  %v2978_v19 = vrot.slane %v5961_v47, 1 }
 0x405   : > { %v5963_v48 = vpop.f32.mrb[86].mxu0  ;;  %v3106_v6 = vrot.slane %v2897_v31, 2 }
 0x406   : > { %6317 = vst [vmem:[#allocation17_spill] sm:$0xff] %v5963_v48  ;;  %v2979_v20 = vrot.slane %v5963_v48, 1  ;;  %v2901_v49 = vpop.f32.mrb[87].mxu0  ;;  %v5967_v54 = vpop.f32.mrb[84].mxu1 }
 0x407   : > { %6318 = vst [vmem:[#allocation24_spill] sm:$0xff] %v5967_v54  ;;  %v3107_v27 = vrot.slane %v2901_v49, 2  ;;  %v3526_v5 = vpop.f32.mrb[85].mxu1  ;;  %v3607_v14 = vrot.slane %v5967_v54, 1 }
 0x408   : > { %v5969_v38 = vpop.f32.mrb[86].mxu1  ;;  %v2980_v32 = vsel %vm1163_vm7, %v2978_v19, %v2979_v20  ;;  %v3735_v48 = vrot.slane %v3526_v5, 2 }
 0x409   : > { %6319 = vst [vmem:[#allocation22_spill] sm:$0xff] %v5969_v38  ;;  %v3608_v3 = vrot.slane %v5969_v38, 1  ;;  %3012 = vrot.lane.b32.xlu0 %v2980_v32, %s4472_s22  ;;  %v3530_v2 = vpop.f32.mrb[87].mxu1  ;;  %v5976_v58 = vsel %vm1292_vm8, %v3106_v6, %v3107_v27 }
 0x40a   : > { %6320 = vst [vmem:[#allocation26_spill] sm:$0xff] %v5976_v58  ;;  %v3736_v47 = vrot.slane %v3530_v2, 2 }
 0x40b   : > { %v2905_v35 = vpop.f32.mrb[88].mxu0  ;;  %v3609_v31 = vsel %vm1163_vm7, %v3607_v14, %v3608_v3 }
 0x40c   : > { %v2981_v49 = vrot.slane %v2905_v35, 1  ;;  %v2907_v39 = vpop.f32.mrb[89].mxu0  ;;  %v5980_v1 = vsel %vm1292_vm8, %v3735_v48, %v3736_v47 }
 0x40d   : > { %6321 = vst [vmem:[#allocation30_spill] sm:$0xff] %v5980_v1  ;;  %v3109_v19 = vrot.slane %v2907_v39, 2  ;;  %v5982_v54 = vpop.f32.mrb[90].mxu0  ;;  %3641 = vrot.lane.b32.xlu0 %v3609_v31, %s4472_s22 }
 0x40e   : > { %6322 = vst [vmem:[#allocation21_spill] sm:$0xff] %v5982_v54  ;;  %v2911_v32 = vpop.f32.mrb[91].mxu0  ;;  %v3534_v38 = vpop.f32.mrb[88].mxu1  ;;  %v2982_v6 = vsel %vm1163_vm7, %v2979_v20, %v2981_v49  ;;  %v2983_v20 = vrot.slane %v5982_v54, 1 }
 0x40f   : > { %v3610_v58 = vrot.slane %v3534_v38, 1  ;;  %3014 = vrot.lane.b32.xlu1 %v2982_v6, %s4472_s22  ;;  %v3536_v5 = vpop.f32.mrb[89].mxu1  ;;  %v5988_v14 = vsel %vm1292_vm8, %v3107_v27, %v3109_v19  ;;  %v3111_v27 = vrot.slane %v2911_v32, 2 }
 0x410   : > { %6323 = vst [vmem:[#allocation25_spill] sm:$0xff] %v5988_v14  ;;  %v3738_v35 = vrot.slane %v3536_v5, 2  ;;  %v5990_v2 = vpop.f32.mrb[90].mxu1 }
 0x411   : > { %v3540_v48 = vpop.f32.mrb[91].mxu1  ;;  %v3611_v39 = vsel %vm1163_vm7, %v3608_v3, %v3610_v58 }
 0x412   : > { %v5994_v1 = vsel %vm1292_vm8, %v3736_v47, %v3738_v35  ;;  %v3612_v47 = vrot.slane %v5990_v2, 1  ;;  %v3740_v32 = vrot.slane %v3540_v48, 2 }
 0x413   : > { %6324 = vst [vmem:[#allocation23_spill] sm:$0xff] %v5994_v1  ;;  %3643 = vrot.lane.b32.xlu1 %v3611_v39, %s4472_s22  ;;  %v5997_v31 = vpop.f32.mrb[92].mxu0 }
 0x414   : > { %6325 = vst [vmem:[#allocation27_spill] sm:$0xff] %v5997_v31  ;;  %v2984_v38 = vrot.slane %v5997_v31, 1  ;;  %v2917_v49 = vpop.f32.mrb[93].mxu0 }
 0x415   : > { %v3112_v19 = vrot.slane %v2917_v49, 2  ;;  %v2919_v6 = vpop.f32.mrb[94].mxu0 }
 0x416   : > { %v2986_v5 = vrot.slane %v2919_v6, 1  ;;  %v2921_v14 = vpop.f32.mrb[95].mxu0  ;;  %v6001_v59 = vpop.f32.mrb[92].mxu1  ;;  %v2985_v3 = vsel %vm1163_vm7, %v2983_v20, %v2984_v38 }
 0x417   : > { %6326 = vst [vmem:[#allocation29_spill] sm:$0xff] %v6001_v59  ;;  %v3114_v58 = vrot.slane %v2921_v14, 2  ;;  %v3613_v35 = vrot.slane %v6001_v59, 1  ;;  %3016 = vrot.lane.b32.xlu0 %v2985_v3, %s4472_s22  ;;  %v3546_v39 = vpop.f32.mrb[93].mxu1  ;;  %v6008_v31 = vsel %vm1292_vm8, %v3111_v27, %v3112_v19 }
 0x418   : > { %v3741_v49 = vrot.slane %v3546_v39, 2  ;;  %v3548_v6 = vpop.f32.mrb[94].mxu1  ;;  %v2987_v54 = vsel %vm1163_vm7, %v2984_v38, %v2986_v5  ;;  %v4125_v39 = vld [vmem:[%s4691_s6 + $0x80] sm:$0xff] }
 0x419   : > { %v3615_v1 = vrot.slane %v3548_v6, 1  ;;  %3018 = vrot.lane.b32.xlu1 %v2987_v54, %s4472_s22  ;;  %v3550_v20 = vpop.f32.mrb[95].mxu1  ;;  %v3614_v14 = vsel %vm1163_vm7, %v3612_v47, %v3613_v35  ;;  %v6014_v59 = vsel %vm1292_vm8, %v3112_v19, %v3114_v58  ;;  %v3148_v19 = vld [vmem:[%s4691_s6] sm:$0xff]  ;;  %v3149_v6 = vld [vmem:[%s4691_s6 + $0x8] sm:$0xff] }
 0x41a   : > { %v3743_v3 = vrot.slane %v3550_v20, 2  ;;  %v6017_v27 = vsel %vm1292_vm8, %v3740_v32, %v3741_v49 }
 0x41b   : > { %3645 = vrot.lane.b32.xlu0 %v3614_v14, %s4472_s22  ;;  %v3616_v48 = vsel %vm1163_vm7, %v3613_v35, %v3615_v1 }
 0x41c   : > { %v6022_v38 = vsel %vm1292_vm8, %v3741_v49, %v3743_v3 }
 0x41d   : > { %3647 = vrot.lane.b32.xlu1 %v3616_v48, %s4472_s22 }
 0x423   : > { %v2989_v54 = vpop.permute.xlu0 %2988 }
 0x424   : > { %v3036_v5 = vadd.f32 %v2989_v54, %v5769_v61 }
 0x426   : > { %v3132_v47 = vadd.f32 %v5778_v8, %v3036_v5 }
 0x428   : > { %v3164_v58 = vadd.f32 %v3148_v19, %v3132_v47  ;;  %v3150_v19 = vld [vmem:[%s4691_s6 + $0x10] sm:$0xff] }
 0x42a   : > { %3180 = vst.msk [vmem:[%s6030_s12] sm:$0xff] %vm247_vm0, %v3164_v58 }
 0x42e   : > { %v3618_v1 = vpop.permute.xlu0 %3617 }
 0x42f   : > { %v3665_v35 = vadd.f32 %v3618_v1, %v5780_v55  ;;  %v4126_v55 = vld [vmem:[%s4691_s6 + $0x88] sm:$0xff] }
 0x431   : > { %v3761_v32 = vadd.f32 %v5789_v37, %v3665_v35 }
 0x432   : > { %v2991_v49 = vpop.permute.xlu1 %2990 }
 0x433   : > { %v3794_v61 = vadd.f32 %v4125_v39, %v3761_v32  ;;  %v3037_v8 = vadd.f32 %v2991_v49, %v5771_v40  ;;  %v4127_v32 = vld [vmem:[%s4691_s6 + $0x90] sm:$0xff]  ;;  %v4128_v49 = vld [vmem:[%s4691_s6 + $0x98] sm:$0xff] }
 0x435   : > { %4141 = vst.msk [vmem:[%s6030_s12 + $0x80] sm:$0xff] %vm247_vm0, %v3794_v61  ;;  %v3133_v20 = vadd.f32 %v5796_v9, %v3037_v8 }
 0x437   : > { %v3165_v14 = vadd.f32 %v3149_v6, %v3133_v20 }
 0x439   : > { %v3620_v3 = vpop.permute.xlu1 %3619  ;;  %3181 = vst.msk [vmem:[%s6030_s12 + $0x8] sm:$0xff] %vm247_vm0, %v3165_v14  ;;  %v3152_v14 = vld [vmem:[%s4691_s6 + $0x20] sm:$0xff] }
 0x43a   : > { %v3666_v48 = vadd.f32 %v3620_v3, %v5782_v42  ;;  %v2993_v54 = vpop.permute.xlu0 %2992  ;;  %v3151_v42 = vld [vmem:[%s4691_s6 + $0x18] sm:$0xff] }
 0x43b   : > { %v3038_v40 = vadd.f32 %v2993_v54, %v5791_v51 }
 0x43c   : > { %v3762_v37 = vadd.f32 %v5807_v16, %v3666_v48 }
 0x43d   : > { %v2995_v47 = vpop.permute.xlu1 %2994  ;;  %v3134_v9 = vadd.f32 %v5812_v63, %v3038_v40 }
 0x43e   : > { %v3795_v5 = vadd.f32 %v4126_v55, %v3762_v37  ;;  %v3039_v58 = vadd.f32 %v2995_v47, %v5800_v62  ;;  %v3153_v37 = vld [vmem:[%s4691_s6 + $0x28] sm:$0xff] }
 0x43f   : > { %v3166_v1 = vadd.f32 %v3150_v19, %v3134_v9 }
 0x440   : > { %4142 = vst.msk [vmem:[%s6030_s12 + $0x88] sm:$0xff] %vm247_vm0, %v3795_v5  ;;  %v3135_v16 = vadd.f32 %v5821_v21, %v3039_v58  ;;  %v3154_v58 = vld [vmem:[%s4691_s6 + $0x30] sm:$0xff] }
 0x441   : > { %v3622_v35 = vpop.permute.xlu0 %3621  ;;  %3182 = vst.msk [vmem:[%s6030_s12 + $0x10] sm:$0xff] %vm247_vm0, %v3166_v1 }
 0x442   : > { %v3667_v51 = vadd.f32 %v3622_v35, %v5798_v34  ;;  %v3167_v39 = vadd.f32 %v3151_v42, %v3135_v16 }
 0x443   : > { %v3624_v61 = vpop.permute.xlu1 %3623 }
 0x444   : > { %v3763_v63 = vadd.f32 %v5828_v60, %v3667_v51  ;;  %v3668_v62 = vadd.f32 %v3624_v61, %v5815_v13  ;;  %3183 = vst.msk [vmem:[%s6030_s12 + $0x18] sm:$0xff] %vm247_vm0, %v3167_v39 }
 0x445   : > { %v2997_v34 = vpop.permute.xlu0 %2996 }
 0x446   : > { %v3796_v21 = vadd.f32 %v4127_v32, %v3763_v63  ;;  %v3764_v8 = vadd.f32 %v5837_v23, %v3668_v62  ;;  %v3040_v6 = vadd.f32 %v2997_v34, %v5823_v24  ;;  %v4129_v23 = vld [vmem:[%s4691_s6 + $0xa0] sm:$0xff]  ;;  %v4131_v32 = vld [vmem:[%s4691_s6 + $0xb0] sm:$0xff]  ;;  %v4132_v63 = vld [vmem:[%s4691_s6 + $0xb8] sm:$0xff] }
 0x448   : > { %4143 = vst.msk [vmem:[%s6030_s12 + $0x90] sm:$0xff] %vm247_vm0, %v3796_v21  ;;  %v3797_v20 = vadd.f32 %v4128_v49, %v3764_v8  ;;  %v3136_v60 = vadd.f32 %v5844_v46, %v3040_v6  ;;  %v3156_v8 = vld [vmem:[%s4691_s6 + $0x40] sm:$0xff] }
 0x44a   : > { %4144 = vst.msk [vmem:[%s6030_s12 + $0x98] sm:$0xff] %vm247_vm0, %v3797_v20  ;;  %v3168_v13 = vadd.f32 %v3152_v14, %v3136_v60  ;;  %v2999_v48 = vpop.permute.xlu1 %2998  ;;  %v3157_v14 = vld [vmem:[%s4691_s6 + $0x48] sm:$0xff] }
 0x44b   : > { %v3626_v3 = vpop.permute.xlu0 %3625  ;;  %v3041_v24 = vadd.f32 %v2999_v48, %v5830_v15  ;;  %v4130_v15 = vld [vmem:[%s4691_s6 + $0xa8] sm:$0xff] }
 0x44c   : > { %v3669_v55 = vadd.f32 %v3626_v3, %v5839_v0  ;;  %3184 = vst.msk [vmem:[%s6030_s12 + $0x20] sm:$0xff] %vm247_vm0, %v3168_v13 }
 0x44d   : > { %v3137_v46 = vadd.f32 %v5860_v56, %v3041_v24 }
 0x44e   : > { %v3765_v54 = vadd.f32 %v5856_v36, %v3669_v55  ;;  %v4134_v55 = vld [vmem:[%s4691_s6 + $0xc8] sm:$0xff] }
 0x44f   : > { %v3169_v5 = vadd.f32 %v3153_v37, %v3137_v46 }
 0x450   : > { %v3798_v40 = vadd.f32 %v4129_v23, %v3765_v54 }
 0x451   : > { %v3628_v19 = vpop.permute.xlu1 %3627  ;;  %3185 = vst.msk [vmem:[%s6030_s12 + $0x28] sm:$0xff] %vm247_vm0, %v3169_v5 }
 0x452   : > { %4145 = vst.msk [vmem:[%s6030_s12 + $0xa0] sm:$0xff] %vm247_vm0, %v3798_v40  ;;  %v3670_v0 = vadd.f32 %v3628_v19, %v5846_v25  ;;  %v3001_v9 = vpop.permute.xlu0 %3000  ;;  %v3155_v25 = vld [vmem:[%s4691_s6 + $0x38] sm:$0xff] }
 0x453   : > { %v3042_v36 = vadd.f32 %v3001_v9, %v5850_v7  ;;  %v3159_v40 = vld [vmem:[%s4691_s6 + $0x58] sm:$0xff]  ;;  %v6329_v9 = vld [vmem:[#allocation15_spill] sm:$0xff] }
 0x454   : > { %v3766_v47 = vadd.f32 %v5871_v43, %v3670_v0  ;;  %v6327_v19 = vld [vmem:[#allocation18_spill] sm:$0xff] }
 0x455   : > { %v3003_v42 = vpop.permute.xlu1 %3002  ;;  %v3138_v1 = vadd.f32 %v5876_v22, %v3042_v36 }
 0x456   : > { %v3799_v56 = vadd.f32 %v4130_v15, %v3766_v47  ;;  %v3043_v16 = vadd.f32 %v3003_v42, %v5864_v26  ;;  %v4135_v15 = vld [vmem:[%s4691_s6 + $0xd0] sm:$0xff] }
 0x457   : > { %v3170_v35 = vadd.f32 %v3154_v58, %v3138_v1 }
 0x458   : > { %4146 = vst.msk [vmem:[%s6030_s12 + $0xa8] sm:$0xff] %vm247_vm0, %v3799_v56  ;;  %v3139_v43 = vadd.f32 %v5885_v50, %v3043_v16  ;;  %v4136_v56 = vld [vmem:[%s4691_s6 + $0xd8] sm:$0xff] }
 0x459   : > { %v3630_v51 = vpop.permute.xlu0 %3629  ;;  %3186 = vst.msk [vmem:[%s6030_s12 + $0x30] sm:$0xff] %vm247_vm0, %v3170_v35 }
 0x45a   : > { %v3671_v7 = vadd.f32 %v3630_v51, %v5862_v44  ;;  %v3171_v39 = vadd.f32 %v3155_v25, %v3139_v43  ;;  %v6331_v25 = vld [vmem:[#allocation20_spill] sm:$0xff]  ;;  %v3160_v43 = vld [vmem:[%s4691_s6 + $0x60] sm:$0xff]  ;;  %v6332_v51 = vld [vmem:[#allocation26_spill] sm:$0xff] }
 0x45b   : > { %v3632_v61 = vpop.permute.xlu1 %3631 }
 0x45c   : > { %v3767_v22 = vadd.f32 %v5892_v29, %v3671_v7  ;;  %v3672_v26 = vadd.f32 %v3632_v61, %v5879_v30  ;;  %3187 = vst.msk [vmem:[%s6030_s12 + $0x38] sm:$0xff] %vm247_vm0, %v3171_v39  ;;  %v6333_v61 = vld [vmem:[#allocation24_spill] sm:$0xff] }
 0x45d   : > { %v3005_v44 = vpop.permute.xlu0 %3004 }
 0x45e   : > { %v3800_v50 = vadd.f32 %v4131_v32, %v3767_v22  ;;  %v3768_v62 = vadd.f32 %v5901_v52, %v3672_v26  ;;  %v3044_v49 = vadd.f32 %v3005_v44, %v5887_v17  ;;  %v4133_v52 = vld [vmem:[%s4691_s6 + $0xc0] sm:$0xff]  ;;  %v6335_v44 = vld [vmem:[#allocation17_spill] sm:$0xff] }
 0x45f   : > { %v4137_v26 = vld [vmem:[%s4691_s6 + $0xe0] sm:$0xff] }
 0x460   : > { %4147 = vst.msk [vmem:[%s6030_s12 + $0xb0] sm:$0xff] %vm247_vm0, %v3800_v50  ;;  %v3801_v21 = vadd.f32 %v4132_v63, %v3768_v62  ;;  %v3140_v29 = vadd.f32 %v5908_v53, %v3044_v49  ;;  %v6334_v50 = vld [vmem:[#allocation30_spill] sm:$0xff] }
 0x462   : > { %4148 = vst.msk [vmem:[%s6030_s12 + $0xb8] sm:$0xff] %vm247_vm0, %v3801_v21  ;;  %v3172_v30 = vadd.f32 %v3156_v8, %v3140_v29  ;;  %v3161_v21 = vld [vmem:[%s4691_s6 + $0x68] sm:$0xff]  ;;  %v6336_v29 = vld [vmem:[#allocation25_spill] sm:$0xff] }
 0x463   : > { %v3634_v34 = vpop.permute.xlu0 %3633  ;;  %v3007_v6 = vpop.permute.xlu1 %3006 }
 0x464   : > { %v3673_v20 = vadd.f32 %v3634_v34, %v5903_v41  ;;  %3188 = vst.msk [vmem:[%s6030_s12 + $0x40] sm:$0xff] %vm247_vm0, %v3172_v30  ;;  %v3045_v17 = vadd.f32 %v3007_v6, %v5894_v28 }
 0x466   : > { %v3769_v60 = vadd.f32 %v5920_v57, %v3673_v20  ;;  %v3141_v53 = vadd.f32 %v5924_v11, %v3045_v17  ;;  %v3158_v11 = vld [vmem:[%s4691_s6 + $0x50] sm:$0xff]  ;;  %v6337_v20 = vld [vmem:[#allocation22_spill] sm:$0xff] }
 0x468   : > { %v3802_v13 = vadd.f32 %v4133_v52, %v3769_v60  ;;  %v3173_v3 = vadd.f32 %v3157_v14, %v3141_v53  ;;  %v4138_v52 = vld [vmem:[%s4691_s6 + $0xe8] sm:$0xff]  ;;  %v6338_v14 = vld [vmem:[#allocation23_spill] sm:$0xff] }
 0x469   : > { %v3636_v48 = vpop.permute.xlu1 %3635 }
 0x46a   : > { %4149 = vst.msk [vmem:[%s6030_s12 + $0xc0] sm:$0xff] %vm247_vm0, %v3802_v13  ;;  %3189 = vst.msk [vmem:[%s6030_s12 + $0x48] sm:$0xff] %vm247_vm0, %v3173_v3  ;;  %v3674_v41 = vadd.f32 %v3636_v48, %v5910_v4  ;;  %v6339_v3 = vld [vmem:[#allocation21_spill] sm:$0xff] }
 0x46b   : > { %v3009_v28 = vpop.permute.xlu0 %3008 }
 0x46c   : > { %v3770_v24 = vadd.f32 %v5935_v10, %v3674_v41  ;;  %v3046_v57 = vadd.f32 %v3009_v28, %v5914_v45  ;;  %v3162_v41 = vld [vmem:[%s4691_s6 + $0x70] sm:$0xff] }
 0x46d   : > { %v3011_v23 = vpop.permute.xlu1 %3010 }
 0x46e   : > { %v3803_v37 = vadd.f32 %v4134_v55, %v3770_v24  ;;  %v3142_v54 = vadd.f32 %v5940_v33, %v3046_v57  ;;  %v3047_v46 = vadd.f32 %v3011_v23, %v5926_v18  ;;  %v6328_v18 = vld [vmem:[#allocation19_spill] sm:$0xff] }
 0x46f   : > { %v6340_v24 = vld [vmem:[#allocation27_spill] sm:$0xff] }
 0x470   : > { %4150 = vst.msk [vmem:[%s6030_s12 + $0xc8] sm:$0xff] %vm247_vm0, %v3803_v37  ;;  %v3174_v4 = vadd.f32 %v3158_v11, %v3142_v54  ;;  %v3143_v5 = vadd.f32 %v5947_v12, %v3047_v46  ;;  %v6330_v12 = vld [vmem:[#allocation16_spill] sm:$0xff]  ;;  %v3163_v11 = vld [vmem:[%s4691_s6 + $0x78] sm:$0xff] }
 0x471   : > { %v3638_v10 = vpop.permute.xlu0 %3637 }
 0x472   : > { %3190 = vst.msk [vmem:[%s6030_s12 + $0x50] sm:$0xff] %vm247_vm0, %v3174_v4  ;;  %v3175_v45 = vadd.f32 %v3159_v40, %v3143_v5  ;;  %v3675_v0 = vadd.f32 %v3638_v10, %v6327_v19  ;;  %v4139_v40 = vld [vmem:[%s4691_s6 + $0xf0] sm:$0xff]  ;;  %v4140_v19 = vld [vmem:[%s4691_s6 + $0xf8] sm:$0xff] }
 0x473   : > { %v3640_v47 = vpop.permute.xlu1 %3639  ;;  %v6341_v10 = vld [vmem:[#allocation29_spill] sm:$0xff] }
 0x474   : > { %3191 = vst.msk [vmem:[%s6030_s12 + $0x58] sm:$0xff] %vm247_vm0, %v3175_v45  ;;  %v3771_v33 = vadd.f32 %v6328_v18, %v3675_v0  ;;  %v3676_v36 = vadd.f32 %v3640_v47, %v6329_v9 }
 0x476   : > { %v3804_v58 = vadd.f32 %v4135_v15, %v3771_v33  ;;  %v3772_v42 = vadd.f32 %v6330_v12, %v3676_v36 }
 0x478   : > { %4151 = vst.msk [vmem:[%s6030_s12 + $0xd0] sm:$0xff] %vm247_vm0, %v3804_v58  ;;  %v3805_v1 = vadd.f32 %v4136_v56, %v3772_v42 }
 0x47a   : > { %4152 = vst.msk [vmem:[%s6030_s12 + $0xd8] sm:$0xff] %vm247_vm0, %v3805_v1 }
 0x47b   : > { %v3013_v16 = vpop.permute.xlu0 %3012 }
 0x47c   : > { %v3048_v35 = vadd.f32 %v3013_v16, %v6331_v25 }
 0x47e   : > { %v3144_v7 = vadd.f32 %v6332_v51, %v3048_v35 }
 0x47f   : > { %v3642_v39 = vpop.permute.xlu0 %3641 }
 0x480   : > { %v3176_v32 = vadd.f32 %v3160_v43, %v3144_v7  ;;  %v3677_v22 = vadd.f32 %v3642_v39, %v6333_v61 }
 0x481   : > { %v3015_v63 = vpop.permute.xlu1 %3014 }
 0x482   : > { %3192 = vst.msk [vmem:[%s6030_s12 + $0x60] sm:$0xff] %vm247_vm0, %v3176_v32  ;;  %v3773_v62 = vadd.f32 %v6334_v50, %v3677_v22  ;;  %v3049_v49 = vadd.f32 %v3015_v63, %v6335_v44 }
 0x484   : > { %v3806_v8 = vadd.f32 %v4137_v26, %v3773_v62  ;;  %v3145_v30 = vadd.f32 %v6336_v29, %v3049_v49 }
 0x485   : > { %v3644_v34 = vpop.permute.xlu1 %3643 }
 0x486   : > { %4153 = vst.msk [vmem:[%s6030_s12 + $0xe0] sm:$0xff] %vm247_vm0, %v3806_v8  ;;  %v3177_v6 = vadd.f32 %v3161_v21, %v3145_v30  ;;  %v3678_v17 = vadd.f32 %v3644_v34, %v6337_v20 }
 0x488   : > { %3193 = vst.msk [vmem:[%s6030_s12 + $0x68] sm:$0xff] %vm247_vm0, %v3177_v6  ;;  %v3774_v60 = vadd.f32 %v6338_v14, %v3678_v17 }
 0x489   : > { %v3017_v53 = vpop.permute.xlu0 %3016 }
 0x48a   : > { %v3807_v13 = vadd.f32 %v4138_v52, %v3774_v60  ;;  %v3050_v48 = vadd.f32 %v3017_v53, %v6339_v3 }
 0x48b   : > { %v3019_v55 = vpop.permute.xlu1 %3018 }
 0x48c   : > { %4154 = vst.msk [vmem:[%s6030_s12 + $0xe8] sm:$0xff] %vm247_vm0, %v3807_v13  ;;  %v3146_v28 = vadd.f32 %v6008_v31, %v3050_v48  ;;  %v3051_v57 = vadd.f32 %v3019_v55, %v6340_v24 }
 0x48d   : > { %v3646_v23 = vpop.permute.xlu0 %3645 }
 0x48e   : > { %v3178_v37 = vadd.f32 %v3162_v41, %v3146_v28  ;;  %v3147_v54 = vadd.f32 %v6014_v59, %v3051_v57  ;;  %v3679_v46 = vadd.f32 %v3646_v23, %v5990_v2 }
 0x48f   : > { %v3648_v4 = vpop.permute.xlu1 %3647 }
 0x490   : > { %3194 = vst.msk [vmem:[%s6030_s12 + $0x70] sm:$0xff] %vm247_vm0, %v3178_v37  ;;  %v3179_v5 = vadd.f32 %v3163_v11, %v3147_v54  ;;  %v3775_v31 = vadd.f32 %v6017_v27, %v3679_v46  ;;  %v3680_v45 = vadd.f32 %v3648_v4, %v6341_v10 }
 0x492   : > { %3195 = vst.msk [vmem:[%s6030_s12 + $0x78] sm:$0xff] %vm247_vm0, %v3179_v5  ;;  %v3808_v59 = vadd.f32 %v4139_v40, %v3775_v31  ;;  %v3776_v2 = vadd.f32 %v6022_v38, %v3680_v45 }
 0x494   : > { %4155 = vst.msk [vmem:[%s6030_s12 + $0xf0] sm:$0xff] %vm247_vm0, %v3808_v59  ;;  %v3809_v27 = vadd.f32 %v4140_v19, %v3776_v2 }
 0x496   : > { %4156 = vst.msk [vmem:[%s6030_s12 + $0xf8] sm:$0xff] %vm247_vm0, %v3809_v27 }
 0x497   : > { %4407 = shalt.err (!%p4404_p1)
}
 0x498   : > { %s4408_s25 = scalar_lea.hbm %s6190_s10, 4096  ;;  %s4412_s9 = scalar_lea.hbm %s6244_s4, 8192 }
 0x499   : > { %p4409_p13 = scmp.ne.s32.totalorder %s6190_s10, %s4408_s25  ;;  %p4413_p4 = scmp.lt.u32.totalorder %s6190_s10, %s6244_s4 }
 0x49a   : > { %p4414_p5 = scmp.lt.u32.totalorder %s4412_s9, %s4408_s25  ;;  %p4416_p11 = scmp.lt.u32.totalorder %s4408_s25, %s6190_s10 }
 0x49b   : > { %p4410_p6 = pnand %p4409_p13, %p6342_p0 }
 0x49c   : > { %p4415_p8 = por %p4414_p5, %p4413_p4 }
 0x49d   : > { %p4411_p10 = pneg %p4410_p6 }
 0x49e   : > { %p4417_p2 = por %p4416_p11, %p4415_p8 }
 0x4a0   : > { %p4418_p3 = pnand %p4417_p2, %p4411_p10 }
 0x4a2   : > { %4421 = shalt.err (!%p4418_p3)
}
 0x4a3   : > { %s4474_s24 = smov 128   ;;  %s4475_s12 = smov 8  }
 0x4a4   : > { %4174 = dma.vmem_to_hbm [thread:$0]  (%p6342_p0), %s6192_s28, 4096, %s6190_s10, %s3828_s3, %s4474_s24, %s4474_s24, %s4475_s12  }
 0x4a5 PF: > { %s3856_s13 = sand.u32 1, %s4452_s17   ;;  %p6343_p7 = scmp.ne.s32.totalorder %s6267_s23, 0 }
 0x4a6   : > { %p6344_p9 = scmp.ge.s32.totalorder %s4464_s20, 2  ;;  %s3857_s5 = scalar_lea.sflag [#allocation7], %s3856_s13 }
 0x4a8   : > { %p4188_p12 = pnand %p6344_p9, %p6343_p7 }
 0x4aa   : > { %4447 = dma.done.wait (!%p4188_p12), %s3857_s5, 4096  }
 0x4ab   : > { %4449 = vsyncadd (!%p4188_p12), %s3857_s5, 4294963200  ;;  %p19_p1 = scmp.ge.s32.totalorder %s4620_s27, 4   ;;  %s6345_s17 = smov %s4456_s18 }
 0x4ac   : > { %s6346_s18 = smov %s4460_s19  ;;  %s6347_s19 = smov %s4636_s14 }
 0x4ad   : > { %s6348_s20 = smov %s4620_s27  ;;  %21 = sbr.rel (!%p19_p1) target bundleno = 8 (0x8), region = 94 }
 0x4b4   :  { %3862 = vsyncpa [#allocation6], 1 }
 0x4b5   :  { %3864 = vsyncpa [#allocation6 + $0x1], 1 }
 0x4b6   :  { %3865 = vsyncpa [#allocation9], 1 }
 0x4b7   :  { %3866 = vsyncpa [#allocation7], 1 }
 0x4b8   :  { %3868 = vsyncpa [#allocation7 + $0x1], 1 }

</bundles_post_ra>
